<compile_context>
chip_gen: v7x
topology: tpu7x:2x2x1
jax: 0.10.0
libtpu: 0.0.40
codegen_flags: <defaults>
</compile_context>

<pallas_src>
import jax
import jax.numpy as jnp
from jax import lax
from jax.experimental import pallas as pl
from jax.experimental.pallas import tpu as pltpu


def bottleneck_kernel(x_ref, wcat_ref, scat_ref, bcat_ref,
                      w2_ref, s2_ref, b2_ref,
                      w3_ref, s3_ref, b3_ref,
                      sew1_ref, seb1_ref, sew2_ref, seb2_ref,
                      o_ref,
                      hcat_ref, pad_ref, cols_ref):
    # One grid step == one image (NHWC, block (1, H, W, Cin)).
    _, H, W, Cin = x_ref.shape
    Cproj = w3_ref.shape[0]
    Cout = w3_ref.shape[1]
    HW = H * W

    xf = x_ref[...].reshape(HW, Cin)                                  # (HW, Cin)

    # --- conv1 (1x1, no bias) fused with the 1x1 identity projection ---
    # Single matmul against [w1 | wp]; fused scale/bias epilogue applies
    # (s1, b1) to the conv1 half and (1, bp) to the projection half.
    hcat = jnp.dot(xf, wcat_ref[...], preferred_element_type=jnp.float32)
    hcat_ref[...] = hcat * scat_ref[...] + bcat_ref[...]              # (HW, Cproj+Cout)
    h1 = jnp.maximum(hcat_ref[:, :Cproj], 0.0)                        # conv1+BN1+ReLU
    # projection (+bias) half is read back right before the residual add

    # --- conv2 (3x3, stride 1, pad 1, no bias) as one im2col matmul ---
    # Zero only the 1-pixel halo; write the interior once.
    zrow = jnp.zeros((1, W + 2, Cproj), jnp.float32)
    zcol = jnp.zeros((H, 1, Cproj), jnp.float32)
    pad_ref[0:1, :, :] = zrow
    pad_ref[H + 1:H + 2, :, :] = zrow
    pad_ref[1:H + 1, 0:1, :] = zcol
    pad_ref[1:H + 1, W + 1:W + 2, :] = zcol
    pad_ref[1:H + 1, 1:W + 1, :] = h1.reshape(H, W, Cproj)

    # Assemble the (HW, 9*Cproj) im2col matrix from 9 shifted taps sliced
    # directly from the padded ref.
    for t in range(9):
        dy, dx = t // 3, t % 3
        tap = pad_ref[dy:dy + H, dx:dx + W, :].reshape(HW, Cproj)
        cols_ref[:, t * Cproj:(t + 1) * Cproj] = tap

    h2 = jnp.dot(cols_ref[...], w2_ref[...],
                 preferred_element_type=jnp.float32)                  # K = 9*Cproj
    h2 = jnp.maximum(h2 * s2_ref[...] + b2_ref[...], 0.0)             # BN2 + ReLU

    # --- conv3 (1x1, no bias) + BN3 + ReLU ---
    h3 = jnp.dot(h2, w3_ref[...], preferred_element_type=jnp.float32)
    h3 = jnp.maximum(h3 * s3_ref[...] + b3_ref[...], 0.0)             # (HW, Cout)

    # --- SE block: GAP -> fc1 -> ReLU -> fc2 -> sigmoid -> channel scale ---
    gap = jnp.mean(h3, axis=0, keepdims=True)                         # (1, Cout)
    z = jnp.dot(gap, sew1_ref[...], preferred_element_type=jnp.float32) + seb1_ref[...]
    z = jnp.maximum(z, 0.0)
    z = jnp.dot(z, sew2_ref[...], preferred_element_type=jnp.float32) + seb2_ref[...]
    se = jax.nn.sigmoid(z)                                            # (1, Cout)

    # --- residual add with the projected identity branch ---
    proj = hcat_ref[:, Cproj:Cproj + Cout]                            # (HW, Cout)
    res = h3 * se + proj
    o_ref[...] = res.reshape(1, H, W, Cout).astype(o_ref.dtype)


@jax.jit
def bottleneck_block(x_nchw, params):
    """BottleneckBlock forward. Input/output are NCHW (PyTorch layout)."""
    x = jnp.transpose(x_nchw, (0, 2, 3, 1))                           # NCHW -> NHWC
    N, H, W, Cin = x.shape
    Cproj = params["w1"].shape[1]
    Cout = params["w3"].shape[1]

    # Fused conv1 + projection weight and its fused scale/bias epilogue.
    wcat = jnp.concatenate([params["w1"], params["wp"]], axis=1)      # (Cin, Cproj+Cout)
    scat = jnp.concatenate(
        [params["s1"], jnp.ones((1, Cout), jnp.float32)], axis=1)     # (1, Cproj+Cout)
    bcat = jnp.concatenate([params["b1"], params["bp"]], axis=1)      # (1, Cproj+Cout)
    w2flat = params["w2"].reshape(9 * Cproj, Cproj)                   # im2col weight

    args = (x, wcat, scat, bcat,
            w2flat, params["s2"], params["b2"],
            params["w3"], params["s3"], params["b3"],
            params["se_w1"], params["se_b1"], params["se_w2"], params["se_b2"])

    def whole(a):
        nd = a.ndim

        def imap(n):
            return (0,) * nd

        return pl.BlockSpec(a.shape, imap)

    in_specs = ([pl.BlockSpec((1, H, W, Cin), lambda n: (n, 0, 0, 0))]
                + [whole(a) for a in args[1:]])

    grid_spec = pltpu.PrefetchScalarGridSpec(
        num_scalar_prefetch=0,
        grid=(N,),
        in_specs=in_specs,
        out_specs=pl.BlockSpec((1, H, W, Cout), lambda n: (n, 0, 0, 0)),
        scratch_shapes=[
            pltpu.VMEM((H * W, Cproj + Cout), jnp.float32),   # fused conv1/proj result
            pltpu.VMEM((H + 2, W + 2, Cproj), jnp.float32),   # zero-padded h1 (halo only zeroed)
            pltpu.VMEM((H * W, 9 * Cproj), jnp.float32),      # im2col matrix
        ],
    )

    out = pl.pallas_call(
        bottleneck_kernel,
        out_shape=jax.ShapeDtypeStruct((N, H, W, Cout), jnp.float32),
        grid_spec=grid_spec,
        compiler_params=pltpu.CompilerParams(
            dimension_semantics=("parallel",)),
    )(*args)
    return jnp.transpose(out, (0, 3, 1, 2))                           # NHWC -> NCHW


def _folded_bn(kg, kb, km, kv, c, eps=1e-5):
    gamma = jax.random.uniform(kg, (c,), jnp.float32, 0.5, 1.5)
    beta = 0.1 * jax.random.normal(kb, (c,), jnp.float32)
    mean = 0.1 * jax.random.normal(km, (c,), jnp.float32)
    var = jax.random.uniform(kv, (c,), jnp.float32, 0.5, 1.5)
    scale = gamma * lax.rsqrt(var + eps)
    bias = beta - mean * scale
    return scale.reshape(1, c), bias.reshape(1, c)


def init_params(key, cin, cproj, cout, reduction=4):
    cred = cout // reduction
    ks = jax.random.split(key, 21)
    p = {}
    p["w1"] = 0.2 * jax.random.normal(ks[0], (cin, cproj), jnp.float32)
    p["s1"], p["b1"] = _folded_bn(ks[1], ks[2], ks[3], ks[4], cproj)
    w2 = 0.2 * jax.random.normal(ks[5], (3, 3, cproj, cproj), jnp.float32)  # HWIO
    p["w2"] = w2.reshape(9, cproj, cproj)
    p["s2"], p["b2"] = _folded_bn(ks[6], ks[7], ks[8], ks[9], cproj)
    p["w3"] = 0.2 * jax.random.normal(ks[10], (cproj, cout), jnp.float32)
    p["s3"], p["b3"] = _folded_bn(ks[11], ks[12], ks[13], ks[14], cout)
    p["se_w1"] = 0.2 * jax.random.normal(ks[15], (cout, cred), jnp.float32)
    p["se_b1"] = 0.05 * jax.random.normal(ks[16], (1, cred), jnp.float32)
    p["se_w2"] = 0.2 * jax.random.normal(ks[17], (cred, cout), jnp.float32)
    p["se_b2"] = 0.05 * jax.random.normal(ks[18], (1, cout), jnp.float32)
    p["wp"] = 0.2 * jax.random.normal(ks[19], (cin, cout), jnp.float32)
    p["bp"] = 0.05 * jax.random.normal(ks[20], (1, cout), jnp.float32)
    return p


def reference(x_nchw, p):
    """Pure-JAX reference (NHWC internally), mirrors the PyTorch forward."""
    x = jnp.transpose(x_nchw, (0, 2, 3, 1))
    cproj = p["w1"].shape[1]
    h = jnp.einsum("nhwc,cd->nhwd", x, p["w1"])
    h = jnp.maximum(h * p["s1"][0] + p["b1"][0], 0.0)
    w2 = p["w2"].reshape(3, 3, cproj, cproj)
    h = lax.conv_general_dilated(h, w2, (1, 1), [(1, 1), (1, 1)],
                                 dimension_numbers=("NHWC", "HWIO", "NHWC"))
    h = jnp.maximum(h * p["s2"][0] + p["b2"][0], 0.0)
    h = jnp.einsum("nhwc,cd->nhwd", h, p["w3"])
    h = jnp.maximum(h * p["s3"][0] + p["b3"][0], 0.0)
    gap = jnp.mean(h, axis=(1, 2))
    z = jnp.maximum(gap @ p["se_w1"] + p["se_b1"][0], 0.0)
    se = jax.nn.sigmoid(z @ p["se_w2"] + p["se_b2"][0])
    out = h * se[:, None, None, :]
    proj = jnp.einsum("nhwc,cd->nhwd", x, p["wp"]) + p["bp"][0]
    return jnp.transpose(proj + out, (0, 3, 1, 2))


if __name__ == "__main__":
    key = jax.random.PRNGKey(0)
    kx, kp = jax.random.split(key)

    # BottleneckBlock(in_channels=4, projection_channels=8, out_channels=16)
    N, Cin, H, W = 2, 4, 16, 16
    Cproj, Cout = 8, 16

    x = jax.random.normal(kx, (N, Cin, H, W), jnp.float32)   # NCHW, like PyTorch
    params = init_params(kp, Cin, Cproj, Cout)

    out = jax.block_until_ready(bottleneck_block(x, params))
    ref = reference(x, params)

    assert out.shape == (N, Cout, H, W), out.shape
    if not jnp.allclose(out, ref, atol=1e-4, rtol=1e-4):
        raise AssertionError("Pallas kernel output does not match JAX reference")
    print("KERNEL_OK")
</pallas_src>

<mosaic_0001>
module attributes {stable_mosaic.version = 11 : i64} {
  func.func @bottleneck_kernel(%arg0: i32, %arg1: memref<1x16x16x4xf32, #tpu.memory_space<vmem>>, %arg2: memref<4x24xf32, #tpu.memory_space<vmem>>, %arg3: memref<1x24xf32, #tpu.memory_space<vmem>>, %arg4: memref<1x24xf32, #tpu.memory_space<vmem>>, %arg5: memref<72x8xf32, #tpu.memory_space<vmem>>, %arg6: memref<1x8xf32, #tpu.memory_space<vmem>>, %arg7: memref<1x8xf32, #tpu.memory_space<vmem>>, %arg8: memref<8x16xf32, #tpu.memory_space<vmem>>, %arg9: memref<1x16xf32, #tpu.memory_space<vmem>>, %arg10: memref<1x16xf32, #tpu.memory_space<vmem>>, %arg11: memref<16x4xf32, #tpu.memory_space<vmem>>, %arg12: memref<1x4xf32, #tpu.memory_space<vmem>>, %arg13: memref<4x16xf32, #tpu.memory_space<vmem>>, %arg14: memref<1x16xf32, #tpu.memory_space<vmem>>, %arg15: memref<1x16x16x16xf32, #tpu.memory_space<vmem>>, %arg16: memref<256x24xf32, #tpu.memory_space<vmem>>, %arg17: memref<18x18x8xf32, #tpu.memory_space<vmem>>, %arg18: memref<256x72xf32, #tpu.memory_space<vmem>>) attributes {dimension_semantics = [#tpu.dimension_semantics<parallel>], iteration_bounds = array<i64: 2>, scalar_prefetch = 0 : i64, scratch_operands = 3 : i64, tpu.core_type = #tpu.core_type<tc>, window_params = [{transform_indices = @transform_0, window_bounds = array<i64: 1, 16, 16, 4>}, {pipeline_mode = #tpu.pipeline_mode<synchronous>, transform_indices = @transform_1, window_bounds = array<i64: 4, 24>}, {pipeline_mode = #tpu.pipeline_mode<synchronous>, transform_indices = @transform_2, window_bounds = array<i64: 1, 24>}, {pipeline_mode = #tpu.pipeline_mode<synchronous>, transform_indices = @transform_3, window_bounds = array<i64: 1, 24>}, {pipeline_mode = #tpu.pipeline_mode<synchronous>, transform_indices = @transform_4, window_bounds = array<i64: 72, 8>}, {pipeline_mode = #tpu.pipeline_mode<synchronous>, transform_indices = @transform_5, window_bounds = array<i64: 1, 8>}, {pipeline_mode = #tpu.pipeline_mode<synchronous>, transform_indices = @transform_6, window_bounds = array<i64: 1, 8>}, {pipeline_mode = #tpu.pipeline_mode<synchronous>, transform_indices = @transform_7, window_bounds = array<i64: 8, 16>}, {pipeline_mode = #tpu.pipeline_mode<synchronous>, transform_indices = @transform_8, window_bounds = array<i64: 1, 16>}, {pipeline_mode = #tpu.pipeline_mode<synchronous>, transform_indices = @transform_9, window_bounds = array<i64: 1, 16>}, {pipeline_mode = #tpu.pipeline_mode<synchronous>, transform_indices = @transform_10, window_bounds = array<i64: 16, 4>}, {pipeline_mode = #tpu.pipeline_mode<synchronous>, transform_indices = @transform_11, window_bounds = array<i64: 1, 4>}, {pipeline_mode = #tpu.pipeline_mode<synchronous>, transform_indices = @transform_12, window_bounds = array<i64: 4, 16>}, {pipeline_mode = #tpu.pipeline_mode<synchronous>, transform_indices = @transform_13, window_bounds = array<i64: 1, 16>}, {transform_indices = @transform_14, window_bounds = array<i64: 1, 16, 16, 16>}]} {
    %c0 = arith.constant 0 : index
    %c0_0 = arith.constant 0 : index
    %c0_1 = arith.constant 0 : index
    %c0_2 = arith.constant 0 : index
    %0 = vector.load %arg1[%c0, %c0_0, %c0_1, %c0_2] : memref<1x16x16x4xf32, #tpu.memory_space<vmem>>, vector<1x16x16x4xf32>
    %1 = vector.shape_cast %0 : vector<1x16x16x4xf32> to vector<256x4xf32>
    %c0_3 = arith.constant 0 : index
    %c0_4 = arith.constant 0 : index
    %2 = vector.load %arg2[%c0_3, %c0_4] : memref<4x24xf32, #tpu.memory_space<vmem>>, vector<4x24xf32>
    %cst = arith.constant dense<0.000000e+00> : vector<256x24xf32>
    %3 = tpu.matmul %1, %2, %cst {dimension_numbers = #tpu.dot_dimension_numbers<[1], [0], [0], [1], [0, 0, 1, 1], [], []>} : vector<256x4xf32>, vector<4x24xf32>, vector<256x24xf32> -> vector<256x24xf32>
    %c0_5 = arith.constant 0 : index
    %c0_6 = arith.constant 0 : index
    %4 = vector.load %arg3[%c0_5, %c0_6] : memref<1x24xf32, #tpu.memory_space<vmem>>, vector<1x24xf32>
    %5 = vector.broadcast %4 : vector<1x24xf32> to vector<256x24xf32>
    %6 = arith.mulf %3, %5 : vector<256x24xf32>
    %c0_7 = arith.constant 0 : index
    %c0_8 = arith.constant 0 : index
    %7 = vector.load %arg4[%c0_7, %c0_8] : memref<1x24xf32, #tpu.memory_space<vmem>>, vector<1x24xf32>
    %8 = vector.broadcast %7 : vector<1x24xf32> to vector<256x24xf32>
    %9 = arith.addf %6, %8 : vector<256x24xf32>
    %c0_9 = arith.constant 0 : index
    %c0_10 = arith.constant 0 : index
    %10 = vector.load %arg16[%c0_9, %c0_10] : memref<256x24xf32, #tpu.memory_space<vmem>>, vector<256x24xf32>
    tpu.vector_store %arg16[%c0_9, %c0_10], %9 {strides = array<i32>} : memref<256x24xf32, #tpu.memory_space<vmem>>, vector<256x24xf32>,
    %c0_11 = arith.constant 0 : index
    %c0_12 = arith.constant 0 : index
    %11 = vector.load %arg16[%c0_11, %c0_12] : memref<256x24xf32, #tpu.memory_space<vmem>>, vector<256x8xf32>
    %cst_13 = arith.constant 0.000000e+00 : f32
    %12 = vector.broadcast %cst_13 : f32 to vector<256x8xf32>
    %13 = arith.maximumf %11, %12 : vector<256x8xf32>
    %cst_14 = arith.constant 0.000000e+00 : f32
    %14 = vector.broadcast %cst_14 : f32 to vector<1x18x8xf32>
    %cst_15 = arith.constant 0.000000e+00 : f32
    %15 = vector.broadcast %cst_15 : f32 to vector<16x1x8xf32>
    %c0_16 = arith.constant 0 : index
    %c0_17 = arith.constant 0 : index
    %c0_18 = arith.constant 0 : index
    %16 = vector.load %arg17[%c0_16, %c0_17, %c0_18] : memref<18x18x8xf32, #tpu.memory_space<vmem>>, vector<1x18x8xf32>
    tpu.vector_store %arg17[%c0_16, %c0_17, %c0_18], %14 {strides = array<i32>} : memref<18x18x8xf32, #tpu.memory_space<vmem>>, vector<1x18x8xf32>,
    %c17 = arith.constant 17 : index
    %c0_19 = arith.constant 0 : index
    %c0_20 = arith.constant 0 : index
    %17 = vector.load %arg17[%c17, %c0_19, %c0_20] : memref<18x18x8xf32, #tpu.memory_space<vmem>>, vector<1x18x8xf32>
    tpu.vector_store %arg17[%c17, %c0_19, %c0_20], %14 {strides = array<i32>} : memref<18x18x8xf32, #tpu.memory_space<vmem>>, vector<1x18x8xf32>,
    %c1 = arith.constant 1 : index
    %c0_21 = arith.constant 0 : index
    %c0_22 = arith.constant 0 : index
    %18 = vector.load %arg17[%c1, %c0_21, %c0_22] : memref<18x18x8xf32, #tpu.memory_space<vmem>>, vector<16x1x8xf32>
    tpu.vector_store %arg17[%c1, %c0_21, %c0_22], %15 {strides = array<i32>} : memref<18x18x8xf32, #tpu.memory_space<vmem>>, vector<16x1x8xf32>,
    %c1_23 = arith.constant 1 : index
    %c17_24 = arith.constant 17 : index
    %c0_25 = arith.constant 0 : index
    %19 = vector.load %arg17[%c1_23, %c17_24, %c0_25] : memref<18x18x8xf32, #tpu.memory_space<vmem>>, vector<16x1x8xf32>
    tpu.vector_store %arg17[%c1_23, %c17_24, %c0_25], %15 {strides = array<i32>} : memref<18x18x8xf32, #tpu.memory_space<vmem>>, vector<16x1x8xf32>,
    %20 = vector.shape_cast %13 : vector<256x8xf32> to vector<16x16x8xf32>
    %c1_26 = arith.constant 1 : index
    %c1_27 = arith.constant 1 : index
    %c0_28 = arith.constant 0 : index
    %21 = vector.load %arg17[%c1_26, %c1_27, %c0_28] : memref<18x18x8xf32, #tpu.memory_space<vmem>>, vector<16x16x8xf32>
    tpu.vector_store %arg17[%c1_26, %c1_27, %c0_28], %20 {strides = array<i32>} : memref<18x18x8xf32, #tpu.memory_space<vmem>>, vector<16x16x8xf32>,
    %c0_29 = arith.constant 0 : index
    %c0_30 = arith.constant 0 : index
    %c0_31 = arith.constant 0 : index
    %22 = vector.load %arg17[%c0_29, %c0_30, %c0_31] : memref<18x18x8xf32, #tpu.memory_space<vmem>>, vector<16x16x8xf32>
    %23 = vector.shape_cast %22 : vector<16x16x8xf32> to vector<256x8xf32>
    %c0_32 = arith.constant 0 : index
    %c0_33 = arith.constant 0 : index
    %24 = vector.load %arg18[%c0_32, %c0_33] : memref<256x72xf32, #tpu.memory_space<vmem>>, vector<256x8xf32>
    tpu.vector_store %arg18[%c0_32, %c0_33], %23 {strides = array<i32>} : memref<256x72xf32, #tpu.memory_space<vmem>>, vector<256x8xf32>,
    %c0_34 = arith.constant 0 : index
    %c1_35 = arith.constant 1 : index
    %c0_36 = arith.constant 0 : index
    %25 = vector.load %arg17[%c0_34, %c1_35, %c0_36] : memref<18x18x8xf32, #tpu.memory_space<vmem>>, vector<16x16x8xf32>
    %26 = vector.shape_cast %25 : vector<16x16x8xf32> to vector<256x8xf32>
    %c0_37 = arith.constant 0 : index
    %c8 = arith.constant 8 : index
    %27 = vector.load %arg18[%c0_37, %c8] : memref<256x72xf32, #tpu.memory_space<vmem>>, vector<256x8xf32>
    tpu.vector_store %arg18[%c0_37, %c8], %26 {strides = array<i32>} : memref<256x72xf32, #tpu.memory_space<vmem>>, vector<256x8xf32>,
    %c0_38 = arith.constant 0 : index
    %c2 = arith.constant 2 : index
    %c0_39 = arith.constant 0 : index
    %28 = vector.load %arg17[%c0_38, %c2, %c0_39] : memref<18x18x8xf32, #tpu.memory_space<vmem>>, vector<16x16x8xf32>
    %29 = vector.shape_cast %28 : vector<16x16x8xf32> to vector<256x8xf32>
    %c0_40 = arith.constant 0 : index
    %c16 = arith.constant 16 : index
    %30 = vector.load %arg18[%c0_40, %c16] : memref<256x72xf32, #tpu.memory_space<vmem>>, vector<256x8xf32>
    tpu.vector_store %arg18[%c0_40, %c16], %29 {strides = array<i32>} : memref<256x72xf32, #tpu.memory_space<vmem>>, vector<256x8xf32>,
    %c1_41 = arith.constant 1 : index
    %c0_42 = arith.constant 0 : index
    %c0_43 = arith.constant 0 : index
    %31 = vector.load %arg17[%c1_41, %c0_42, %c0_43] : memref<18x18x8xf32, #tpu.memory_space<vmem>>, vector<16x16x8xf32>
    %32 = vector.shape_cast %31 : vector<16x16x8xf32> to vector<256x8xf32>
    %c0_44 = arith.constant 0 : index
    %c24 = arith.constant 24 : index
    %33 = vector.load %arg18[%c0_44, %c24] : memref<256x72xf32, #tpu.memory_space<vmem>>, vector<256x8xf32>
    tpu.vector_store %arg18[%c0_44, %c24], %32 {strides = array<i32>} : memref<256x72xf32, #tpu.memory_space<vmem>>, vector<256x8xf32>,
    %c1_45 = arith.constant 1 : index
    %c1_46 = arith.constant 1 : index
    %c0_47 = arith.constant 0 : index
    %34 = vector.load %arg17[%c1_45, %c1_46, %c0_47] : memref<18x18x8xf32, #tpu.memory_space<vmem>>, vector<16x16x8xf32>
    %35 = vector.shape_cast %34 : vector<16x16x8xf32> to vector<256x8xf32>
    %c0_48 = arith.constant 0 : index
    %c32 = arith.constant 32 : index
    %36 = vector.load %arg18[%c0_48, %c32] : memref<256x72xf32, #tpu.memory_space<vmem>>, vector<256x8xf32>
    tpu.vector_store %arg18[%c0_48, %c32], %35 {strides = array<i32>} : memref<256x72xf32, #tpu.memory_space<vmem>>, vector<256x8xf32>,
    %c1_49 = arith.constant 1 : index
    %c2_50 = arith.constant 2 : index
    %c0_51 = arith.constant 0 : index
    %37 = vector.load %arg17[%c1_49, %c2_50, %c0_51] : memref<18x18x8xf32, #tpu.memory_space<vmem>>, vector<16x16x8xf32>
    %38 = vector.shape_cast %37 : vector<16x16x8xf32> to vector<256x8xf32>
    %c0_52 = arith.constant 0 : index
    %c40 = arith.constant 40 : index
    %39 = vector.load %arg18[%c0_52, %c40] : memref<256x72xf32, #tpu.memory_space<vmem>>, vector<256x8xf32>
    tpu.vector_store %arg18[%c0_52, %c40], %38 {strides = array<i32>} : memref<256x72xf32, #tpu.memory_space<vmem>>, vector<256x8xf32>,
    %c2_53 = arith.constant 2 : index
    %c0_54 = arith.constant 0 : index
    %c0_55 = arith.constant 0 : index
    %40 = vector.load %arg17[%c2_53, %c0_54, %c0_55] : memref<18x18x8xf32, #tpu.memory_space<vmem>>, vector<16x16x8xf32>
    %41 = vector.shape_cast %40 : vector<16x16x8xf32> to vector<256x8xf32>
    %c0_56 = arith.constant 0 : index
    %c48 = arith.constant 48 : index
    %42 = vector.load %arg18[%c0_56, %c48] : memref<256x72xf32, #tpu.memory_space<vmem>>, vector<256x8xf32>
    tpu.vector_store %arg18[%c0_56, %c48], %41 {strides = array<i32>} : memref<256x72xf32, #tpu.memory_space<vmem>>, vector<256x8xf32>,
    %c2_57 = arith.constant 2 : index
    %c1_58 = arith.constant 1 : index
    %c0_59 = arith.constant 0 : index
    %43 = vector.load %arg17[%c2_57, %c1_58, %c0_59] : memref<18x18x8xf32, #tpu.memory_space<vmem>>, vector<16x16x8xf32>
    %44 = vector.shape_cast %43 : vector<16x16x8xf32> to vector<256x8xf32>
    %c0_60 = arith.constant 0 : index
    %c56 = arith.constant 56 : index
    %45 = vector.load %arg18[%c0_60, %c56] : memref<256x72xf32, #tpu.memory_space<vmem>>, vector<256x8xf32>
    tpu.vector_store %arg18[%c0_60, %c56], %44 {strides = array<i32>} : memref<256x72xf32, #tpu.memory_space<vmem>>, vector<256x8xf32>,
    %c2_61 = arith.constant 2 : index
    %c2_62 = arith.constant 2 : index
    %c0_63 = arith.constant 0 : index
    %46 = vector.load %arg17[%c2_61, %c2_62, %c0_63] : memref<18x18x8xf32, #tpu.memory_space<vmem>>, vector<16x16x8xf32>
    %47 = vector.shape_cast %46 : vector<16x16x8xf32> to vector<256x8xf32>
    %c0_64 = arith.constant 0 : index
    %c64 = arith.constant 64 : index
    %48 = vector.load %arg18[%c0_64, %c64] : memref<256x72xf32, #tpu.memory_space<vmem>>, vector<256x8xf32>
    tpu.vector_store %arg18[%c0_64, %c64], %47 {strides = array<i32>} : memref<256x72xf32, #tpu.memory_space<vmem>>, vector<256x8xf32>,
    %c0_65 = arith.constant 0 : index
    %c0_66 = arith.constant 0 : index
    %49 = vector.load %arg18[%c0_65, %c0_66] : memref<256x72xf32, #tpu.memory_space<vmem>>, vector<256x72xf32>
    %c0_67 = arith.constant 0 : index
    %c0_68 = arith.constant 0 : index
    %50 = vector.load %arg5[%c0_67, %c0_68] : memref<72x8xf32, #tpu.memory_space<vmem>>, vector<72x8xf32>
    %cst_69 = arith.constant dense<0.000000e+00> : vector<256x8xf32>
    %51 = tpu.matmul %49, %50, %cst_69 {dimension_numbers = #tpu.dot_dimension_numbers<[1], [0], [0], [1], [0, 0, 1, 1], [], []>} : vector<256x72xf32>, vector<72x8xf32>, vector<256x8xf32> -> vector<256x8xf32>
    %c0_70 = arith.constant 0 : index
    %c0_71 = arith.constant 0 : index
    %52 = vector.load %arg6[%c0_70, %c0_71] : memref<1x8xf32, #tpu.memory_space<vmem>>, vector<1x8xf32>
    %53 = vector.broadcast %52 : vector<1x8xf32> to vector<256x8xf32>
    %54 = arith.mulf %51, %53 : vector<256x8xf32>
    %c0_72 = arith.constant 0 : index
    %c0_73 = arith.constant 0 : index
    %55 = vector.load %arg7[%c0_72, %c0_73] : memref<1x8xf32, #tpu.memory_space<vmem>>, vector<1x8xf32>
    %56 = vector.broadcast %55 : vector<1x8xf32> to vector<256x8xf32>
    %57 = arith.addf %54, %56 : vector<256x8xf32>
    %cst_74 = arith.constant 0.000000e+00 : f32
    %58 = vector.broadcast %cst_74 : f32 to vector<256x8xf32>
    %59 = arith.maximumf %57, %58 : vector<256x8xf32>
    %c0_75 = arith.constant 0 : index
    %c0_76 = arith.constant 0 : index
    %60 = vector.load %arg8[%c0_75, %c0_76] : memref<8x16xf32, #tpu.memory_space<vmem>>, vector<8x16xf32>
    %cst_77 = arith.constant dense<0.000000e+00> : vector<256x16xf32>
    %61 = tpu.matmul %59, %60, %cst_77 {dimension_numbers = #tpu.dot_dimension_numbers<[1], [0], [0], [1], [0, 0, 1, 1], [], []>} : vector<256x8xf32>, vector<8x16xf32>, vector<256x16xf32> -> vector<256x16xf32>
    %c0_78 = arith.constant 0 : index
    %c0_79 = arith.constant 0 : index
    %62 = vector.load %arg9[%c0_78, %c0_79] : memref<1x16xf32, #tpu.memory_space<vmem>>, vector<1x16xf32>
    %63 = vector.broadcast %62 : vector<1x16xf32> to vector<256x16xf32>
    %64 = arith.mulf %61, %63 : vector<256x16xf32>
    %c0_80 = arith.constant 0 : index
    %c0_81 = arith.constant 0 : index
    %65 = vector.load %arg10[%c0_80, %c0_81] : memref<1x16xf32, #tpu.memory_space<vmem>>, vector<1x16xf32>
    %66 = vector.broadcast %65 : vector<1x16xf32> to vector<256x16xf32>
    %67 = arith.addf %64, %66 : vector<256x16xf32>
    %cst_82 = arith.constant 0.000000e+00 : f32
    %68 = vector.broadcast %cst_82 : f32 to vector<256x16xf32>
    %69 = arith.maximumf %67, %68 : vector<256x16xf32>
    %cst_83 = arith.constant dense<0.000000e+00> : vector<16xf32>
    %70 = vector.multi_reduction <add>, %69, %cst_83 [0] : vector<256x16xf32> to vector<16xf32>
    %71 = vector.shape_cast %70 : vector<16xf32> to vector<1x16xf32>
    %cst_84 = arith.constant 2.560000e+02 : f32
    %72 = vector.broadcast %cst_84 : f32 to vector<1x16xf32>
    %73 = arith.divf %71, %72 : vector<1x16xf32>
    %c0_85 = arith.constant 0 : index
    %c0_86 = arith.constant 0 : index
    %74 = vector.load %arg11[%c0_85, %c0_86] : memref<16x4xf32, #tpu.memory_space<vmem>>, vector<16x4xf32>
    %cst_87 = arith.constant dense<0.000000e+00> : vector<1x4xf32>
    %75 = tpu.matmul %73, %74, %cst_87 {dimension_numbers = #tpu.dot_dimension_numbers<[1], [0], [0], [1], [0, 0, 1, 1], [], []>} : vector<1x16xf32>, vector<16x4xf32>, vector<1x4xf32> -> vector<1x4xf32>
    %c0_88 = arith.constant 0 : index
    %c0_89 = arith.constant 0 : index
    %76 = vector.load %arg12[%c0_88, %c0_89] : memref<1x4xf32, #tpu.memory_space<vmem>>, vector<1x4xf32>
    %77 = arith.addf %75, %76 : vector<1x4xf32>
    %cst_90 = arith.constant 0.000000e+00 : f32
    %78 = vector.broadcast %cst_90 : f32 to vector<1x4xf32>
    %79 = arith.maximumf %77, %78 : vector<1x4xf32>
    %c0_91 = arith.constant 0 : index
    %c0_92 = arith.constant 0 : index
    %80 = vector.load %arg13[%c0_91, %c0_92] : memref<4x16xf32, #tpu.memory_space<vmem>>, vector<4x16xf32>
    %cst_93 = arith.constant dense<0.000000e+00> : vector<1x16xf32>
    %81 = tpu.matmul %79, %80, %cst_93 {dimension_numbers = #tpu.dot_dimension_numbers<[1], [0], [0], [1], [0, 0, 1, 1], [], []>} : vector<1x4xf32>, vector<4x16xf32>, vector<1x16xf32> -> vector<1x16xf32>
    %c0_94 = arith.constant 0 : index
    %c0_95 = arith.constant 0 : index
    %82 = vector.load %arg14[%c0_94, %c0_95] : memref<1x16xf32, #tpu.memory_space<vmem>>, vector<1x16xf32>
    %83 = arith.addf %81, %82 : vector<1x16xf32>
    %84 = arith.negf %83 : vector<1x16xf32>
    %85 = math.exp %84 : vector<1x16xf32>
    %cst_96 = arith.constant 1.000000e+00 : f32
    %86 = vector.broadcast %cst_96 : f32 to vector<1x16xf32>
    %87 = arith.addf %86, %85 : vector<1x16xf32>
    %88 = arith.divf %86, %87 : vector<1x16xf32>
    %c0_97 = arith.constant 0 : index
    %c8_98 = arith.constant 8 : index
    %89 = vector.load %arg16[%c0_97, %c8_98] : memref<256x24xf32, #tpu.memory_space<vmem>>, vector<256x16xf32>
    %90 = vector.broadcast %88 : vector<1x16xf32> to vector<256x16xf32>
    %91 = arith.mulf %69, %90 : vector<256x16xf32>
    %92 = arith.addf %91, %89 : vector<256x16xf32>
    %93 = vector.shape_cast %92 : vector<256x16xf32> to vector<1x16x16x16xf32>
    %c0_99 = arith.constant 0 : index
    %c0_100 = arith.constant 0 : index
    %c0_101 = arith.constant 0 : index
    %c0_102 = arith.constant 0 : index
    %94 = vector.load %arg15[%c0_99, %c0_100, %c0_101, %c0_102] : memref<1x16x16x16xf32, #tpu.memory_space<vmem>>, vector<1x16x16x16xf32>
    tpu.vector_store %arg15[%c0_99, %c0_100, %c0_101, %c0_102], %93 {strides = array<i32>} : memref<1x16x16x16xf32, #tpu.memory_space<vmem>>, vector<1x16x16x16xf32>,
    return
  }
  func.func @transform_0(%arg0: i32) -> (i32, i32, i32, i32) {
    %c0_i32 = arith.constant 0 : i32
    %c0_i32_0 = arith.constant 0 : i32
    %c0_i32_1 = arith.constant 0 : i32
    %c0_i32_2 = arith.constant 0 : i32
    return %arg0, %c0_i32, %c0_i32_0, %c0_i32_1 : i32, i32, i32, i32
  }
  func.func @transform_1(%arg0: i32) -> (i32, i32) {
    %c0_i32 = arith.constant 0 : i32
    %c0_i32_0 = arith.constant 0 : i32
    %c0_i32_1 = arith.constant 0 : i32
    return %c0_i32, %c0_i32_0 : i32, i32
  }
  func.func @transform_2(%arg0: i32) -> (i32, i32) {
    %c0_i32 = arith.constant 0 : i32
    %c0_i32_0 = arith.constant 0 : i32
    %c0_i32_1 = arith.constant 0 : i32
    return %c0_i32, %c0_i32_0 : i32, i32
  }
  func.func @transform_3(%arg0: i32) -> (i32, i32) {
    %c0_i32 = arith.constant 0 : i32
    %c0_i32_0 = arith.constant 0 : i32
    %c0_i32_1 = arith.constant 0 : i32
    return %c0_i32, %c0_i32_0 : i32, i32
  }
  func.func @transform_4(%arg0: i32) -> (i32, i32) {
    %c0_i32 = arith.constant 0 : i32
    %c0_i32_0 = arith.constant 0 : i32
    %c0_i32_1 = arith.constant 0 : i32
    return %c0_i32, %c0_i32_0 : i32, i32
  }
  func.func @transform_5(%arg0: i32) -> (i32, i32) {
    %c0_i32 = arith.constant 0 : i32
    %c0_i32_0 = arith.constant 0 : i32
    %c0_i32_1 = arith.constant 0 : i32
    return %c0_i32, %c0_i32_0 : i32, i32
  }
  func.func @transform_6(%arg0: i32) -> (i32, i32) {
    %c0_i32 = arith.constant 0 : i32
    %c0_i32_0 = arith.constant 0 : i32
    %c0_i32_1 = arith.constant 0 : i32
    return %c0_i32, %c0_i32_0 : i32, i32
  }
  func.func @transform_7(%arg0: i32) -> (i32, i32) {
    %c0_i32 = arith.constant 0 : i32
    %c0_i32_0 = arith.constant 0 : i32
    %c0_i32_1 = arith.constant 0 : i32
    return %c0_i32, %c0_i32_0 : i32, i32
  }
  func.func @transform_8(%arg0: i32) -> (i32, i32) {
    %c0_i32 = arith.constant 0 : i32
    %c0_i32_0 = arith.constant 0 : i32
    %c0_i32_1 = arith.constant 0 : i32
    return %c0_i32, %c0_i32_0 : i32, i32
  }
  func.func @transform_9(%arg0: i32) -> (i32, i32) {
    %c0_i32 = arith.constant 0 : i32
    %c0_i32_0 = arith.constant 0 : i32
    %c0_i32_1 = arith.constant 0 : i32
    return %c0_i32, %c0_i32_0 : i32, i32
  }
  func.func @transform_10(%arg0: i32) -> (i32, i32) {
    %c0_i32 = arith.constant 0 : i32
    %c0_i32_0 = arith.constant 0 : i32
    %c0_i32_1 = arith.constant 0 : i32
    return %c0_i32, %c0_i32_0 : i32, i32
  }
  func.func @transform_11(%arg0: i32) -> (i32, i32) {
    %c0_i32 = arith.constant 0 : i32
    %c0_i32_0 = arith.constant 0 : i32
    %c0_i32_1 = arith.constant 0 : i32
    return %c0_i32, %c0_i32_0 : i32, i32
  }
  func.func @transform_12(%arg0: i32) -> (i32, i32) {
    %c0_i32 = arith.constant 0 : i32
    %c0_i32_0 = arith.constant 0 : i32
    %c0_i32_1 = arith.constant 0 : i32
    return %c0_i32, %c0_i32_0 : i32, i32
  }
  func.func @transform_13(%arg0: i32) -> (i32, i32) {
    %c0_i32 = arith.constant 0 : i32
    %c0_i32_0 = arith.constant 0 : i32
    %c0_i32_1 = arith.constant 0 : i32
    return %c0_i32, %c0_i32_0 : i32, i32
  }
  func.func @transform_14(%arg0: i32) -> (i32, i32, i32, i32) {
    %c0_i32 = arith.constant 0 : i32
    %c0_i32_0 = arith.constant 0 : i32
    %c0_i32_1 = arith.constant 0 : i32
    %c0_i32_2 = arith.constant 0 : i32
    return %arg0, %c0_i32, %c0_i32_0, %c0_i32_1 : i32, i32, i32, i32
  }
}

</mosaic_0001>

<bundles_post_ra>
// kernel: bottleneck_block.1
= control target key start
LH: loop header
LB: loop body
LE: loop exit
PB: predicated region body
PF: predicated region fallthrough
CT: control target
= control target key end

     0   :  { %s4696_s29 = smov 0   ;;  %s6518_s0 = inlined_call_operand.vmem [shape: f32[2,16,16,4], index: 0, kind: input, shape index: {}]   ;;  %s6519_s1 = inlined_call_operand.vmem [shape: f32[4,24], index: 1, kind: input, shape index: {}]   ;;  %s6520_s2 = inlined_call_operand.vmem [shape: f32[1,24], index: 2, kind: input, shape index: {}]   ;;  %s6521_s3 = inlined_call_operand.vmem [shape: f32[1,24], index: 3, kind: input, shape index: {}]   ;;  %s6522_s4 = inlined_call_operand.vmem [shape: f32[72,8], index: 4, kind: input, shape index: {}]   ;;  %s6523_s5 = inlined_call_operand.vmem [shape: f32[1,8], index: 5, kind: input, shape index: {}]   ;;  %s6524_s6 = inlined_call_operand.vmem [shape: f32[1,8], index: 6, kind: input, shape index: {}]   ;;  %s6525_s7 = inlined_call_operand.vmem [shape: f32[8,16], index: 7, kind: input, shape index: {}]   ;;  %s6526_s8 = inlined_call_operand.vmem [shape: f32[1,16], index: 8, kind: input, shape index: {}]   ;;  %s6527_s9 = inlined_call_operand.vmem [shape: f32[1,16], index: 9, kind: input, shape index: {}]   ;;  %s6528_s10 = inlined_call_operand.vmem [shape: f32[16,4], index: 10, kind: input, shape index: {}]   ;;  %s6529_s11 = inlined_call_operand.vmem [shape: f32[1,4], index: 11, kind: input, shape index: {}]   ;;  %s6530_s12 = inlined_call_operand.vmem [shape: f32[4,16], index: 12, kind: input, shape index: {}]   ;;  %s6531_s13 = inlined_call_operand.vmem [shape: f32[1,16], index: 13, kind: input, shape index: {}]   ;;  %s6532_s14 = inlined_call_operand.vmem [shape: f32[2,16,16,16], index: 14, kind: output, shape index: {}]  }
   0x1 LB: > { %s4139_s30 = sadd.s32 4294967295, %s4607_s29   ;;  %p4143_p0 = scmp.ge.s32.totalorder %s4607_s29, 1  ;;  %s4607_s29 = sphi %s4696_s29, %s24_s29  }
   0x2   : > { %p412_p1 = scmp.lt.s32.totalorder %s4607_s29, 3 }
   0x4   : > { %p413_p2 = pnand %p4143_p0, %p412_p1 }
   0x6   : > { %416 = sbr.rel (%p413_p2) target bundleno = 1826 (0x722), region = 76 }
   0xd   : > { %v500_v0 = vld [vmem:[%s6519_s1] sm:$0xf]  ;;  %vm598_vm0 = vcmask 1043456   ;;  %p458_p3 = scmp.lt.s32.totalorder %s4139_s30, 1  ;;  %vm501_vm1 = vcmask 31744   ;;  %vm1002_vm2 = vcmask 64512  }
   0xe   : > { %4371 = vmatprep.subr.msk.mxu0 %vm598_vm0, %v500_v0  ;;  %4568 = vmatprep.subr.msk.mxu1 %vm598_vm0, %v500_v0  ;;  %v4609_v17 = vmov 0.0   ;;  %vm1005_vm3 = vcmask 58368   ;;  %vm1012_vm4 = vcmask 57344   ;;  %s4610_s21 = smov 8   ;;  %s4611_s22 = smov 16   ;;  %vm1301_vm5 = vcmask 130112  }
   0xf   : > { %4372 = vmatpush3.msk.msra.mxu0 %vm598_vm0, %v500_v0  ;;  %s6620_s30 = smov (!%p458_p3, %s4139_s30), 1  ;;  %4569 = vmatpush3.msk.msra.mxu1 %vm598_vm0, %v500_v0  ;;  %1003 = vst.msk [vmem:[#allocation3] sm:$0xff] %vm1002_vm2, %v4609_v17  ;;  %1004 = vst.msk [vmem:[#allocation3 + $0x8] sm:$0xff] %vm1002_vm2, %v4609_v17  ;;  %v4850_v30 = vld [vmem:[%s6520_s2] ss:$0 sm:$0xff]  ;;  %vm1494_vm6 = vcmask 195712  }
  0x10   : > { %s4257_s17 = sshll.u32 %s6620_s30, 8  ;;  %1008 = vst.msk [vmem:[#allocation3 + $0x198] sm:$0xff] %vm1002_vm2, %v4609_v17  ;;  %1009 = vst.msk [vmem:[#allocation3 + $0x1a0] sm:$0xff] %vm1002_vm2, %v4609_v17  ;;  %v4855_v32 = vld [vmem:[%s6521_s3] ss:$0 sm:$0xff]  ;;  %vm905_vm7 = vcmask 195584  }
  0x11   : > { %s4719_s20 = scalar_lea.vmem %s6518_s0, %s4257_s17  ;;  %1006 = vst.msk [vmem:[#allocation3 + $0x10] sm:$0x3] %vm1005_vm3, %v4609_v17  ;;  %1010 = vst.msk [vmem:[#allocation3 + $0x1a8] sm:$0x3] %vm1005_vm3, %v4609_v17  ;;  %s4612_s27 = smov 32   ;;  %vm1687_vm8 = vcmask 261312  }
  0x12   : > { %v468_v1 = vld [vmem:[%s4719_s20] sm:$0xff]  ;;  %v469_v2 = vld [vmem:[%s4719_s20 + $0x8] sm:$0xff]  ;;  %v470_v3 = vld [vmem:[%s4719_s20 + $0x10] sm:$0xff]  ;;  %1029 = vst.msk [vmem:[#allocation3 + $0x29] sm:$0x1] %vm1012_vm4, %v4609_v17  ;;  %s4613_s28 = smov 24  }
  0x13   : > { %4373 = vmatprep.mubr.msk.f32.mxu0 %vm501_vm1, %v468_v1  ;;  %v471_v4 = vld [vmem:[%s4719_s20 + $0x18] sm:$0xff]  ;;  %v472_v5 = vld [vmem:[%s4719_s20 + $0x20] sm:$0xff]  ;;  %v473_v6 = vld [vmem:[%s4719_s20 + $0x28] sm:$0xff]  ;;  %1013 = vst.msk [vmem:[#allocation3 + $0x18] sm:$0x1] %vm1012_vm4, %v4609_v17  ;;  %s4614_s15 = smov 40  }
  0x14   : > { %4374 = vmatmul.mubr.msk.f32.vlgmr.msra.gmra.mrb[0].mxu0 %vm501_vm1, %v469_v2  ;;  %v474_v7 = vld [vmem:[%s4719_s20 + $0x30] sm:$0xff]  ;;  %v475_v8 = vld [vmem:[%s4719_s20 + $0x38] sm:$0xff]  ;;  %v476_v9 = vld [vmem:[%s4719_s20 + $0x40] sm:$0xff]  ;;  %1014 = vst.msk [vmem:[#allocation3 + $0x30] sm:$0x1] %vm1012_vm4, %v4609_v17  ;;  %s4615_s24 = smov 64  }
  0x15   : > { %4376 = vmatprep.mubr.msk.f32.mxu0 %vm501_vm1, %v470_v3  ;;  %v477_v10 = vld [vmem:[%s4719_s20 + $0x48] sm:$0xff]  ;;  %v478_v11 = vld [vmem:[%s4719_s20 + $0x50] sm:$0xff]  ;;  %v479_v12 = vld [vmem:[%s4719_s20 + $0x58] sm:$0xff]  ;;  %1015 = vst.msk [vmem:[#allocation3 + $0x48] sm:$0x1] %vm1012_vm4, %v4609_v17  ;;  %s4616_s19 = smov 56  }
  0x16   : > { %v480_v13 = vld [vmem:[%s4719_s20 + $0x60] sm:$0xff]  ;;  %v481_v14 = vld [vmem:[%s4719_s20 + $0x68] sm:$0xff]  ;;  %v482_v15 = vld [vmem:[%s4719_s20 + $0x70] sm:$0xff]  ;;  %1016 = vst.msk [vmem:[#allocation3 + $0x60] sm:$0x1] %vm1012_vm4, %v4609_v17  ;;  %s4617_s23 = smov 48  }
  0x17   : > { %v483_v16 = vld [vmem:[%s4719_s20 + $0x78] sm:$0xff]  ;;  %v1141_v18 = vld [vmem:[#allocation3 + $0x1] sm:$0xff]  ;;  %1017 = vst.msk [vmem:[#allocation3 + $0x78] sm:$0x1] %vm1012_vm4, %v4609_v17  ;;  %1018 = vst.msk [vmem:[#allocation3 + $0x90] sm:$0x1] %vm1012_vm4, %v4609_v17 }
  0x18   : > { %4377 = vmatmul.mubr.msk.f32.gmra.mrb[2].mxu0 %vm501_vm1, %v471_v4  ;;  %v1334_v19 = vld [vmem:[#allocation3 + $0x2] sm:$0xff]  ;;  %1205 = vrot.lane.b32.xlu0 %v1141_v18, %s4610_s21  ;;  %1019 = vst.msk [vmem:[#allocation3 + $0xa8] sm:$0x1] %vm1012_vm4, %v4609_v17  ;;  %1020 = vst.msk [vmem:[#allocation3 + $0xc0] sm:$0x1] %vm1012_vm4, %v4609_v17  ;;  %v1335_v21 = vld [vmem:[#allocation3 + $0xa] sm:$0xff] }
  0x19   : > { %4379 = vmatprep.mubr.msk.f32.mxu0 %vm501_vm1, %v472_v5  ;;  %1398 = vrot.lane.b32.xlu1 %v1334_v19, %s4611_s22  ;;  %1021 = vst.msk [vmem:[#allocation3 + $0xd8] sm:$0x1] %vm1012_vm4, %v4609_v17  ;;  %1022 = vst.msk [vmem:[#allocation3 + $0xf0] sm:$0x1] %vm1012_vm4, %v4609_v17  ;;  %v1142_v20 = vld [vmem:[#allocation3 + $0x9] sm:$0xff]  ;;  %v484_v22 = vld [vmem:[%s4719_s20 + $0x80] sm:$0xff] }
  0x1a   : > { %1023 = vst.msk [vmem:[#allocation3 + $0x108] sm:$0x1] %vm1012_vm4, %v4609_v17  ;;  %1024 = vst.msk [vmem:[#allocation3 + $0x120] sm:$0x1] %vm1012_vm4, %v4609_v17  ;;  %v485_v23 = vld [vmem:[%s4719_s20 + $0x88] sm:$0xff]  ;;  %v486_v24 = vld [vmem:[%s4719_s20 + $0x90] sm:$0xff] }
  0x1b   : > { %1025 = vst.msk [vmem:[#allocation3 + $0x138] sm:$0x1] %vm1012_vm4, %v4609_v17  ;;  %1026 = vst.msk [vmem:[#allocation3 + $0x150] sm:$0x1] %vm1012_vm4, %v4609_v17  ;;  %4400 = vmatprep.mubr.msk.f32.mxu1 %vm501_vm1, %v486_v24  ;;  %v487_v25 = vld [vmem:[%s4719_s20 + $0x98] sm:$0xff]  ;;  %v488_v26 = vld [vmem:[%s4719_s20 + $0xa0] sm:$0xff] }
  0x1c   : > { %4380 = vmatmul.mubr.msk.f32.gmra.mrb[4].mxu0 %vm501_vm1, %v473_v6  ;;  %1027 = vst.msk [vmem:[#allocation3 + $0x168] sm:$0x1] %vm1012_vm4, %v4609_v17  ;;  %1028 = vst.msk [vmem:[#allocation3 + $0x180] sm:$0x1] %vm1012_vm4, %v4609_v17  ;;  %1207 = vrot.lane.b32.xlu0 %v1142_v20, %s4610_s21  ;;  %v489_v27 = vld [vmem:[%s4719_s20 + $0xa8] sm:$0xff]  ;;  %v490_v28 = vld [vmem:[%s4719_s20 + $0xb0] sm:$0xff] }
  0x1d   : > { %4382 = vmatprep.mubr.msk.f32.mxu0 %vm501_vm1, %v474_v7  ;;  %1030 = vst.msk [vmem:[#allocation3 + $0x41] sm:$0x1] %vm1012_vm4, %v4609_v17  ;;  %1031 = vst.msk [vmem:[#allocation3 + $0x59] sm:$0x1] %vm1012_vm4, %v4609_v17  ;;  %1400 = vrot.lane.b32.xlu1 %v1335_v21, %s4611_s22  ;;  %v491_v29 = vld [vmem:[%s4719_s20 + $0xb8] sm:$0xff]  ;;  %v1077_v33 = vld [vmem:[#allocation3] sm:$0xff] }
  0x1e   : > { %1032 = vst.msk [vmem:[#allocation3 + $0x71] sm:$0x1] %vm1012_vm4, %v4609_v17  ;;  %1033 = vst.msk [vmem:[#allocation3 + $0x89] sm:$0x1] %vm1012_vm4, %v4609_v17  ;;  %4401 = vmatmul.mubr.msk.f32.vlgmr.msra.gmra.mrb[0].mxu1 %vm501_vm1, %v487_v25  ;;  %v1078_v42 = vld [vmem:[#allocation3 + $0x8] sm:$0xff]  ;;  %vm1880_vm9 = vcmask 326912  }
  0x1f   : > { %1034 = vst.msk [vmem:[#allocation3 + $0xa1] sm:$0x1] %vm1012_vm4, %v4609_v17  ;;  %1035 = vst.msk [vmem:[#allocation3 + $0xb9] sm:$0x1] %vm1012_vm4, %v4609_v17  ;;  %4403 = vmatprep.mubr.msk.f32.mxu1 %vm501_vm1, %v488_v26  ;;  %vm2073_vm10 = vcmask 392512   ;;  %vm2267_vm11 = vcmask 458112  }
  0x20   : > { %4383 = vmatmul.mubr.msk.f32.gmra.mrb[6].mxu0 %vm501_vm1, %v475_v8  ;;  %1036 = vst.msk [vmem:[#allocation3 + $0xd1] sm:$0x1] %vm1012_vm4, %v4609_v17  ;;  %1037 = vst.msk [vmem:[#allocation3 + $0xe9] sm:$0x1] %vm1012_vm4, %v4609_v17  ;;  %vm2460_vm12 = vcmask 523712   ;;  %vm2653_vm13 = vcmask 589312  }
  0x21   : > { %4385 = vmatprep.mubr.msk.f32.mxu0 %vm501_vm1, %v476_v9  ;;  %1038 = vst.msk [vmem:[#allocation3 + $0x101] sm:$0x1] %vm1012_vm4, %v4609_v17  ;;  %1039 = vst.msk [vmem:[#allocation3 + $0x119] sm:$0x1] %vm1012_vm4, %v4609_v17  ;;  %vm2727_vm14 = vcmask 588800   ;;  %vm4620_vm15 = vmmov 0  }
  0x22   : > { %1040 = vst.msk [vmem:[#allocation3 + $0x131] sm:$0x1] %vm1012_vm4, %v4609_v17  ;;  %1041 = vst.msk [vmem:[#allocation3 + $0x149] sm:$0x1] %vm1012_vm4, %v4609_v17  ;;  %4404 = vmatmul.mubr.msk.f32.gmra.mrb[2].mxu1 %vm501_vm1, %v489_v27 }
  0x23   : > { %1042 = vst.msk [vmem:[#allocation3 + $0x161] sm:$0x1] %vm1012_vm4, %v4609_v17  ;;  %1043 = vst.msk [vmem:[#allocation3 + $0x179] sm:$0x1] %vm1012_vm4, %v4609_v17  ;;  %4406 = vmatprep.mubr.msk.f32.mxu1 %vm501_vm1, %v490_v28 }
  0x24   : > { %4386 = vmatmul.mubr.msk.f32.gmra.mrb[8].mxu0 %vm501_vm1, %v477_v10  ;;  %1044 = vst.msk [vmem:[#allocation3 + $0x191] sm:$0x1] %vm1012_vm4, %v4609_v17 }
  0x25   : > { %4388 = vmatprep.mubr.msk.f32.mxu0 %vm501_vm1, %v478_v11  ;;  %1109 = vst.msk [vmem:[#allocation4] sm:$0xff] %vm1002_vm2, %v1077_v33  ;;  %1110 = vst.msk [vmem:[#allocation4 + $0x8] sm:$0xff] %vm1002_vm2, %v1078_v42 }
  0x26   : > { %4407 = vmatmul.mubr.msk.f32.gmra.mrb[4].mxu1 %vm501_vm1, %v491_v29 }
  0x28   : > { %4389 = vmatmul.mubr.msk.f32.gmra.mrb[10].mxu0 %vm501_vm1, %v479_v12 }
  0x29   : > { %4391 = vmatprep.mubr.msk.f32.mxu0 %vm501_vm1, %v480_v13 }
  0x2c   : > { %4392 = vmatmul.mubr.msk.f32.gmra.mrb[12].mxu0 %vm501_vm1, %v481_v14 }
  0x2d   : > { %4394 = vmatprep.mubr.msk.f32.mxu0 %vm501_vm1, %v482_v15 }
  0x30   : > { %4395 = vmatmul.mubr.msk.f32.gmra.mrb[14].mxu0 %vm501_vm1, %v483_v16 }
  0x31   : > { %4397 = vmatprep.mubr.msk.f32.mxu0 %vm501_vm1, %v484_v22 }
  0x34   : > { %4398 = vmatmul.mubr.msk.f32.gmra.mrb[16].mxu0 %vm501_vm1, %v485_v23 }
  0x8a   : > { %v1206_v36 = vpop.permute.xlu0 %1205 }
  0x8b   : > { %1302 = vst.msk [vmem:[#allocation4] sm:$0xff] %vm1301_vm5, %v1206_v36  ;;  %v1399_v38 = vpop.permute.xlu1 %1398 }
  0x8c   : > { %1495 = vst.msk [vmem:[#allocation4] sm:$0xff] %vm1494_vm6, %v1399_v38 }
  0x8e   : > { %v1208_v45 = vpop.permute.xlu0 %1207 }
  0x8f   : > { %1303 = vst.msk [vmem:[#allocation4 + $0x8] sm:$0xff] %vm1301_vm5, %v1208_v45  ;;  %v1401_v47 = vpop.permute.xlu1 %1400 }
  0x90   : > { %1496 = vst.msk [vmem:[#allocation4 + $0x8] sm:$0xff] %vm1494_vm6, %v1401_v47 }
  0xe7   : > { %v4375_v31 = vpop.f32.mrb[0].mxu0 }
  0xe8   : > { %v835_v34 = vmul.f32 %v4375_v31, %v4850_v30  ;;  %v668_v35 = vpop.f32.mrb[1].mxu0  ;;  %v492_v31 = vld [vmem:[%s4719_s20 + $0xc0] sm:$0xff] }
  0xe9   : > { %v834_v37 = vmul.f32 %v4850_v30, %v668_v35  ;;  %4409 = vmatprep.mubr.msk.f32.mxu1 %vm501_vm1, %v492_v31 }
  0xea   : > { %v874_v39 = vadd.f32 %v4855_v32, %v835_v34 }
  0xeb   : > { %v873_v40 = vadd.f32 %v4855_v32, %v834_v37  ;;  %v4378_v41 = vpop.f32.mrb[2].mxu0  ;;  %v493_v37 = vld [vmem:[%s4719_s20 + $0xc8] sm:$0xff] }
  0xec   : > { %907 = vst.msk [vmem:[#allocation2 + $0x8] sm:$0xff] %vm905_vm7, %v874_v39  ;;  %v837_v43 = vmul.f32 %v4378_v41, %v4850_v30  ;;  %v678_v44 = vpop.f32.mrb[3].mxu0  ;;  %4410 = vmatmul.mubr.msk.f32.gmra.mrb[6].mxu1 %vm501_vm1, %v493_v37 }
  0xed   : > { %906 = vst.msk [vmem:[#allocation2] sm:$0xff] %vm905_vm7, %v873_v40  ;;  %v836_v46 = vmul.f32 %v4850_v30, %v678_v44 }
  0xee   : > { %v876_v48 = vadd.f32 %v4855_v32, %v837_v43 }
  0xef   : > { %v875_v49 = vadd.f32 %v4855_v32, %v836_v46  ;;  %v4381_v50 = vpop.f32.mrb[4].mxu0 }
  0xf0   : > { %909 = vst.msk [vmem:[#allocation2 + $0x18] sm:$0xff] %vm905_vm7, %v876_v48  ;;  %v839_v51 = vmul.f32 %v4381_v50, %v4850_v30  ;;  %v688_v52 = vpop.f32.mrb[5].mxu0 }
  0xf1   : > { %908 = vst.msk [vmem:[#allocation2 + $0x10] sm:$0xff] %vm905_vm7, %v875_v49  ;;  %v838_v53 = vmul.f32 %v4850_v30, %v688_v52 }
  0xf2   : > { %v878_v54 = vadd.f32 %v4855_v32, %v839_v51 }
  0xf3   : > { %v939_v55 = vld [vmem:[#allocation2 + $0x8] sm:$0xff]  ;;  %v877_v56 = vadd.f32 %v4855_v32, %v838_v53  ;;  %v4384_v57 = vpop.f32.mrb[6].mxu0 }
  0xf4   : > { %v971_v58 = vmax.f32 %v939_v55, 0.0  ;;  %v938_v59 = vld [vmem:[#allocation2] sm:$0xff]  ;;  %911 = vst.msk [vmem:[#allocation2 + $0x28] sm:$0xff] %vm905_vm7, %v878_v54  ;;  %v841_v60 = vmul.f32 %v4384_v57, %v4850_v30  ;;  %v698_v61 = vpop.f32.mrb[7].mxu0  ;;  %v2719_v55 = vld [vmem:[%s6522_s4 + $0x8] sm:$0xff] }
  0xf5   : > { %v970_v62 = vmax.f32 %v938_v59, 0.0  ;;  %910 = vst.msk [vmem:[#allocation2 + $0x20] sm:$0xff] %vm905_vm7, %v877_v56  ;;  %v840_v63 = vmul.f32 %v4850_v30, %v698_v61  ;;  %v2718_v54 = vld [vmem:[%s6522_s4] sm:$0xff]  ;;  %v2721_v61 = vld [vmem:[%s6522_s4 + $0x18] sm:$0xff] }
  0xf6   : > { %1046 = vst.msk [vmem:[#allocation3 + $0x21] sm:$0xff] %vm1002_vm2, %v971_v58  ;;  %v880_v0 = vadd.f32 %v4855_v32, %v841_v60  ;;  %v4549_v56 = vpack.c.bf16 %v2719_v55, %v2718_v54  ;;  %v2720_v60 = vld [vmem:[%s6522_s4 + $0x10] sm:$0xff] }
  0xf7   : > { %1045 = vst.msk [vmem:[#allocation3 + $0x19] sm:$0xff] %vm1002_vm2, %v970_v62  ;;  %v941_v1 = vld [vmem:[#allocation2 + $0x18] sm:$0xff]  ;;  %v879_v2 = vadd.f32 %v4855_v32, %v840_v63  ;;  %v4387_v3 = vpop.f32.mrb[8].mxu0  ;;  %v4553_v62 = vpack.c.bf16 %v2721_v61, %v2720_v60  ;;  %v494_v63 = vld [vmem:[%s4719_s20 + $0xd0] sm:$0xff] }
  0xf8   : > { %v973_v4 = vmax.f32 %v941_v1, 0.0  ;;  %v940_v5 = vld [vmem:[#allocation2 + $0x10] sm:$0xff]  ;;  %913 = vst.msk [vmem:[#allocation2 + $0x38] sm:$0xff] %vm905_vm7, %v880_v0  ;;  %v843_v6 = vmul.f32 %v4387_v3, %v4850_v30  ;;  %v708_v7 = vpop.f32.mrb[9].mxu0  ;;  %4550 = vmatprep.subr.bf16.mxu1 %v4549_v56  ;;  %v495_v0 = vld [vmem:[%s4719_s20 + $0xd8] sm:$0xff]  ;;  %4412 = vmatprep.mubr.msk.f32.mxu1 %vm501_vm1, %v494_v63  ;;  %v2723_v3 = vld [vmem:[%s6522_s4 + $0x28] sm:$0xff] }
  0xf9   : > { %v972_v8 = vmax.f32 %v940_v5, 0.0  ;;  %912 = vst.msk [vmem:[#allocation2 + $0x30] sm:$0xff] %vm905_vm7, %v879_v2  ;;  %v842_v9 = vmul.f32 %v4850_v30, %v708_v7  ;;  %4552 = vmatpush3.bf16.msra.mxu1 %v4549_v56  ;;  %v2722_v2 = vld [vmem:[%s6522_s4 + $0x20] sm:$0xff] }
  0xfa   : > { %1048 = vst.msk [vmem:[#allocation3 + $0x39] sm:$0xff] %vm1002_vm2, %v973_v4  ;;  %v882_v10 = vadd.f32 %v4855_v32, %v843_v6  ;;  %4554 = vmatprep.subr.bf16.mxu1 %v4553_v62  ;;  %v4557_v5 = vpack.c.bf16 %v2723_v3, %v2722_v2  ;;  %4413 = vmatmul.mubr.msk.f32.gmra.mrb[8].mxu1 %vm501_vm1, %v495_v0 }
  0xfb   : > { %1047 = vst.msk [vmem:[#allocation3 + $0x31] sm:$0xff] %vm1002_vm2, %v972_v8  ;;  %v943_v11 = vld [vmem:[#allocation2 + $0x28] sm:$0xff]  ;;  %v881_v12 = vadd.f32 %v4855_v32, %v842_v9  ;;  %v4390_v13 = vpop.f32.mrb[10].mxu0  ;;  %v496_v9 = vld [vmem:[%s4719_s20 + $0xe0] sm:$0xff] }
  0xfc   : > { %v975_v14 = vmax.f32 %v943_v11, 0.0  ;;  %v942_v15 = vld [vmem:[#allocation2 + $0x20] sm:$0xff]  ;;  %915 = vst.msk [vmem:[#allocation2 + $0x48] sm:$0xff] %vm905_vm7, %v882_v10  ;;  %v845_v16 = vmul.f32 %v4390_v13, %v4850_v30  ;;  %v718_v18 = vpop.f32.mrb[11].mxu0  ;;  %4415 = vmatprep.mubr.msk.f32.mxu1 %vm501_vm1, %v496_v9  ;;  %v497_v10 = vld [vmem:[%s4719_s20 + $0xe8] sm:$0xff]  ;;  %v2724_v11 = vld [vmem:[%s6522_s4 + $0x30] sm:$0xff] }
  0xfd   : > { %v1721_v19 = vld [vmem:[#allocation3 + $0x21] sm:$0xff]  ;;  %v974_v20 = vmax.f32 %v942_v15, 0.0  ;;  %914 = vst.msk [vmem:[#allocation2 + $0x40] sm:$0xff] %vm905_vm7, %v881_v12  ;;  %v844_v21 = vmul.f32 %v4850_v30, %v718_v18  ;;  %4556 = vmatpush3.bf16.msra.mxu1 %v4553_v62  ;;  %v2725_v12 = vld [vmem:[%s6522_s4 + $0x38] sm:$0xff] }
  0xfe   : > { %1786 = vrot.lane.b32.xlu0 %v1721_v19, %s4612_s27  ;;  %v1528_v22 = vld [vmem:[#allocation3 + $0x20] sm:$0xff]  ;;  %1050 = vst.msk [vmem:[#allocation3 + $0x51] sm:$0xff] %vm1002_vm2, %v975_v14  ;;  %v884_v23 = vadd.f32 %v4855_v32, %v845_v16  ;;  %v1527_v24 = vld [vmem:[#allocation3 + $0x18] sm:$0xff]  ;;  %4558 = vmatprep.subr.bf16.mxu1 %v4557_v5  ;;  %v4561_v14 = vpack.c.bf16 %v2725_v12, %v2724_v11  ;;  %v498_v16 = vld [vmem:[%s4719_s20 + $0xf0] sm:$0xff] }
  0xff   : > { %1593 = vrot.lane.b32.xlu1 %v1528_v22, %s4613_s28  ;;  %1049 = vst.msk [vmem:[#allocation3 + $0x49] sm:$0xff] %vm1002_vm2, %v974_v20  ;;  %v945_v25 = vld [vmem:[#allocation2 + $0x38] sm:$0xff]  ;;  %1112 = vst.msk [vmem:[#allocation4 + $0x18] sm:$0xff] %vm1002_vm2, %v1528_v22  ;;  %v883_v26 = vadd.f32 %v4855_v32, %v844_v21  ;;  %v1914_v40 = vld [vmem:[#allocation3 + $0x22] sm:$0xff]  ;;  %v4393_v1 = vpop.f32.mrb[12].mxu0  ;;  %4416 = vmatmul.mubr.msk.f32.gmra.mrb[10].mxu1 %vm501_vm1, %v497_v10 }
 0x100   : > { %v977_v27 = vmax.f32 %v945_v25, 0.0  ;;  %v944_v28 = vld [vmem:[#allocation2 + $0x30] sm:$0xff]  ;;  %1111 = vst.msk [vmem:[#allocation4 + $0x10] sm:$0xff] %vm1002_vm2, %v1527_v24  ;;  %v1143_v33 = vld [vmem:[#allocation3 + $0x19] sm:$0xff]  ;;  %v847_v4 = vmul.f32 %v4393_v1, %v4850_v30  ;;  %v728_v6 = vpop.f32.mrb[13].mxu0  ;;  %4418 = vmatprep.mubr.msk.f32.mxu1 %vm501_vm1, %v498_v16 }
 0x101   : > { %917 = vst.msk [vmem:[#allocation2 + $0x58] sm:$0xff] %vm905_vm7, %v884_v23  ;;  %v976_v29 = vmax.f32 %v944_v28, 0.0  ;;  %916 = vst.msk [vmem:[#allocation2 + $0x50] sm:$0xff] %vm905_vm7, %v883_v26  ;;  %v1913_v42 = vld [vmem:[#allocation3 + $0x1a] sm:$0xff]  ;;  %v846_v8 = vmul.f32 %v4850_v30, %v728_v6  ;;  %4560 = vmatpush3.bf16.msra.mxu1 %v4557_v5 }
 0x102   : > { %1211 = vrot.lane.b32.xlu0 %v1721_v19, %s4610_s21  ;;  %v4911_v34 = vld [vmem:[#allocation3 + $0x30] sm:$0xff]  ;;  %v4913_v35 = vld [vmem:[#allocation3 + $0x38] sm:$0xff]  ;;  %1052 = vst.msk [vmem:[#allocation3 + $0x69] sm:$0xff] %vm1002_vm2, %v977_v27  ;;  %v886_v7 = vadd.f32 %v4855_v32, %v847_v4  ;;  %4562 = vmatprep.subr.bf16.mxu1 %v4561_v14  ;;  %v2726_v19 = vld [vmem:[%s6522_s4 + $0x40] sm:$0xff] }
 0x103   : > { %1209 = vrot.lane.b32.xlu1 %v1143_v33, %s4610_s21  ;;  %1051 = vst.msk [vmem:[#allocation3 + $0x61] sm:$0xff] %vm1002_vm2, %v976_v29  ;;  %v947_v36 = vld [vmem:[#allocation2 + $0x48] sm:$0xff]  ;;  %1114 = vst.msk [vmem:[#allocation4 + $0x28] sm:$0xff] %vm1002_vm2, %v4913_v35  ;;  %v1723_v51 = vld [vmem:[#allocation3 + $0x39] sm:$0xff]  ;;  %v885_v13 = vadd.f32 %v4855_v32, %v846_v8  ;;  %v4396_v29 = vpop.f32.mrb[14].mxu0 }
 0x104   : > { %1113 = vst.msk [vmem:[#allocation4 + $0x20] sm:$0xff] %vm1002_vm2, %v4911_v34  ;;  %v979_v38 = vmax.f32 %v947_v36, 0.0  ;;  %v946_v39 = vld [vmem:[#allocation2 + $0x40] sm:$0xff]  ;;  %v2300_v15 = vld [vmem:[#allocation3 + $0x31] sm:$0xff]  ;;  %v849_v31 = vmul.f32 %v4396_v29, %v4850_v30 }
 0x105   : > { %v978_v41 = vmax.f32 %v946_v39, 0.0  ;;  %v2494_v57 = vld [vmem:[#allocation3 + $0x3a] sm:$0xff]  ;;  %919 = vst.msk [vmem:[#allocation2 + $0x68] sm:$0xff] %vm905_vm7, %v886_v7  ;;  %918 = vst.msk [vmem:[#allocation2 + $0x60] sm:$0xff] %vm905_vm7, %v885_v13  ;;  %4564 = vmatpush3.bf16.msra.mxu1 %v4561_v14  ;;  %v2493_v22 = vld [vmem:[#allocation3 + $0x32] sm:$0xff]  ;;  %v4402_v7 = vpop.f32.mrb[0].mxu1 }
 0x106   : > { %1979 = vrot.lane.b32.xlu0 %v1914_v40, %s4614_s15  ;;  %v4926_v43 = vld [vmem:[#allocation3 + $0x48] sm:$0xff]  ;;  %v4928_v44 = vld [vmem:[#allocation3 + $0x50] sm:$0xff]  ;;  %1054 = vst.msk [vmem:[#allocation3 + $0x81] sm:$0xff] %vm1002_vm2, %v979_v38  ;;  %v499_v18 = vld [vmem:[%s4719_s20 + $0xf8] sm:$0xff]  ;;  %4437 = vmatprep.subr.mxu1 %v2726_v19  ;;  %v853_v8 = vmul.f32 %v4402_v7, %v4850_v30  ;;  %v758_v9 = vpop.f32.mrb[1].mxu1  ;;  %s6413_s20 = scalar_lea.vmem %s6532_s14, %s4257_s17 }
 0x107   : > { %1977 = vrot.lane.b32.xlu1 %v1913_v42, %s4614_s15  ;;  %1053 = vst.msk [vmem:[#allocation3 + $0x79] sm:$0xff] %vm1002_vm2, %v978_v41  ;;  %1116 = vst.msk [vmem:[#allocation4 + $0x38] sm:$0xff] %vm1002_vm2, %v4928_v44  ;;  %4419 = vmatmul.mubr.msk.f32.gmra.mrb[12].mxu1 %vm501_vm1, %v499_v18  ;;  %v1725_v25 = vld [vmem:[#allocation3 + $0x51] sm:$0xff]  ;;  %v2302_v37 = vld [vmem:[#allocation3 + $0x49] sm:$0xff]  ;;  %v852_v11 = vmul.f32 %v4850_v30, %v758_v9 }
 0x108   : > { %v949_v45 = vld [vmem:[#allocation2 + $0x58] sm:$0xff]  ;;  %1115 = vst.msk [vmem:[#allocation4 + $0x30] sm:$0xff] %vm1002_vm2, %v4926_v43  ;;  %v948_v47 = vld [vmem:[#allocation2 + $0x50] sm:$0xff]  ;;  %v892_v13 = vadd.f32 %v4855_v32, %v853_v8 }
 0x109   : > { %v981_v46 = vmax.f32 %v949_v45, 0.0  ;;  %v980_v48 = vmax.f32 %v948_v47, 0.0  ;;  %4438 = vmatpush3.msra.mxu1 %v2726_v19  ;;  %v2496_v28 = vld [vmem:[#allocation3 + $0x52] sm:$0xff]  ;;  %v2495_v41 = vld [vmem:[#allocation3 + $0x4a] sm:$0xff]  ;;  %v891_v14 = vadd.f32 %v4855_v32, %v852_v11 }
 0x10a   : > { %1404 = vrot.lane.b32.xlu0 %v1914_v40, %s4611_s22  ;;  %v4938_v49 = vld [vmem:[#allocation3 + $0x60] sm:$0xff]  ;;  %v4940_v50 = vld [vmem:[#allocation3 + $0x68] sm:$0xff]  ;;  %925 = vst.msk [vmem:[#allocation2 + $0x98] sm:$0xff] %vm905_vm7, %v892_v13 }
 0x10b   : > { %1056 = vst.msk [vmem:[#allocation3 + $0x99] sm:$0xff] %vm1002_vm2, %v981_v46  ;;  %1402 = vrot.lane.b32.xlu1 %v1913_v42, %s4611_s22  ;;  %1055 = vst.msk [vmem:[#allocation3 + $0x91] sm:$0xff] %vm1002_vm2, %v980_v48 }
 0x10c   : > { %1118 = vst.msk [vmem:[#allocation4 + $0x48] sm:$0xff] %vm1002_vm2, %v4940_v50  ;;  %1117 = vst.msk [vmem:[#allocation4 + $0x40] sm:$0xff] %vm1002_vm2, %v4938_v49  ;;  %v951_v20 = vld [vmem:[#allocation2 + $0x68] sm:$0xff]  ;;  %v950_v21 = vld [vmem:[#allocation2 + $0x60] sm:$0xff] }
 0x10d   : > { %v983_v23 = vmax.f32 %v951_v20, 0.0  ;;  %v1729_v0 = vld [vmem:[#allocation3 + $0x81] sm:$0xff]  ;;  %924 = vst.msk [vmem:[#allocation2 + $0x90] sm:$0xff] %vm905_vm7, %v891_v14 }
 0x10e   : > { %1591 = vrot.lane.b32.xlu0 %v1527_v24, %s4613_s28  ;;  %v4950_v52 = vld [vmem:[#allocation3 + $0x78] sm:$0xff]  ;;  %v4952_v53 = vld [vmem:[#allocation3 + $0x80] sm:$0xff]  ;;  %v982_v24 = vmax.f32 %v950_v21, 0.0 }
 0x10f   : > { %1790 = vrot.lane.b32.xlu1 %v1723_v51, %s4612_s27  ;;  %1120 = vst.msk [vmem:[#allocation4 + $0x58] sm:$0xff] %vm1002_vm2, %v4952_v53  ;;  %1119 = vst.msk [vmem:[#allocation4 + $0x50] sm:$0xff] %vm1002_vm2, %v4950_v52  ;;  %v2500_v4 = vld [vmem:[#allocation3 + $0x82] sm:$0xff]  ;;  %v2306_v18 = vld [vmem:[#allocation3 + $0x79] sm:$0xff] }
 0x110   : > { %1058 = vst.msk [vmem:[#allocation3 + $0xb1] sm:$0xff] %vm1002_vm2, %v983_v23  ;;  %1057 = vst.msk [vmem:[#allocation3 + $0xa9] sm:$0xff] %vm1002_vm2, %v982_v24 }
 0x112   : > { %1784 = vrot.lane.b32.xlu0 %v1143_v33, %s4612_s27  ;;  %v4966_v58 = vld [vmem:[#allocation3 + $0x90] sm:$0xff]  ;;  %v4968_v59 = vld [vmem:[#allocation3 + $0x98] sm:$0xff]  ;;  %v738_v33 = vpop.f32.mrb[15].mxu0 }
 0x113   : > { %2559 = vrot.lane.b32.xlu1 %v2494_v57, %s4615_s24  ;;  %1122 = vst.msk [vmem:[#allocation4 + $0x68] sm:$0xff] %vm1002_vm2, %v4968_v59  ;;  %1121 = vst.msk [vmem:[#allocation4 + $0x60] sm:$0xff] %vm1002_vm2, %v4966_v58  ;;  %v4399_v47 = vpop.f32.mrb[16].mxu0 }
 0x114   : > { %v851_v48 = vmul.f32 %v4399_v47, %v4850_v30 }
 0x116   : > { %2366 = vrot.lane.b32.xlu0 %v1723_v51, %s4616_s19  ;;  %v890_v54 = vadd.f32 %v4855_v32, %v851_v48 }
 0x117   : > { %2171 = vrot.lane.b32.xlu1 %v4911_v34, %s4617_s23  ;;  %v5034_v26 = vld [vmem:[#allocation3 + $0xa8] sm:$0xff]  ;;  %v5036_v27 = vld [vmem:[#allocation3 + $0xb0] sm:$0xff] }
 0x118   : > { %1123 = vst.msk [vmem:[#allocation4 + $0x70] sm:$0xff] %vm1002_vm2, %v5034_v26  ;;  %1124 = vst.msk [vmem:[#allocation4 + $0x78] sm:$0xff] %vm1002_vm2, %v5036_v27 }
 0x119   : > { %923 = vst.msk [vmem:[#allocation2 + $0x88] sm:$0xff] %vm905_vm7, %v890_v54 }
 0x11a   : > { %1215 = vrot.lane.b32.xlu0 %v1723_v51, %s4610_s21  ;;  %v748_v51 = vpop.f32.mrb[17].mxu0 }
 0x11b   : > { %1595 = vrot.lane.b32.xlu1 %v4911_v34, %s4613_s28  ;;  %v888_v34 = vadd.f32 %v4855_v32, %v849_v31  ;;  %v850_v55 = vmul.f32 %v4850_v30, %v748_v51 }
 0x11d   : > { %921 = vst.msk [vmem:[#allocation2 + $0x78] sm:$0xff] %vm905_vm7, %v888_v34  ;;  %v889_v56 = vadd.f32 %v4855_v32, %v850_v55  ;;  %v1731_v34 = vld [vmem:[#allocation3 + $0x99] sm:$0xff] }
 0x11e   : > { %1983 = vrot.lane.b32.xlu0 %v2494_v57, %s4614_s15 }
 0x11f   : > { %2364 = vrot.lane.b32.xlu1 %v2300_v15, %s4616_s19  ;;  %922 = vst.msk [vmem:[#allocation2 + $0x80] sm:$0xff] %vm905_vm7, %v889_v56 }
 0x120   : > { %v955_v60 = vld [vmem:[#allocation2 + $0x88] sm:$0xff] }
 0x121   : > { %v987_v61 = vmax.f32 %v955_v60, 0.0  ;;  %v2308_v60 = vld [vmem:[#allocation3 + $0x91] sm:$0xff] }
 0x122   : > { %1408 = vrot.lane.b32.xlu0 %v2494_v57, %s4611_s22  ;;  %v2304_v57 = vld [vmem:[#allocation3 + $0x61] sm:$0xff] }
 0x123   : > { %1788 = vrot.lane.b32.xlu1 %v2300_v15, %s4612_s27  ;;  %1062 = vst.msk [vmem:[#allocation3 + $0xe1] sm:$0xff] %vm1002_vm2, %v987_v61 }
 0x124   : > { %v953_v38 = vld [vmem:[#allocation2 + $0x78] sm:$0xff] }
 0x125   : > { %v985_v39 = vmax.f32 %v953_v38, 0.0 }
 0x126   : > { %2173 = vrot.lane.b32.xlu0 %v4913_v35, %s4617_s23  ;;  %v954_v62 = vld [vmem:[#allocation2 + $0x80] sm:$0xff] }
 0x127   : > { %2557 = vrot.lane.b32.xlu1 %v2493_v22, %s4615_s24  ;;  %1060 = vst.msk [vmem:[#allocation3 + $0xc9] sm:$0xff] %vm1002_vm2, %v985_v39  ;;  %v986_v63 = vmax.f32 %v954_v62, 0.0  ;;  %v2502_v39 = vld [vmem:[#allocation3 + $0x9a] sm:$0xff] }
 0x129   : > { %1061 = vst.msk [vmem:[#allocation3 + $0xd9] sm:$0xff] %vm1002_vm2, %v986_v63 }
 0x12a   : > { %1597 = vrot.lane.b32.xlu0 %v4913_v35, %s4613_s28  ;;  %v848_v35 = vmul.f32 %v4850_v30, %v738_v33 }
 0x12b   : > { %1406 = vrot.lane.b32.xlu1 %v2493_v22, %s4611_s22 }
 0x12c   : > { %v887_v36 = vadd.f32 %v4855_v32, %v848_v35 }
 0x12e   : > { %1213 = vrot.lane.b32.xlu0 %v2300_v15, %s4610_s21  ;;  %920 = vst.msk [vmem:[#allocation2 + $0x70] sm:$0xff] %vm905_vm7, %v887_v36 }
 0x12f   : > { %1794 = vrot.lane.b32.xlu1 %v1725_v25, %s4612_s27 }
 0x130   : > { %v5106_v1 = vld [vmem:[#allocation3 + $0xd8] sm:$0xff]  ;;  %v5108_v2 = vld [vmem:[#allocation3 + $0xe0] sm:$0xff] }
 0x131   : > { %1127 = vst.msk [vmem:[#allocation4 + $0x90] sm:$0xff] %vm1002_vm2, %v5106_v1  ;;  %1128 = vst.msk [vmem:[#allocation4 + $0x98] sm:$0xff] %vm1002_vm2, %v5108_v2 }
 0x132   : > { %1981 = vrot.lane.b32.xlu0 %v2493_v22, %s4614_s15  ;;  %v956_v22 = vld [vmem:[#allocation2 + $0x90] sm:$0xff] }
 0x133   : > { %2563 = vrot.lane.b32.xlu1 %v2496_v28, %s4615_s24  ;;  %v988_v24 = vmax.f32 %v956_v22, 0.0 }
 0x135   : > { %v952_v40 = vld [vmem:[#allocation2 + $0x70] sm:$0xff]  ;;  %1063 = vst.msk [vmem:[#allocation3 + $0xf1] sm:$0xff] %vm1002_vm2, %v988_v24 }
 0x136   : > { %2370 = vrot.lane.b32.xlu0 %v1725_v25, %s4616_s19  ;;  %v984_v42 = vmax.f32 %v952_v40, 0.0 }
 0x137   : > { %2175 = vrot.lane.b32.xlu1 %v4926_v43, %s4617_s23 }
 0x138   : > { %1059 = vst.msk [vmem:[#allocation3 + $0xc1] sm:$0xff] %vm1002_vm2, %v984_v42  ;;  %v4405_v42 = vpop.f32.mrb[2].mxu1 }
 0x13a   : > { %1219 = vrot.lane.b32.xlu0 %v1725_v25, %s4610_s21 }
 0x13b   : > { %1599 = vrot.lane.b32.xlu1 %v4926_v43, %s4613_s28  ;;  %v1727_v43 = vld [vmem:[#allocation3 + $0x69] sm:$0xff] }
 0x13c   : > { %v5156_v36 = vld [vmem:[#allocation3 + $0xf0] sm:$0xff] }
 0x13d   : > { %1129 = vst.msk [vmem:[#allocation4 + $0xa0] sm:$0xff] %vm1002_vm2, %v5156_v36 }
 0x13e   : > { %1987 = vrot.lane.b32.xlu0 %v2496_v28, %s4614_s15 }
 0x13f   : > { %2368 = vrot.lane.b32.xlu1 %v2302_v37, %s4616_s19  ;;  %v5070_v45 = vld [vmem:[#allocation3 + $0xc0] sm:$0xff]  ;;  %v5072_v46 = vld [vmem:[#allocation3 + $0xc8] sm:$0xff] }
 0x140   : > { %1125 = vst.msk [vmem:[#allocation4 + $0x80] sm:$0xff] %vm1002_vm2, %v5070_v45  ;;  %1126 = vst.msk [vmem:[#allocation4 + $0x88] sm:$0xff] %vm1002_vm2, %v5072_v46 }
 0x142   : > { %1412 = vrot.lane.b32.xlu0 %v2496_v28, %s4611_s22  ;;  %v2499_v28 = vld [vmem:[#allocation3 + $0x7a] sm:$0xff] }
 0x143   : > { %1792 = vrot.lane.b32.xlu1 %v2302_v37, %s4612_s27 }
 0x146   : > { %2177 = vrot.lane.b32.xlu0 %v4928_v44, %s4617_s23 }
 0x147   : > { %2561 = vrot.lane.b32.xlu1 %v2495_v41, %s4615_s24 }
 0x14a   : > { %1601 = vrot.lane.b32.xlu0 %v4928_v44, %s4613_s28  ;;  %v2498_v44 = vld [vmem:[#allocation3 + $0x6a] sm:$0xff] }
 0x14b   : > { %1410 = vrot.lane.b32.xlu1 %v2495_v41, %s4611_s22 }
 0x14e   : > { %1217 = vrot.lane.b32.xlu0 %v2302_v37, %s4610_s21 }
 0x14f   : > { %1798 = vrot.lane.b32.xlu1 %v1727_v43, %s4612_s27 }
 0x152   : > { %1985 = vrot.lane.b32.xlu0 %v2495_v41, %s4614_s15 }
 0x153   : > { %2567 = vrot.lane.b32.xlu1 %v2498_v44, %s4615_s24 }
 0x156   : > { %2374 = vrot.lane.b32.xlu0 %v1727_v43, %s4616_s19 }
 0x157   : > { %2179 = vrot.lane.b32.xlu1 %v4938_v49, %s4617_s23 }
 0x15a   : > { %1223 = vrot.lane.b32.xlu0 %v1727_v43, %s4610_s21  ;;  %v855_v43 = vmul.f32 %v4405_v42, %v4850_v30 }
 0x15b   : > { %1603 = vrot.lane.b32.xlu1 %v4938_v49, %s4613_s28  ;;  %v2497_v49 = vld [vmem:[#allocation3 + $0x62] sm:$0xff] }
 0x15c   : > { %v894_v54 = vadd.f32 %v4855_v32, %v855_v43 }
 0x15e   : > { %1991 = vrot.lane.b32.xlu0 %v2498_v44, %s4614_s15  ;;  %927 = vst.msk [vmem:[#allocation2 + $0xa8] sm:$0xff] %vm905_vm7, %v894_v54 }
 0x15f   : > { %2372 = vrot.lane.b32.xlu1 %v2304_v57, %s4616_s19 }
 0x162   : > { %1416 = vrot.lane.b32.xlu0 %v2498_v44, %s4611_s22  ;;  %v768_v44 = vpop.f32.mrb[3].mxu1 }
 0x163   : > { %1796 = vrot.lane.b32.xlu1 %v2304_v57, %s4612_s27  ;;  %v854_v48 = vmul.f32 %v4850_v30, %v768_v44 }
 0x165   : > { %v893_v55 = vadd.f32 %v4855_v32, %v854_v48  ;;  %v959_v63 = vld [vmem:[#allocation2 + $0xa8] sm:$0xff] }
 0x166   : > { %2181 = vrot.lane.b32.xlu0 %v4940_v50, %s4617_s23 }
 0x167   : > { %2565 = vrot.lane.b32.xlu1 %v2497_v49, %s4615_s24  ;;  %926 = vst.msk [vmem:[#allocation2 + $0xa0] sm:$0xff] %vm905_vm7, %v893_v55 }
 0x16a   : > { %1605 = vrot.lane.b32.xlu0 %v4940_v50, %s4613_s28 }
 0x16b   : > { %1414 = vrot.lane.b32.xlu1 %v2497_v49, %s4611_s22 }
 0x16e   : > { %1221 = vrot.lane.b32.xlu0 %v2304_v57, %s4610_s21 }
 0x16f   : > { %1802 = vrot.lane.b32.xlu1 %v1729_v0, %s4612_s27 }
 0x170   : > { %v1787_v3 = vpop.permute.xlu0 %1786 }
 0x171   : > { %v1594_v50 = vpop.permute.xlu1 %1593 }
 0x172   : > { %1689 = vst.msk [vmem:[#allocation4 + $0x8] sm:$0xff] %vm1687_vm8, %v1594_v50  ;;  %1989 = vrot.lane.b32.xlu0 %v2497_v49, %s4614_s15 }
 0x173   : > { %2571 = vrot.lane.b32.xlu1 %v2500_v4, %s4615_s24  ;;  %1882 = vst.msk [vmem:[#allocation4 + $0x8] sm:$0xff] %vm1880_vm9, %v1787_v3  ;;  %v958_v3 = vld [vmem:[#allocation2 + $0xa0] sm:$0xff] }
 0x174   : > { %v1212_v5 = vpop.permute.xlu0 %1211 }
 0x175   : > { %1305 = vst.msk [vmem:[#allocation4 + $0x18] sm:$0xff] %vm1301_vm5, %v1212_v5  ;;  %v1210_v6 = vpop.permute.xlu1 %1209 }
 0x176   : > { %1304 = vst.msk [vmem:[#allocation4 + $0x10] sm:$0xff] %vm1301_vm5, %v1210_v6  ;;  %2378 = vrot.lane.b32.xlu0 %v1729_v0, %s4616_s19  ;;  %v2501_v6 = vld [vmem:[#allocation3 + $0x92] sm:$0xff] }
 0x177   : > { %2183 = vrot.lane.b32.xlu1 %v4950_v52, %s4617_s23 }
 0x178   : > { %v1980_v10 = vpop.permute.xlu0 %1979 }
 0x179   : > { %2075 = vst.msk [vmem:[#allocation4 + $0x8] sm:$0xff] %vm2073_vm10, %v1980_v10  ;;  %v1978_v12 = vpop.permute.xlu1 %1977  ;;  %v1733_v10 = vld [vmem:[#allocation3 + $0xb1] sm:$0xff] }
 0x17a   : > { %1227 = vrot.lane.b32.xlu0 %v1729_v0, %s4610_s21  ;;  %v991_v0 = vmax.f32 %v959_v63, 0.0 }
 0x17b   : > { %1607 = vrot.lane.b32.xlu1 %v4950_v52, %s4613_s28  ;;  %v957_v52 = vld [vmem:[#allocation2 + $0x98] sm:$0xff] }
 0x17c   : > { %v1405_v15 = vpop.permute.xlu0 %1404  ;;  %v989_v21 = vmax.f32 %v957_v52, 0.0  ;;  %1066 = vst.msk [vmem:[#allocation3 + $0x111] sm:$0xff] %vm1002_vm2, %v991_v0 }
 0x17d   : > { %1498 = vst.msk [vmem:[#allocation4 + $0x18] sm:$0xff] %vm1494_vm6, %v1405_v15  ;;  %v1403_v16 = vpop.permute.xlu1 %1402  ;;  %v2504_v15 = vld [vmem:[#allocation3 + $0xb2] sm:$0xff] }
 0x17e   : > { %1497 = vst.msk [vmem:[#allocation4 + $0x10] sm:$0xff] %vm1494_vm6, %v1403_v16  ;;  %1995 = vrot.lane.b32.xlu0 %v2500_v4, %s4614_s15 }
 0x17f   : > { %2376 = vrot.lane.b32.xlu1 %v2306_v18, %s4616_s19  ;;  %1064 = vst.msk [vmem:[#allocation3 + $0xf9] sm:$0xff] %vm1002_vm2, %v989_v21 }
 0x180   : > { %v1592_v19 = vpop.permute.xlu0 %1591 }
 0x181   : > { %1688 = vst.msk [vmem:[#allocation4] sm:$0xff] %vm1687_vm8, %v1592_v19  ;;  %v5138_v20 = vpop.permute.xlu1 %1790  ;;  %v4408_v19 = vpop.f32.mrb[4].mxu1 }
 0x182   : > { %1420 = vrot.lane.b32.xlu0 %v2500_v4, %s4611_s22  ;;  %v990_v4 = vmax.f32 %v958_v3, 0.0  ;;  %v778_v52 = vpop.f32.mrb[5].mxu1 }
 0x183   : > { %1800 = vrot.lane.b32.xlu1 %v2306_v18, %s4612_s27  ;;  %v856_v22 = vmul.f32 %v4850_v30, %v778_v52 }
 0x184   : > { %v1785_v23 = vpop.permute.xlu0 %1784  ;;  %1065 = vst.msk [vmem:[#allocation3 + $0x109] sm:$0xff] %vm1002_vm2, %v990_v4 }
 0x185   : > { %1881 = vst.msk [vmem:[#allocation4] sm:$0xff] %vm1880_vm9, %v1785_v23  ;;  %v2560_v25 = vpop.permute.xlu1 %2559 }
 0x186   : > { %2074 = vst.msk [vmem:[#allocation4] sm:$0xff] %vm2073_vm10, %v1978_v12  ;;  %2185 = vrot.lane.b32.xlu0 %v4952_v53, %s4617_s23  ;;  %v5158_v37 = vld [vmem:[#allocation3 + $0xf8] sm:$0xff] }
 0x187   : > { %2569 = vrot.lane.b32.xlu1 %v2499_v28, %s4615_s24  ;;  %1130 = vst.msk [vmem:[#allocation4 + $0xa8] sm:$0xff] %vm1002_vm2, %v5158_v37 }
 0x188   : > { %v2367_v29 = vpop.permute.xlu0 %2366 }
 0x189   : > { %v2172_v31 = vpop.permute.xlu1 %2171 }
 0x18a   : > { %2268 = vst.msk [vmem:[#allocation4] sm:$0xff] %vm2267_vm11, %v2172_v31  ;;  %1609 = vrot.lane.b32.xlu0 %v4952_v53, %s4613_s28 }
 0x18b   : > { %1418 = vrot.lane.b32.xlu1 %v2499_v28, %s4611_s22  ;;  %v5213_v12 = vld [vmem:[#allocation3 + $0x108] sm:$0xff]  ;;  %v5215_v13 = vld [vmem:[#allocation3 + $0x110] sm:$0xff] }
 0x18c   : > { %v1216_v33 = vpop.permute.xlu0 %1215  ;;  %1131 = vst.msk [vmem:[#allocation4 + $0xb0] sm:$0xff] %vm1002_vm2, %v5213_v12  ;;  %1132 = vst.msk [vmem:[#allocation4 + $0xb8] sm:$0xff] %vm1002_vm2, %v5215_v13 }
 0x18d   : > { %1307 = vst.msk [vmem:[#allocation4 + $0x28] sm:$0xff] %vm1301_vm5, %v1216_v33  ;;  %v1596_v35 = vpop.permute.xlu1 %1595 }
 0x18e   : > { %1690 = vst.msk [vmem:[#allocation4 + $0x10] sm:$0xff] %vm1687_vm8, %v1596_v35  ;;  %1225 = vrot.lane.b32.xlu0 %v2306_v18, %s4610_s21 }
 0x18f   : > { %1806 = vrot.lane.b32.xlu1 %v1731_v34, %s4612_s27 }
 0x190   : > { %v1984_v53 = vpop.permute.xlu0 %1983 }
 0x191   : > { %v2365_v38 = vpop.permute.xlu1 %2364 }
 0x192   : > { %2461 = vst.msk [vmem:[#allocation4] sm:$0xff] %vm2460_vm12, %v2365_v38  ;;  %1993 = vrot.lane.b32.xlu0 %v2499_v28, %s4614_s15 }
 0x193   : > { %2575 = vrot.lane.b32.xlu1 %v2502_v39, %s4615_s24 }
 0x194   : > { %v1409_v40 = vpop.permute.xlu0 %1408 }
 0x195   : > { %1500 = vst.msk [vmem:[#allocation4 + $0x28] sm:$0xff] %vm1494_vm6, %v1409_v40  ;;  %v1789_v41 = vpop.permute.xlu1 %1788 }
 0x196   : > { %1883 = vst.msk [vmem:[#allocation4 + $0x10] sm:$0xff] %vm1880_vm9, %v1789_v41  ;;  %2382 = vrot.lane.b32.xlu0 %v1731_v34, %s4616_s19  ;;  %v2503_v41 = vld [vmem:[#allocation3 + $0xaa] sm:$0xff] }
 0x197   : > { %2187 = vrot.lane.b32.xlu1 %v4966_v58, %s4617_s23 }
 0x198   : > { %v2174_v47 = vpop.permute.xlu0 %2173 }
 0x199   : > { %2269 = vst.msk [vmem:[#allocation4 + $0x8] sm:$0xff] %vm2267_vm11, %v2174_v47  ;;  %v2558_v51 = vpop.permute.xlu1 %2557  ;;  %v1735_v47 = vld [vmem:[#allocation3 + $0xc9] sm:$0xff] }
 0x19a   : > { %2462 = vst.msk [vmem:[#allocation4 + $0x8] sm:$0xff] %vm2460_vm12, %v2367_v29  ;;  %1231 = vrot.lane.b32.xlu0 %v1731_v34, %s4610_s21  ;;  %v2310_v29 = vld [vmem:[#allocation3 + $0xa9] sm:$0xff] }
 0x19b   : > { %2654 = vst.msk [vmem:[#allocation4] sm:$0xff] %vm2653_vm13, %v2558_v51  ;;  %2655 = vst.msk [vmem:[#allocation4 + $0x8] sm:$0xff] %vm2653_vm13, %v2560_v25  ;;  %1611 = vrot.lane.b32.xlu1 %v4966_v58, %s4613_s28  ;;  %v895_v25 = vadd.f32 %v4855_v32, %v856_v22 }
 0x19c   : > { %v1598_v56 = vpop.permute.xlu0 %1597 }
 0x19d   : > { %1691 = vst.msk [vmem:[#allocation4 + $0x18] sm:$0xff] %vm1687_vm8, %v1598_v56  ;;  %v1407_v57 = vpop.permute.xlu1 %1406  ;;  %v2506_v56 = vld [vmem:[#allocation3 + $0xca] sm:$0xff] }
 0x19e   : > { %1884 = vst.msk [vmem:[#allocation4 + $0x18] sm:$0xff] %vm1880_vm9, %v5138_v20  ;;  %1999 = vrot.lane.b32.xlu0 %v2502_v39, %s4614_s15  ;;  %v857_v20 = vmul.f32 %v4408_v19, %v4850_v30 }
 0x19f   : > { %2077 = vst.msk [vmem:[#allocation4 + $0x18] sm:$0xff] %vm2073_vm10, %v1984_v53  ;;  %2380 = vrot.lane.b32.xlu1 %v2308_v60, %s4616_s19 }
 0x1a0   : > { %v1214_v58 = vpop.permute.xlu0 %1213  ;;  %v896_v24 = vadd.f32 %v4855_v32, %v857_v20  ;;  %928 = vst.msk [vmem:[#allocation2 + $0xb0] sm:$0xff] %vm905_vm7, %v895_v25  ;;  %v2505_v20 = vld [vmem:[#allocation3 + $0xc2] sm:$0xff] }
 0x1a1   : > { %1306 = vst.msk [vmem:[#allocation4 + $0x20] sm:$0xff] %vm1301_vm5, %v1214_v58  ;;  %v5193_v61 = vpop.permute.xlu1 %1794 }
 0x1a2   : > { %v2686_v62 = vld [vmem:[#allocation4] sm:$0xff]  ;;  %1499 = vst.msk [vmem:[#allocation4 + $0x20] sm:$0xff] %vm1494_vm6, %v1407_v57  ;;  %1424 = vrot.lane.b32.xlu0 %v2502_v39, %s4611_s22  ;;  %v2687_v49 = vld [vmem:[#allocation4 + $0x8] sm:$0xff] }
 0x1a3   : > { %4439 = vmatprep.mubr.msk.f32.mxu1 %vm2727_vm14, %v2686_v62  ;;  %1804 = vrot.lane.b32.xlu1 %v2308_v60, %s4612_s27  ;;  %929 = vst.msk [vmem:[#allocation2 + $0xb8] sm:$0xff] %vm905_vm7, %v896_v24  ;;  %v5290_v62 = vld [vmem:[%s6520_s2] ss:$0 sm:$0xff] }
 0x1a4   : > { %4440 = vmatmul.mubr.msk.f32.vlgmr.msra.gmra.mrb[14].mxu1 %vm2727_vm14, %v2687_v49  ;;  %v1982_v50 = vpop.permute.xlu0 %1981 }
 0x1a5   : > { %2076 = vst.msk [vmem:[#allocation4 + $0x10] sm:$0xff] %vm2073_vm10, %v1982_v50  ;;  %v2564_v5 = vpop.permute.xlu1 %2563  ;;  %v5301_v50 = vld [vmem:[%s6521_s3] ss:$0 sm:$0xff] }
 0x1a6   : > { %2189 = vrot.lane.b32.xlu0 %v4968_v59, %s4617_s23 }
 0x1a7   : > { %2573 = vrot.lane.b32.xlu1 %v2501_v6, %s4615_s24  ;;  %v960_v53 = vld [vmem:[#allocation2 + $0xb0] sm:$0xff] }
 0x1a8   : > { %v2371_v7 = vpop.permute.xlu0 %2370  ;;  %v992_v39 = vmax.f32 %v960_v53, 0.0 }
 0x1a9   : > { %v2176_v8 = vpop.permute.xlu1 %2175 }
 0x1aa   : > { %2270 = vst.msk [vmem:[#allocation4 + $0x10] sm:$0xff] %vm2267_vm11, %v2176_v8  ;;  %1613 = vrot.lane.b32.xlu0 %v4968_v59, %s4613_s28  ;;  %v961_v34 = vld [vmem:[#allocation2 + $0xb8] sm:$0xff]  ;;  %v2312_v8 = vld [vmem:[#allocation3 + $0xc1] sm:$0xff] }
 0x1ab   : > { %1422 = vrot.lane.b32.xlu1 %v2501_v6, %s4611_s22  ;;  %v993_v35 = vmax.f32 %v961_v34, 0.0  ;;  %1067 = vst.msk [vmem:[#allocation3 + $0x121] sm:$0xff] %vm1002_vm2, %v992_v39 }
 0x1ac   : > { %v1220_v9 = vpop.permute.xlu0 %1219 }
 0x1ad   : > { %1309 = vst.msk [vmem:[#allocation4 + $0x38] sm:$0xff] %vm1301_vm5, %v1220_v9  ;;  %v1600_v11 = vpop.permute.xlu1 %1599 }
 0x1ae   : > { %1692 = vst.msk [vmem:[#allocation4 + $0x20] sm:$0xff] %vm1687_vm8, %v1600_v11  ;;  %1229 = vrot.lane.b32.xlu0 %v2308_v60, %s4610_s21 }
 0x1af   : > { %1810 = vrot.lane.b32.xlu1 %v1733_v10, %s4612_s27  ;;  %1068 = vst.msk [vmem:[#allocation3 + $0x129] sm:$0xff] %vm1002_vm2, %v993_v35 }
 0x1b0   : > { %v1988_v59 = vpop.permute.xlu0 %1987 }
 0x1b1   : > { %v2369_v14 = vpop.permute.xlu1 %2368 }
 0x1b2   : > { %2463 = vst.msk [vmem:[#allocation4 + $0x10] sm:$0xff] %vm2460_vm12, %v2369_v14  ;;  %1997 = vrot.lane.b32.xlu0 %v2501_v6, %s4614_s15  ;;  %v5270_v51 = vld [vmem:[#allocation3 + $0x120] sm:$0xff] }
 0x1b3   : > { %2579 = vrot.lane.b32.xlu1 %v2504_v15, %s4615_s24  ;;  %1133 = vst.msk [vmem:[#allocation4 + $0xc0] sm:$0xff] %vm1002_vm2, %v5270_v51 }
 0x1b4   : > { %v1413_v16 = vpop.permute.xlu0 %1412 }
 0x1b5   : > { %1502 = vst.msk [vmem:[#allocation4 + $0x38] sm:$0xff] %vm1494_vm6, %v1413_v16  ;;  %v1793_v18 = vpop.permute.xlu1 %1792 }
 0x1b6   : > { %1885 = vst.msk [vmem:[#allocation4 + $0x20] sm:$0xff] %vm1880_vm9, %v1793_v18  ;;  %2386 = vrot.lane.b32.xlu0 %v1733_v10, %s4616_s19  ;;  %v5272_v54 = vld [vmem:[#allocation3 + $0x128] sm:$0xff] }
 0x1b7   : > { %2191 = vrot.lane.b32.xlu1 %v5034_v26, %s4617_s23  ;;  %1134 = vst.msk [vmem:[#allocation4 + $0xc8] sm:$0xff] %vm1002_vm2, %v5272_v54 }
 0x1b8   : > { %v2178_v21 = vpop.permute.xlu0 %2177 }
 0x1b9   : > { %2271 = vst.msk [vmem:[#allocation4 + $0x18] sm:$0xff] %vm2267_vm11, %v2178_v21  ;;  %v2562_v23 = vpop.permute.xlu1 %2561 }
 0x1ba   : > { %2464 = vst.msk [vmem:[#allocation4 + $0x18] sm:$0xff] %vm2460_vm12, %v2371_v7  ;;  %1235 = vrot.lane.b32.xlu0 %v1733_v10, %s4610_s21 }
 0x1bb   : > { %2656 = vst.msk [vmem:[#allocation4 + $0x10] sm:$0xff] %vm2653_vm13, %v2562_v23  ;;  %2657 = vst.msk [vmem:[#allocation4 + $0x18] sm:$0xff] %vm2653_vm13, %v2564_v5  ;;  %1615 = vrot.lane.b32.xlu1 %v5034_v26, %s4613_s28  ;;  %v5336_v23 = vld [vmem:[#allocation3 + $0xe1] sm:$0xff] }
 0x1bc   : > { %v1602_v30 = vpop.permute.xlu0 %1601 }
 0x1bd   : > { %1693 = vst.msk [vmem:[#allocation4 + $0x28] sm:$0xff] %vm1687_vm8, %v1602_v30  ;;  %v1411_v28 = vpop.permute.xlu1 %1410 }
 0x1be   : > { %1886 = vst.msk [vmem:[#allocation4 + $0x28] sm:$0xff] %vm1880_vm9, %v5193_v61  ;;  %2003 = vrot.lane.b32.xlu0 %v2504_v15, %s4614_s15 }
 0x1bf   : > { %2079 = vst.msk [vmem:[#allocation4 + $0x28] sm:$0xff] %vm2073_vm10, %v1988_v59  ;;  %2384 = vrot.lane.b32.xlu1 %v2310_v29, %s4616_s19  ;;  %v4411_v58 = vpop.f32.mrb[6].mxu1 }
 0x1c0   : > { %v1218_v32 = vpop.permute.xlu0 %1217  ;;  %v859_v49 = vmul.f32 %v5290_v62, %v4411_v58  ;;  %v788_v63 = vpop.f32.mrb[7].mxu1 }
 0x1c1   : > { %1308 = vst.msk [vmem:[#allocation4 + $0x30] sm:$0xff] %vm1301_vm5, %v1218_v32  ;;  %v5250_v26 = vpop.permute.xlu1 %1798  ;;  %v858_v3 = vmul.f32 %v5290_v62, %v788_v63 }
 0x1c2   : > { %v2688_v31 = vld [vmem:[#allocation4 + $0x10] sm:$0xff]  ;;  %1501 = vst.msk [vmem:[#allocation4 + $0x30] sm:$0xff] %vm1494_vm6, %v1411_v28  ;;  %1428 = vrot.lane.b32.xlu0 %v2504_v15, %s4611_s22  ;;  %v2689_v33 = vld [vmem:[#allocation4 + $0x18] sm:$0xff]  ;;  %v898_v4 = vadd.f32 %v5301_v50, %v859_v49 }
 0x1c3   : > { %4442 = vmatprep.mubr.msk.f32.mxu1 %vm2727_vm14, %v2688_v31  ;;  %1808 = vrot.lane.b32.xlu1 %v2310_v29, %s4612_s27  ;;  %v897_v5 = vadd.f32 %v5301_v50, %v858_v3  ;;  %v2314_v3 = vld [vmem:[#allocation3 + $0xd9] sm:$0xff] }
 0x1c4   : > { %4443 = vmatmul.mubr.msk.f32.gmra.mrb[16].mxu1 %vm2727_vm14, %v2689_v33  ;;  %v1986_v38 = vpop.permute.xlu0 %1985  ;;  %931 = vst.msk [vmem:[#allocation2 + $0xc8] sm:$0xff] %vm905_vm7, %v898_v4 }
 0x1c5   : > { %2078 = vst.msk [vmem:[#allocation4 + $0x20] sm:$0xff] %vm2073_vm10, %v1986_v38  ;;  %v2568_v40 = vpop.permute.xlu1 %2567 }
 0x1c6   : > { %2193 = vrot.lane.b32.xlu0 %v5036_v27, %s4617_s23  ;;  %930 = vst.msk [vmem:[#allocation2 + $0xc0] sm:$0xff] %vm905_vm7, %v897_v5 }
 0x1c7   : > { %2577 = vrot.lane.b32.xlu1 %v2503_v41, %s4615_s24 }
 0x1c8   : > { %v2375_v42 = vpop.permute.xlu0 %2374 }
 0x1c9   : > { %v2180_v43 = vpop.permute.xlu1 %2179 }
 0x1ca   : > { %2272 = vst.msk [vmem:[#allocation4 + $0x20] sm:$0xff] %vm2267_vm11, %v2180_v43  ;;  %1617 = vrot.lane.b32.xlu0 %v5036_v27, %s4613_s28 }
 0x1cb   : > { %1426 = vrot.lane.b32.xlu1 %v2503_v41, %s4611_s22  ;;  %v963_v59 = vld [vmem:[#allocation2 + $0xc8] sm:$0xff] }
 0x1cc   : > { %v1224_v44 = vpop.permute.xlu0 %1223  ;;  %v995_v15 = vmax.f32 %v963_v59, 0.0 }
 0x1cd   : > { %1311 = vst.msk [vmem:[#allocation4 + $0x48] sm:$0xff] %vm1301_vm5, %v1224_v44  ;;  %v1604_v48 = vpop.permute.xlu1 %1603  ;;  %v962_v16 = vld [vmem:[#allocation2 + $0xc0] sm:$0xff] }
 0x1ce   : > { %1694 = vst.msk [vmem:[#allocation4 + $0x30] sm:$0xff] %vm1687_vm8, %v1604_v48  ;;  %1233 = vrot.lane.b32.xlu0 %v2310_v29, %s4610_s21  ;;  %v994_v19 = vmax.f32 %v962_v16, 0.0 }
 0x1cf   : > { %1814 = vrot.lane.b32.xlu1 %v1735_v47, %s4612_s27  ;;  %1070 = vst.msk [vmem:[#allocation3 + $0x141] sm:$0xff] %vm1002_vm2, %v995_v15 }
 0x1d0   : > { %v1992_v27 = vpop.permute.xlu0 %1991  ;;  %1069 = vst.msk [vmem:[#allocation3 + $0x139] sm:$0xff] %vm1002_vm2, %v994_v19 }
 0x1d1   : > { %v2373_v55 = vpop.permute.xlu1 %2372 }
 0x1d2   : > { %2465 = vst.msk [vmem:[#allocation4 + $0x20] sm:$0xff] %vm2460_vm12, %v2373_v55  ;;  %2001 = vrot.lane.b32.xlu0 %v2503_v41, %s4614_s15 }
 0x1d3   : > { %2583 = vrot.lane.b32.xlu1 %v2506_v56, %s4615_s24 }
 0x1d4   : > { %v1417_v57 = vpop.permute.xlu0 %1416 }
 0x1d5   : > { %1504 = vst.msk [vmem:[#allocation4 + $0x48] sm:$0xff] %vm1494_vm6, %v1417_v57  ;;  %v1797_v60 = vpop.permute.xlu1 %1796 }
 0x1d6   : > { %1887 = vst.msk [vmem:[#allocation4 + $0x30] sm:$0xff] %vm1880_vm9, %v1797_v60  ;;  %2390 = vrot.lane.b32.xlu0 %v1735_v47, %s4616_s19 }
 0x1d7   : > { %2195 = vrot.lane.b32.xlu1 %v5070_v45, %s4617_s23  ;;  %v5341_v25 = vld [vmem:[#allocation3 + $0x138] sm:$0xff]  ;;  %v5343_v30 = vld [vmem:[#allocation3 + $0x140] sm:$0xff] }
 0x1d8   : > { %v2182_v61 = vpop.permute.xlu0 %2181  ;;  %1135 = vst.msk [vmem:[#allocation4 + $0xd0] sm:$0xff] %vm1002_vm2, %v5341_v25  ;;  %1136 = vst.msk [vmem:[#allocation4 + $0xd8] sm:$0xff] %vm1002_vm2, %v5343_v30 }
 0x1d9   : > { %2273 = vst.msk [vmem:[#allocation4 + $0x28] sm:$0xff] %vm2267_vm11, %v2182_v61  ;;  %v2566_v0 = vpop.permute.xlu1 %2565 }
 0x1da   : > { %2466 = vst.msk [vmem:[#allocation4 + $0x28] sm:$0xff] %vm2460_vm12, %v2375_v42  ;;  %1239 = vrot.lane.b32.xlu0 %v1735_v47, %s4610_s21 }
 0x1db   : > { %2658 = vst.msk [vmem:[#allocation4 + $0x20] sm:$0xff] %vm2653_vm13, %v2566_v0  ;;  %2659 = vst.msk [vmem:[#allocation4 + $0x28] sm:$0xff] %vm2653_vm13, %v2568_v40  ;;  %1619 = vrot.lane.b32.xlu1 %v5070_v45, %s4613_s28  ;;  %v3159_v0 = vld [vmem:[%s6525_s7] sm:$0xff] }
 0x1dc   : > { %v1606_v6 = vpop.permute.xlu0 %1605  ;;  %4487 = vmatprep.subr.mxu0 %v3159_v0 }
 0x1dd   : > { %1695 = vst.msk [vmem:[#allocation4 + $0x38] sm:$0xff] %vm1687_vm8, %v1606_v6  ;;  %v1415_v7 = vpop.permute.xlu1 %1414  ;;  %4488 = vmatpush3.msra.mxu0 %v3159_v0  ;;  %v2319_v0 = vld [vmem:[#allocation3 + $0x111] sm:$0xff] }
 0x1de   : > { %1888 = vst.msk [vmem:[#allocation4 + $0x38] sm:$0xff] %vm1880_vm9, %v5250_v26  ;;  %2007 = vrot.lane.b32.xlu0 %v2506_v56, %s4614_s15  ;;  %v5354_v26 = vld [vmem:[#allocation3 + $0xe2] sm:$0xff] }
 0x1df   : > { %2081 = vst.msk [vmem:[#allocation4 + $0x38] sm:$0xff] %vm2073_vm10, %v1992_v27  ;;  %2388 = vrot.lane.b32.xlu1 %v2312_v8, %s4616_s19 }
 0x1e0   : > { %v1222_v45 = vpop.permute.xlu0 %1221 }
 0x1e1   : > { %1310 = vst.msk [vmem:[#allocation4 + $0x40] sm:$0xff] %vm1301_vm5, %v1222_v45  ;;  %v5317_v9 = vpop.permute.xlu1 %1802 }
 0x1e2   : > { %v2690_v10 = vld [vmem:[#allocation4 + $0x20] sm:$0xff]  ;;  %1503 = vst.msk [vmem:[#allocation4 + $0x40] sm:$0xff] %vm1494_vm6, %v1415_v7  ;;  %1432 = vrot.lane.b32.xlu0 %v2506_v56, %s4611_s22  ;;  %v2691_v11 = vld [vmem:[#allocation4 + $0x28] sm:$0xff] }
 0x1e3   : > { %4445 = vmatprep.mubr.msk.f32.mxu1 %vm2727_vm14, %v2690_v10  ;;  %1812 = vrot.lane.b32.xlu1 %v2312_v8, %s4612_s27 }
 0x1e4   : > { %4446 = vmatmul.mubr.msk.f32.gmra.mrb[18].mxu1 %vm2727_vm14, %v2691_v11  ;;  %v1990_v14 = vpop.permute.xlu0 %1989 }
 0x1e5   : > { %2080 = vst.msk [vmem:[#allocation4 + $0x30] sm:$0xff] %vm2073_vm10, %v1990_v14  ;;  %v5325_v18 = vpop.permute.xlu1 %2571 }
 0x1e6   : > { %2197 = vrot.lane.b32.xlu0 %v5072_v46, %s4617_s23 }
 0x1e7   : > { %2581 = vrot.lane.b32.xlu1 %v2505_v20, %s4615_s24 }
 0x1e8   : > { %v2379_v52 = vpop.permute.xlu0 %2378 }
 0x1e9   : > { %v2184_v21 = vpop.permute.xlu1 %2183 }
 0x1ea   : > { %2274 = vst.msk [vmem:[#allocation4 + $0x30] sm:$0xff] %vm2267_vm11, %v2184_v21  ;;  %1621 = vrot.lane.b32.xlu0 %v5072_v46, %s4613_s28  ;;  %v4414_v46 = vpop.f32.mrb[8].mxu1 }
 0x1eb   : > { %1430 = vrot.lane.b32.xlu1 %v2505_v20, %s4611_s22  ;;  %v861_v29 = vmul.f32 %v5290_v62, %v4414_v46  ;;  %v798_v33 = vpop.f32.mrb[9].mxu1 }
 0x1ec   : > { %v1228_v22 = vpop.permute.xlu0 %1227  ;;  %v860_v34 = vmul.f32 %v5290_v62, %v798_v33  ;;  %v4417_v35 = vpop.f32.mrb[10].mxu1 }
 0x1ed   : > { %1313 = vst.msk [vmem:[#allocation4 + $0x58] sm:$0xff] %vm1301_vm5, %v1228_v22  ;;  %v1608_v24 = vpop.permute.xlu1 %1607  ;;  %v900_v31 = vadd.f32 %v5301_v50, %v861_v29  ;;  %v863_v38 = vmul.f32 %v5290_v62, %v4417_v35  ;;  %v808_v39 = vpop.f32.mrb[11].mxu1  ;;  %v2509_v35 = vld [vmem:[#allocation3 + $0xf2] sm:$0xff] }
 0x1ee   : > { %1696 = vst.msk [vmem:[#allocation4 + $0x40] sm:$0xff] %vm1687_vm8, %v1608_v24  ;;  %1237 = vrot.lane.b32.xlu0 %v2312_v8, %s4610_s21  ;;  %v899_v41 = vadd.f32 %v5301_v50, %v860_v34  ;;  %v862_v42 = vmul.f32 %v5290_v62, %v808_v39  ;;  %v4420_v43 = vpop.f32.mrb[12].mxu1  ;;  %v2317_v34 = vld [vmem:[#allocation3 + $0xf9] sm:$0xff] }
 0x1ef   : > { %1818 = vrot.lane.b32.xlu1 %v5336_v23, %s4612_s27  ;;  %933 = vst.msk [vmem:[#allocation2 + $0xd8] sm:$0xff] %vm905_vm7, %v900_v31  ;;  %v902_v44 = vadd.f32 %v5301_v50, %v863_v38  ;;  %v865_v47 = vmul.f32 %v5290_v62, %v4420_v43  ;;  %v818_v48 = vpop.f32.mrb[13].mxu1 }
 0x1f0   : > { %v1996_v28 = vpop.permute.xlu0 %1995  ;;  %932 = vst.msk [vmem:[#allocation2 + $0xd0] sm:$0xff] %vm905_vm7, %v899_v41  ;;  %v901_v27 = vadd.f32 %v5301_v50, %v862_v42  ;;  %v864_v55 = vmul.f32 %v5290_v62, %v818_v48  ;;  %v2510_v42 = vld [vmem:[#allocation3 + $0xfa] sm:$0xff] }
 0x1f1   : > { %v2377_v32 = vpop.permute.xlu1 %2376  ;;  %935 = vst.msk [vmem:[#allocation2 + $0xe8] sm:$0xff] %vm905_vm7, %v902_v44  ;;  %v904_v57 = vadd.f32 %v5301_v50, %v865_v47 }
 0x1f2   : > { %2467 = vst.msk [vmem:[#allocation4 + $0x30] sm:$0xff] %vm2460_vm12, %v2377_v32  ;;  %2005 = vrot.lane.b32.xlu0 %v2505_v20, %s4614_s15  ;;  %v903_v58 = vadd.f32 %v5301_v50, %v864_v55  ;;  %v2316_v32 = vld [vmem:[#allocation3 + $0xf1] sm:$0xff] }
 0x1f3   : > { %2587 = vrot.lane.b32.xlu1 %v5354_v26, %s4615_s24  ;;  %934 = vst.msk [vmem:[#allocation2 + $0xe0] sm:$0xff] %vm905_vm7, %v901_v27  ;;  %937 = vst.msk [vmem:[#allocation2 + $0xf8] sm:$0xff] %vm905_vm7, %v904_v57 }
 0x1f4   : > { %v1421_v53 = vpop.permute.xlu0 %1420  ;;  %936 = vst.msk [vmem:[#allocation2 + $0xf0] sm:$0xff] %vm905_vm7, %v903_v58 }
 0x1f5   : > { %1506 = vst.msk [vmem:[#allocation4 + $0x58] sm:$0xff] %vm1494_vm6, %v1421_v53  ;;  %v1801_v40 = vpop.permute.xlu1 %1800 }
 0x1f6   : > { %1889 = vst.msk [vmem:[#allocation4 + $0x40] sm:$0xff] %vm1880_vm9, %v1801_v40  ;;  %2394 = vrot.lane.b32.xlu0 %v5336_v23, %s4616_s19  ;;  %v965_v61 = vld [vmem:[#allocation2 + $0xd8] sm:$0xff] }
 0x1f7   : > { %2199 = vrot.lane.b32.xlu1 %v5106_v1, %s4617_s23  ;;  %v997_v49 = vmax.f32 %v965_v61, 0.0  ;;  %v2318_v61 = vld [vmem:[#allocation3 + $0x109] sm:$0xff] }
 0x1f8   : > { %v2186_v56 = vpop.permute.xlu0 %2185  ;;  %v967_v4 = vld [vmem:[#allocation2 + $0xe8] sm:$0xff] }
 0x1f9   : > { %2275 = vst.msk [vmem:[#allocation4 + $0x38] sm:$0xff] %vm2267_vm11, %v2186_v56  ;;  %v2570_v60 = vpop.permute.xlu1 %2569  ;;  %v999_v6 = vmax.f32 %v967_v4, 0.0 }
 0x1fa   : > { %2468 = vst.msk [vmem:[#allocation4 + $0x38] sm:$0xff] %vm2460_vm12, %v2379_v52  ;;  %2201 = vrot.lane.b32.xlu0 %v5108_v2, %s4617_s23  ;;  %v966_v7 = vld [vmem:[#allocation2 + $0xe0] sm:$0xff] }
 0x1fb   : > { %2660 = vst.msk [vmem:[#allocation4 + $0x30] sm:$0xff] %vm2653_vm13, %v2570_v60  ;;  %2661 = vst.msk [vmem:[#allocation4 + $0x38] sm:$0xff] %vm2653_vm13, %v5325_v18  ;;  %1623 = vrot.lane.b32.xlu1 %v5106_v1, %s4613_s28  ;;  %v964_v1 = vld [vmem:[#allocation2 + $0xd0] sm:$0xff]  ;;  %v998_v45 = vmax.f32 %v966_v7, 0.0  ;;  %v1929_v18 = vld [vmem:[#allocation3 + $0xda] sm:$0xff] }
 0x1fc   : > { %v1610_v62 = vpop.permute.xlu0 %1609  ;;  %1072 = vst.msk [vmem:[#allocation3 + $0x159] sm:$0xff] %vm1002_vm2, %v997_v49  ;;  %v996_v50 = vmax.f32 %v964_v1, 0.0  ;;  %1074 = vst.msk [vmem:[#allocation3 + $0x171] sm:$0xff] %vm1002_vm2, %v999_v6  ;;  %v968_v59 = vld [vmem:[#allocation2 + $0xf0] sm:$0xff] }
 0x1fd   : > { %1697 = vst.msk [vmem:[#allocation4 + $0x48] sm:$0xff] %vm1687_vm8, %v1610_v62  ;;  %v1419_v63 = vpop.permute.xlu1 %1418  ;;  %v1000_v14 = vmax.f32 %v968_v59, 0.0  ;;  %v2512_v7 = vld [vmem:[#allocation3 + $0x112] sm:$0xff] }
 0x1fe   : > { %1890 = vst.msk [vmem:[#allocation4 + $0x48] sm:$0xff] %vm1880_vm9, %v5317_v9  ;;  %1625 = vrot.lane.b32.xlu0 %v5108_v2, %s4613_s28  ;;  %v969_v9 = vld [vmem:[#allocation2 + $0xf8] sm:$0xff] }
 0x1ff   : > { %2083 = vst.msk [vmem:[#allocation4 + $0x48] sm:$0xff] %vm2073_vm10, %v1996_v28  ;;  %2392 = vrot.lane.b32.xlu1 %v2314_v3, %s4616_s19  ;;  %v1001_v11 = vmax.f32 %v969_v9, 0.0 }
 0x200   : > { %v1226_v5 = vpop.permute.xlu0 %1225  ;;  %1071 = vst.msk [vmem:[#allocation3 + $0x151] sm:$0xff] %vm1002_vm2, %v996_v50  ;;  %1073 = vst.msk [vmem:[#allocation3 + $0x169] sm:$0xff] %vm1002_vm2, %v998_v45 }
 0x201   : > { %1312 = vst.msk [vmem:[#allocation4 + $0x50] sm:$0xff] %vm1301_vm5, %v1226_v5  ;;  %v5402_v8 = vpop.permute.xlu1 %1806 }
 0x202   : > { %v2692_v2 = vld [vmem:[#allocation4 + $0x30] sm:$0xff]  ;;  %1505 = vst.msk [vmem:[#allocation4 + $0x50] sm:$0xff] %vm1494_vm6, %v1419_v63  ;;  %1241 = vrot.lane.b32.xlu0 %v2314_v3, %s4610_s21  ;;  %v2693_v10 = vld [vmem:[#allocation4 + $0x38] sm:$0xff] }
 0x203   : > { %4448 = vmatprep.mubr.msk.f32.mxu1 %vm2727_vm14, %v2692_v2  ;;  %1816 = vrot.lane.b32.xlu1 %v2314_v3, %s4612_s27  ;;  %1076 = vst.msk [vmem:[#allocation3 + $0x189] sm:$0xff] %vm1002_vm2, %v1001_v11  ;;  %1075 = vst.msk [vmem:[#allocation3 + $0x181] sm:$0xff] %vm1002_vm2, %v1000_v14  ;;  %v2511_v3 = vld [vmem:[#allocation3 + $0x10a] sm:$0xff] }
 0x204   : > { %4449 = vmatmul.mubr.msk.f32.gmra.mrb[20].mxu1 %vm2727_vm14, %v2693_v10  ;;  %v1994_v15 = vpop.permute.xlu0 %1993 }
 0x205   : > { %2082 = vst.msk [vmem:[#allocation4 + $0x40] sm:$0xff] %vm2073_vm10, %v1994_v15  ;;  %v2576_v16 = vpop.permute.xlu1 %2575  ;;  %v2320_v15 = vld [vmem:[#allocation3 + $0x121] sm:$0xff] }
 0x206   : > { %2009 = vrot.lane.b32.xlu0 %v1929_v18, %s4614_s15 }
 0x207   : > { %2585 = vrot.lane.b32.xlu1 %v1929_v18, %s4615_s24  ;;  %v5425_v22 = vld [vmem:[#allocation3 + $0x150] sm:$0xff]  ;;  %v5427_v24 = vld [vmem:[#allocation3 + $0x158] sm:$0xff]  ;;  %v5473_v27 = vld [vmem:[#allocation3 + $0x168] sm:$0xff] }
 0x208   : > { %v2383_v19 = vpop.permute.xlu0 %2382  ;;  %1137 = vst.msk [vmem:[#allocation4 + $0xe0] sm:$0xff] %vm1002_vm2, %v5425_v22  ;;  %1138 = vst.msk [vmem:[#allocation4 + $0xe8] sm:$0xff] %vm1002_vm2, %v5427_v24  ;;  %v5475_v55 = vld [vmem:[#allocation3 + $0x170] sm:$0xff] }
 0x209   : > { %v2188_v20 = vpop.permute.xlu1 %2187  ;;  %1139 = vst.msk [vmem:[#allocation4 + $0xf0] sm:$0xff] %vm1002_vm2, %v5473_v27  ;;  %1140 = vst.msk [vmem:[#allocation4 + $0xf8] sm:$0xff] %vm1002_vm2, %v5475_v55 }
 0x20a   : > { %2276 = vst.msk [vmem:[#allocation4 + $0x40] sm:$0xff] %vm2267_vm11, %v2188_v20  ;;  %1243 = vrot.lane.b32.xlu0 %v5336_v23, %s4610_s21  ;;  %v2321_v20 = vld [vmem:[#allocation3 + $0x129] sm:$0xff] }
 0x20b   : > { %1434 = vrot.lane.b32.xlu1 %v1929_v18, %s4611_s22 }
 0x20c   : > { %v1232_v52 = vpop.permute.xlu0 %1231 }
 0x20d   : > { %1315 = vst.msk [vmem:[#allocation4 + $0x68] sm:$0xff] %vm1301_vm5, %v1232_v52  ;;  %v1612_v21 = vpop.permute.xlu1 %1611  ;;  %v2513_v52 = vld [vmem:[#allocation3 + $0x122] sm:$0xff] }
 0x20e   : > { %1698 = vst.msk [vmem:[#allocation4 + $0x50] sm:$0xff] %vm1687_vm8, %v1612_v21  ;;  %2011 = vrot.lane.b32.xlu0 %v5354_v26, %s4614_s15 }
 0x20f   : > { %2203 = vrot.lane.b32.xlu1 %v5156_v36, %s4617_s23 }
 0x210   : > { %v2000_v23 = vpop.permute.xlu0 %1999 }
 0x211   : > { %v2381_v46 = vpop.permute.xlu1 %2380 }
 0x212   : > { %2469 = vst.msk [vmem:[#allocation4 + $0x40] sm:$0xff] %vm2460_vm12, %v2381_v46  ;;  %1436 = vrot.lane.b32.xlu0 %v5354_v26, %s4611_s22 }
 0x213   : > { %1627 = vrot.lane.b32.xlu1 %v5156_v36, %s4613_s28 }
 0x214   : > { %v1425_v28 = vpop.permute.xlu0 %1424 }
 0x215   : > { %1508 = vst.msk [vmem:[#allocation4 + $0x68] sm:$0xff] %vm1494_vm6, %v1425_v28  ;;  %v1805_v29 = vpop.permute.xlu1 %1804 }
 0x216   : > { %1891 = vst.msk [vmem:[#allocation4 + $0x50] sm:$0xff] %vm1880_vm9, %v1805_v29  ;;  %2205 = vrot.lane.b32.xlu0 %v5158_v37, %s4617_s23 }
 0x217   : > { %2396 = vrot.lane.b32.xlu1 %v2316_v32, %s4616_s19 }
 0x218   : > { %v2190_v31 = vpop.permute.xlu0 %2189 }
 0x219   : > { %2277 = vst.msk [vmem:[#allocation4 + $0x48] sm:$0xff] %vm2267_vm11, %v2190_v31  ;;  %v2574_v33 = vpop.permute.xlu1 %2573 }
 0x21a   : > { %2470 = vst.msk [vmem:[#allocation4 + $0x48] sm:$0xff] %vm2460_vm12, %v2383_v19  ;;  %1629 = vrot.lane.b32.xlu0 %v5158_v37, %s4613_s28 }
 0x21b   : > { %2662 = vst.msk [vmem:[#allocation4 + $0x40] sm:$0xff] %vm2653_vm13, %v2574_v33  ;;  %2663 = vst.msk [vmem:[#allocation4 + $0x48] sm:$0xff] %vm2653_vm13, %v2576_v16  ;;  %1820 = vrot.lane.b32.xlu1 %v2316_v32, %s4612_s27 }
 0x21c   : > { %v1614_v36 = vpop.permute.xlu0 %1613 }
 0x21d   : > { %1699 = vst.msk [vmem:[#allocation4 + $0x58] sm:$0xff] %vm1687_vm8, %v1614_v36  ;;  %v1423_v26 = vpop.permute.xlu1 %1422 }
 0x21e   : > { %1892 = vst.msk [vmem:[#allocation4 + $0x58] sm:$0xff] %vm1880_vm9, %v5402_v8  ;;  %2398 = vrot.lane.b32.xlu0 %v2317_v34, %s4616_s19 }
 0x21f   : > { %2085 = vst.msk [vmem:[#allocation4 + $0x58] sm:$0xff] %vm2073_vm10, %v2000_v23  ;;  %2589 = vrot.lane.b32.xlu1 %v2509_v35, %s4615_s24 }
 0x220   : > { %v1230_v37 = vpop.permute.xlu0 %1229 }
 0x221   : > { %1314 = vst.msk [vmem:[#allocation4 + $0x60] sm:$0xff] %vm1301_vm5, %v1230_v37  ;;  %v1811_v53 = vpop.permute.xlu1 %1810 }
 0x222   : > { %v2694_v38 = vld [vmem:[#allocation4 + $0x40] sm:$0xff]  ;;  %1507 = vst.msk [vmem:[#allocation4 + $0x60] sm:$0xff] %vm1494_vm6, %v1423_v26  ;;  %1245 = vrot.lane.b32.xlu0 %v2316_v32, %s4610_s21  ;;  %v2695_v39 = vld [vmem:[#allocation4 + $0x48] sm:$0xff] }
 0x223   : > { %4451 = vmatprep.mubr.msk.f32.mxu1 %vm2727_vm14, %v2694_v38  ;;  %1822 = vrot.lane.b32.xlu1 %v2317_v34, %s4612_s27  ;;  %v2514_v32 = vld [vmem:[#allocation3 + $0x12a] sm:$0xff] }
 0x224   : > { %4452 = vmatmul.mubr.msk.f32.gmra.mrb[22].mxu1 %vm2727_vm14, %v2695_v39  ;;  %v1998_v40 = vpop.permute.xlu0 %1997 }
 0x225   : > { %2084 = vst.msk [vmem:[#allocation4 + $0x50] sm:$0xff] %vm2073_vm10, %v1998_v40  ;;  %v2580_v41 = vpop.permute.xlu1 %2579  ;;  %v5577_v40 = vld [vmem:[%s6524_s6] ss:$0 sm:$0xff] }
 0x226   : > { %2013 = vrot.lane.b32.xlu0 %v2509_v35, %s4614_s15 }
 0x227   : > { %2591 = vrot.lane.b32.xlu1 %v2510_v42, %s4615_s24 }
 0x228   : > { %v2387_v43 = vpop.permute.xlu0 %2386 }
 0x229   : > { %v2192_v44 = vpop.permute.xlu1 %2191 }
 0x22a   : > { %2278 = vst.msk [vmem:[#allocation4 + $0x50] sm:$0xff] %vm2267_vm11, %v2192_v44  ;;  %1247 = vrot.lane.b32.xlu0 %v2317_v34, %s4610_s21 }
 0x22b   : > { %1438 = vrot.lane.b32.xlu1 %v2509_v35, %s4611_s22 }
 0x22c   : > { %v1236_v47 = vpop.permute.xlu0 %1235 }
 0x22d   : > { %1317 = vst.msk [vmem:[#allocation4 + $0x78] sm:$0xff] %vm1301_vm5, %v1236_v47  ;;  %v1616_v48 = vpop.permute.xlu1 %1615 }
 0x22e   : > { %1700 = vst.msk [vmem:[#allocation4 + $0x60] sm:$0xff] %vm1687_vm8, %v1616_v48  ;;  %2015 = vrot.lane.b32.xlu0 %v2510_v42, %s4614_s15 }
 0x22f   : > { %2207 = vrot.lane.b32.xlu1 %v5213_v12, %s4617_s23 }
 0x230   : > { %v2004_v56 = vpop.permute.xlu0 %2003 }
 0x231   : > { %v2385_v57 = vpop.permute.xlu1 %2384 }
 0x232   : > { %2471 = vst.msk [vmem:[#allocation4 + $0x50] sm:$0xff] %vm2460_vm12, %v2385_v57  ;;  %1440 = vrot.lane.b32.xlu0 %v2510_v42, %s4611_s22 }
 0x233   : > { %1631 = vrot.lane.b32.xlu1 %v5213_v12, %s4613_s28 }
 0x234   : > { %v1429_v60 = vpop.permute.xlu0 %1428 }
 0x235   : > { %1510 = vst.msk [vmem:[#allocation4 + $0x78] sm:$0xff] %vm1494_vm6, %v1429_v60  ;;  %v1809_v58 = vpop.permute.xlu1 %1808 }
 0x236   : > { %1893 = vst.msk [vmem:[#allocation4 + $0x60] sm:$0xff] %vm1880_vm9, %v1809_v58  ;;  %2209 = vrot.lane.b32.xlu0 %v5215_v13, %s4617_s23 }
 0x237   : > { %2400 = vrot.lane.b32.xlu1 %v2318_v61, %s4616_s19 }
 0x238   : > { %v2194_v62 = vpop.permute.xlu0 %2193 }
 0x239   : > { %2279 = vst.msk [vmem:[#allocation4 + $0x58] sm:$0xff] %vm2267_vm11, %v2194_v62  ;;  %v2578_v49 = vpop.permute.xlu1 %2577  ;;  %v2323_v62 = vld [vmem:[#allocation3 + $0x141] sm:$0xff] }
 0x23a   : > { %2472 = vst.msk [vmem:[#allocation4 + $0x58] sm:$0xff] %vm2460_vm12, %v2387_v43  ;;  %1633 = vrot.lane.b32.xlu0 %v5215_v13, %s4613_s28 }
 0x23b   : > { %2664 = vst.msk [vmem:[#allocation4 + $0x50] sm:$0xff] %vm2653_vm13, %v2578_v49  ;;  %2665 = vst.msk [vmem:[#allocation4 + $0x58] sm:$0xff] %vm2653_vm13, %v2580_v41  ;;  %1824 = vrot.lane.b32.xlu1 %v2318_v61, %s4612_s27  ;;  %v2515_v49 = vld [vmem:[#allocation3 + $0x13a] sm:$0xff] }
 0x23c   : > { %v1618_v12 = vpop.permute.xlu0 %1617 }
 0x23d   : > { %1701 = vst.msk [vmem:[#allocation4 + $0x68] sm:$0xff] %vm1687_vm8, %v1618_v12  ;;  %v1427_v63 = vpop.permute.xlu1 %1426 }
 0x23e   : > { %1894 = vst.msk [vmem:[#allocation4 + $0x68] sm:$0xff] %vm1880_vm9, %v1811_v53  ;;  %2402 = vrot.lane.b32.xlu0 %v2319_v0, %s4616_s19  ;;  %v5570_v53 = vld [vmem:[%s6523_s5] ss:$0 sm:$0xff] }
 0x23f   : > { %2087 = vst.msk [vmem:[#allocation4 + $0x68] sm:$0xff] %vm2073_vm10, %v2004_v56  ;;  %2593 = vrot.lane.b32.xlu1 %v2511_v3, %s4615_s24 }
 0x240   : > { %v1234_v1 = vpop.permute.xlu0 %1233 }
 0x241   : > { %1316 = vst.msk [vmem:[#allocation4 + $0x70] sm:$0xff] %vm1301_vm5, %v1234_v1  ;;  %v1815_v13 = vpop.permute.xlu1 %1814 }
 0x242   : > { %v2696_v50 = vld [vmem:[#allocation4 + $0x50] sm:$0xff]  ;;  %1509 = vst.msk [vmem:[#allocation4 + $0x70] sm:$0xff] %vm1494_vm6, %v1427_v63  ;;  %1249 = vrot.lane.b32.xlu0 %v2318_v61, %s4610_s21  ;;  %v2697_v4 = vld [vmem:[#allocation4 + $0x58] sm:$0xff] }
 0x243   : > { %4454 = vmatprep.mubr.msk.f32.mxu1 %vm2727_vm14, %v2696_v50  ;;  %1826 = vrot.lane.b32.xlu1 %v2319_v0, %s4612_s27 }
 0x244   : > { %4455 = vmatmul.mubr.msk.f32.gmra.mrb[24].mxu1 %vm2727_vm14, %v2697_v4  ;;  %v2002_v5 = vpop.permute.xlu0 %2001 }
 0x245   : > { %2086 = vst.msk [vmem:[#allocation4 + $0x60] sm:$0xff] %vm2073_vm10, %v2002_v5  ;;  %v2584_v6 = vpop.permute.xlu1 %2583 }
 0x246   : > { %2017 = vrot.lane.b32.xlu0 %v2511_v3, %s4614_s15 }
 0x247   : > { %2595 = vrot.lane.b32.xlu1 %v2512_v7, %s4615_s24 }
 0x248   : > { %v2391_v8 = vpop.permute.xlu0 %2390 }
 0x249   : > { %v2196_v2 = vpop.permute.xlu1 %2195 }
 0x24a   : > { %2280 = vst.msk [vmem:[#allocation4 + $0x60] sm:$0xff] %vm2267_vm11, %v2196_v2  ;;  %1251 = vrot.lane.b32.xlu0 %v2319_v0, %s4610_s21 }
 0x24b   : > { %1442 = vrot.lane.b32.xlu1 %v2511_v3, %s4611_s22 }
 0x24c   : > { %v1240_v45 = vpop.permute.xlu0 %1239 }
 0x24d   : > { %1319 = vst.msk [vmem:[#allocation4 + $0x88] sm:$0xff] %vm1301_vm5, %v1240_v45  ;;  %v1620_v9 = vpop.permute.xlu1 %1619 }
 0x24e   : > { %1702 = vst.msk [vmem:[#allocation4 + $0x70] sm:$0xff] %vm1687_vm8, %v1620_v9  ;;  %2019 = vrot.lane.b32.xlu0 %v2512_v7, %s4614_s15 }
 0x24f   : > { %2211 = vrot.lane.b32.xlu1 %v5270_v51, %s4617_s23 }
 0x250   : > { %v2008_v10 = vpop.permute.xlu0 %2007 }
 0x251   : > { %v2389_v11 = vpop.permute.xlu1 %2388 }
 0x252   : > { %2473 = vst.msk [vmem:[#allocation4 + $0x60] sm:$0xff] %vm2460_vm12, %v2389_v11  ;;  %1444 = vrot.lane.b32.xlu0 %v2512_v7, %s4611_s22 }
 0x253   : > { %1635 = vrot.lane.b32.xlu1 %v5270_v51, %s4613_s28 }
 0x254   : > { %v1433_v59 = vpop.permute.xlu0 %1432 }
 0x255   : > { %1512 = vst.msk [vmem:[#allocation4 + $0x88] sm:$0xff] %vm1494_vm6, %v1433_v59  ;;  %v1813_v14 = vpop.permute.xlu1 %1812 }
 0x256   : > { %1895 = vst.msk [vmem:[#allocation4 + $0x70] sm:$0xff] %vm1880_vm9, %v1813_v14  ;;  %2213 = vrot.lane.b32.xlu0 %v5272_v54, %s4617_s23 }
 0x257   : > { %2404 = vrot.lane.b32.xlu1 %v2320_v15, %s4616_s19 }
 0x258   : > { %v2198_v16 = vpop.permute.xlu0 %2197 }
 0x259   : > { %2281 = vst.msk [vmem:[#allocation4 + $0x68] sm:$0xff] %vm2267_vm11, %v2198_v16  ;;  %v2582_v18 = vpop.permute.xlu1 %2581 }
 0x25a   : > { %2474 = vst.msk [vmem:[#allocation4 + $0x68] sm:$0xff] %vm2460_vm12, %v2391_v8  ;;  %1637 = vrot.lane.b32.xlu0 %v5272_v54, %s4613_s28 }
 0x25b   : > { %2666 = vst.msk [vmem:[#allocation4 + $0x60] sm:$0xff] %vm2653_vm13, %v2582_v18  ;;  %2667 = vst.msk [vmem:[#allocation4 + $0x68] sm:$0xff] %vm2653_vm13, %v2584_v6  ;;  %1828 = vrot.lane.b32.xlu1 %v2320_v15, %s4612_s27 }
 0x25c   : > { %v1622_v51 = vpop.permute.xlu0 %1621 }
 0x25d   : > { %1703 = vst.msk [vmem:[#allocation4 + $0x78] sm:$0xff] %vm1687_vm8, %v1622_v51  ;;  %v1431_v19 = vpop.permute.xlu1 %1430 }
 0x25e   : > { %1896 = vst.msk [vmem:[#allocation4 + $0x78] sm:$0xff] %vm1880_vm9, %v1815_v13  ;;  %2406 = vrot.lane.b32.xlu0 %v2321_v20, %s4616_s19  ;;  %v2516_v13 = vld [vmem:[#allocation3 + $0x142] sm:$0xff] }
 0x25f   : > { %2089 = vst.msk [vmem:[#allocation4 + $0x78] sm:$0xff] %vm2073_vm10, %v2008_v10  ;;  %2597 = vrot.lane.b32.xlu1 %v2513_v52, %s4615_s24  ;;  %v2324_v10 = vld [vmem:[#allocation3 + $0x151] sm:$0xff] }
 0x260   : > { %v1238_v21 = vpop.permute.xlu0 %1237 }
 0x261   : > { %1318 = vst.msk [vmem:[#allocation4 + $0x80] sm:$0xff] %vm1301_vm5, %v1238_v21  ;;  %v1819_v54 = vpop.permute.xlu1 %1818 }
 0x262   : > { %v2698_v23 = vld [vmem:[#allocation4 + $0x60] sm:$0xff]  ;;  %1511 = vst.msk [vmem:[#allocation4 + $0x80] sm:$0xff] %vm1494_vm6, %v1431_v19  ;;  %1253 = vrot.lane.b32.xlu0 %v2320_v15, %s4610_s21  ;;  %v2699_v46 = vld [vmem:[#allocation4 + $0x68] sm:$0xff] }
 0x263   : > { %4457 = vmatprep.mubr.msk.f32.mxu1 %vm2727_vm14, %v2698_v23  ;;  %1830 = vrot.lane.b32.xlu1 %v2321_v20, %s4612_s27  ;;  %v2517_v23 = vld [vmem:[#allocation3 + $0x152] sm:$0xff] }
 0x264   : > { %4458 = vmatmul.mubr.msk.f32.gmra.mrb[26].mxu1 %vm2727_vm14, %v2699_v46  ;;  %v2006_v28 = vpop.permute.xlu0 %2005 }
 0x265   : > { %2088 = vst.msk [vmem:[#allocation4 + $0x70] sm:$0xff] %vm2073_vm10, %v2006_v28  ;;  %v2588_v29 = vpop.permute.xlu1 %2587 }
 0x266   : > { %2021 = vrot.lane.b32.xlu0 %v2513_v52, %s4614_s15 }
 0x267   : > { %2599 = vrot.lane.b32.xlu1 %v2514_v32, %s4615_s24 }
 0x268   : > { %v2395_v31 = vpop.permute.xlu0 %2394 }
 0x269   : > { %v2200_v33 = vpop.permute.xlu1 %2199 }
 0x26a   : > { %2282 = vst.msk [vmem:[#allocation4 + $0x70] sm:$0xff] %vm2267_vm11, %v2200_v33  ;;  %1255 = vrot.lane.b32.xlu0 %v2321_v20, %s4610_s21 }
 0x26b   : > { %1446 = vrot.lane.b32.xlu1 %v2513_v52, %s4611_s22 }
 0x26c   : > { %v2202_v36 = vpop.permute.xlu0 %2201 }
 0x26d   : > { %2283 = vst.msk [vmem:[#allocation4 + $0x78] sm:$0xff] %vm2267_vm11, %v2202_v36  ;;  %v1624_v26 = vpop.permute.xlu1 %1623 }
 0x26e   : > { %2476 = vst.msk [vmem:[#allocation4 + $0x78] sm:$0xff] %vm2460_vm12, %v2395_v31  ;;  %2023 = vrot.lane.b32.xlu0 %v2514_v32, %s4614_s15  ;;  %v2518_v31 = vld [vmem:[#allocation3 + $0x15a] sm:$0xff] }
 0x26f   : > { %1704 = vst.msk [vmem:[#allocation4 + $0x80] sm:$0xff] %vm1687_vm8, %v1624_v26  ;;  %2215 = vrot.lane.b32.xlu1 %v5341_v25, %s4617_s23 }
 0x270   : > { %2669 = vst.msk [vmem:[#allocation4 + $0x78] sm:$0xff] %vm2653_vm13, %v2588_v29  ;;  %v1626_v34 = vpop.permute.xlu0 %1625 }
 0x271   : > { %1705 = vst.msk [vmem:[#allocation4 + $0x88] sm:$0xff] %vm1687_vm8, %v1626_v34  ;;  %v2393_v35 = vpop.permute.xlu1 %2392 }
 0x272   : > { %1898 = vst.msk [vmem:[#allocation4 + $0x88] sm:$0xff] %vm1880_vm9, %v1819_v54  ;;  %1448 = vrot.lane.b32.xlu0 %v2514_v32, %s4611_s22  ;;  %v2325_v54 = vld [vmem:[#allocation3 + $0x159] sm:$0xff] }
 0x273   : > { %2475 = vst.msk [vmem:[#allocation4 + $0x70] sm:$0xff] %vm2460_vm12, %v2393_v35  ;;  %1639 = vrot.lane.b32.xlu1 %v5341_v25, %s4613_s28  ;;  %v2322_v25 = vld [vmem:[#allocation3 + $0x139] sm:$0xff] }
 0x274   : > { %v1242_v37 = vpop.permute.xlu0 %1241 }
 0x275   : > { %1320 = vst.msk [vmem:[#allocation4 + $0x90] sm:$0xff] %vm1301_vm5, %v1242_v37  ;;  %v1817_v38 = vpop.permute.xlu1 %1816 }
 0x276   : > { %1897 = vst.msk [vmem:[#allocation4 + $0x80] sm:$0xff] %vm1880_vm9, %v1817_v38  ;;  %2217 = vrot.lane.b32.xlu0 %v5343_v30, %s4617_s23 }
 0x277   : > { %v4441_v39 = vpop.f32.mrb[14].mxu1  ;;  %2408 = vrot.lane.b32.xlu1 %v2322_v25, %s4616_s19  ;;  %v2701_v0 = vld [vmem:[#allocation4 + $0x78] sm:$0xff] }
 0x278   : > { %v3057_v41 = vmul.f32 %v4441_v39, %v5570_v53  ;;  %v2890_v42 = vpop.f32.mrb[15].mxu1  ;;  %v2010_v44 = vpop.permute.xlu0 %2009 }
 0x279   : > { %v3056_v43 = vmul.f32 %v5570_v53, %v2890_v42  ;;  %2090 = vst.msk [vmem:[#allocation4 + $0x80] sm:$0xff] %vm2073_vm10, %v2010_v44  ;;  %v2586_v48 = vpop.permute.xlu1 %2585 }
 0x27a   : > { %v3096_v47 = vadd.f32 %v5577_v40, %v3057_v41  ;;  %2668 = vst.msk [vmem:[#allocation4 + $0x70] sm:$0xff] %vm2653_vm13, %v2586_v48  ;;  %1641 = vrot.lane.b32.xlu0 %v5343_v30, %s4613_s28  ;;  %v2326_v41 = vld [vmem:[#allocation3 + $0x169] sm:$0xff] }
 0x27b   : > { %v3095_v56 = vadd.f32 %v5577_v40, %v3056_v43  ;;  %1832 = vrot.lane.b32.xlu1 %v2322_v25, %s4612_s27 }
 0x27c   : > { %v1244_v60 = vpop.permute.xlu0 %1243  ;;  %v3128_v58 = vmax.f32 %v3096_v47, 0.0 }
 0x27d   : > { %v3127_v57 = vmax.f32 %v3095_v56, 0.0  ;;  %1321 = vst.msk [vmem:[#allocation4 + $0x98] sm:$0xff] %vm1301_vm5, %v1244_v60  ;;  %v1435_v61 = vpop.permute.xlu1 %1434 }
 0x27e   : > { %1513 = vst.msk [vmem:[#allocation4 + $0x90] sm:$0xff] %vm1494_vm6, %v1435_v61  ;;  %2410 = vrot.lane.b32.xlu0 %v2323_v62, %s4616_s19 }
 0x27f   : > { %4489 = vmatprep.mubr.msk.f32.mxu0 %vm1002_vm2, %v3127_v57  ;;  %2601 = vrot.lane.b32.xlu1 %v2515_v49, %s4615_s24 }
 0x280   : > { %4490 = vmatmul.mubr.msk.f32.vlgmr.msra.gmra.mrb[18].mxu0 %vm1002_vm2, %v3128_v58  ;;  %v2012_v30 = vpop.permute.xlu0 %2011 }
 0x281   : > { %2091 = vst.msk [vmem:[#allocation4 + $0x88] sm:$0xff] %vm2073_vm10, %v2012_v30  ;;  %v2204_v12 = vpop.permute.xlu1 %2203  ;;  %v2700_v63 = vld [vmem:[#allocation4 + $0x70] sm:$0xff]  ;;  %v2519_v30 = vld [vmem:[#allocation3 + $0x16a] sm:$0xff] }
 0x282   : > { %2284 = vst.msk [vmem:[#allocation4 + $0x80] sm:$0xff] %vm2267_vm11, %v2204_v12  ;;  %4460 = vmatprep.mubr.msk.f32.mxu1 %vm2727_vm14, %v2700_v63  ;;  %1257 = vrot.lane.b32.xlu0 %v2322_v25, %s4610_s21 }
 0x283   : > { %4461 = vmatmul.mubr.msk.f32.gmra.mrb[28].mxu1 %vm2727_vm14, %v2701_v0  ;;  %1834 = vrot.lane.b32.xlu1 %v2323_v62, %s4612_s27 }
 0x284   : > { %v1437_v3 = vpop.permute.xlu0 %1436 }
 0x285   : > { %1514 = vst.msk [vmem:[#allocation4 + $0x98] sm:$0xff] %vm1494_vm6, %v1437_v3  ;;  %v1628_v1 = vpop.permute.xlu1 %1627 }
 0x286   : > { %1706 = vst.msk [vmem:[#allocation4 + $0x90] sm:$0xff] %vm1687_vm8, %v1628_v1  ;;  %2025 = vrot.lane.b32.xlu0 %v2515_v49, %s4614_s15  ;;  %v2520_v1 = vld [vmem:[#allocation3 + $0x172] sm:$0xff] }
 0x287   : > { %2603 = vrot.lane.b32.xlu1 %v2516_v13, %s4615_s24 }
 0x288   : > { %v2206_v50 = vpop.permute.xlu0 %2205 }
 0x289   : > { %2285 = vst.msk [vmem:[#allocation4 + $0x88] sm:$0xff] %vm2267_vm11, %v2206_v50  ;;  %v2397_v4 = vpop.permute.xlu1 %2396 }
 0x28a   : > { %2477 = vst.msk [vmem:[#allocation4 + $0x80] sm:$0xff] %vm2460_vm12, %v2397_v4  ;;  %1259 = vrot.lane.b32.xlu0 %v2323_v62, %s4610_s21 }
 0x28b   : > { %1450 = vrot.lane.b32.xlu1 %v2515_v49, %s4611_s22  ;;  %v2327_v49 = vld [vmem:[#allocation3 + $0x171] sm:$0xff] }
 0x28c   : > { %v1630_v5 = vpop.permute.xlu0 %1629 }
 0x28d   : > { %1707 = vst.msk [vmem:[#allocation4 + $0x98] sm:$0xff] %vm1687_vm8, %v1630_v5  ;;  %v1821_v6 = vpop.permute.xlu1 %1820  ;;  %v2135_v5 = vld [vmem:[#allocation3 + $0x180] sm:$0xff] }
 0x28e   : > { %1899 = vst.msk [vmem:[#allocation4 + $0x90] sm:$0xff] %vm1880_vm9, %v1821_v6  ;;  %2027 = vrot.lane.b32.xlu0 %v2516_v13, %s4614_s15 }
 0x28f   : > { %2219 = vrot.lane.b32.xlu1 %v5425_v22, %s4617_s23 }
 0x290   : > { %v2399_v7 = vpop.permute.xlu0 %2398 }
 0x291   : > { %2478 = vst.msk [vmem:[#allocation4 + $0x88] sm:$0xff] %vm2460_vm12, %v2399_v7  ;;  %v2590_v8 = vpop.permute.xlu1 %2589 }
 0x292   : > { %2670 = vst.msk [vmem:[#allocation4 + $0x80] sm:$0xff] %vm2653_vm13, %v2590_v8  ;;  %1452 = vrot.lane.b32.xlu0 %v2516_v13, %s4611_s22 }
 0x293   : > { %1643 = vrot.lane.b32.xlu1 %v5425_v22, %s4613_s28 }
 0x294   : > { %v1246_v2 = vpop.permute.xlu0 %1245 }
 0x295   : > { %1322 = vst.msk [vmem:[#allocation4 + $0xa0] sm:$0xff] %vm1301_vm5, %v1246_v2  ;;  %v1823_v45 = vpop.permute.xlu1 %1822 }
 0x296   : > { %1900 = vst.msk [vmem:[#allocation4 + $0x98] sm:$0xff] %vm1880_vm9, %v1823_v45  ;;  %2221 = vrot.lane.b32.xlu0 %v5427_v24, %s4617_s23 }
 0x297   : > { %v4444_v9 = vpop.f32.mrb[16].mxu1  ;;  %2412 = vrot.lane.b32.xlu1 %v2324_v10, %s4616_s19 }
 0x298   : > { %v3059_v11 = vmul.f32 %v4444_v9, %v5570_v53  ;;  %v2900_v59 = vpop.f32.mrb[17].mxu1  ;;  %v2014_v15 = vpop.permute.xlu0 %2013  ;;  %v2136_v9 = vld [vmem:[#allocation3 + $0x188] sm:$0xff] }
 0x299   : > { %v3058_v14 = vmul.f32 %v5570_v53, %v2900_v59  ;;  %2092 = vst.msk [vmem:[#allocation4 + $0x90] sm:$0xff] %vm2073_vm10, %v2014_v15  ;;  %v2592_v16 = vpop.permute.xlu1 %2591  ;;  %v2702_v18 = vld [vmem:[#allocation4 + $0x80] sm:$0xff] }
 0x29a   : > { %v3098_v22 = vadd.f32 %v5577_v40, %v3059_v11  ;;  %2671 = vst.msk [vmem:[#allocation4 + $0x88] sm:$0xff] %vm2653_vm13, %v2592_v16  ;;  %1645 = vrot.lane.b32.xlu0 %v5427_v24, %s4613_s28  ;;  %4463 = vmatprep.mubr.msk.f32.mxu1 %vm2727_vm14, %v2702_v18  ;;  %v2328_v11 = vld [vmem:[#allocation3 + $0x181] sm:$0xff] }
 0x29b   : > { %v3097_v51 = vadd.f32 %v5577_v40, %v3058_v14  ;;  %1836 = vrot.lane.b32.xlu1 %v2324_v10, %s4612_s27 }
 0x29c   : > { %v1248_v20 = vpop.permute.xlu0 %1247  ;;  %v3130_v52 = vmax.f32 %v3098_v22, 0.0 }
 0x29d   : > { %v3129_v19 = vmax.f32 %v3097_v51, 0.0  ;;  %1323 = vst.msk [vmem:[#allocation4 + $0xa8] sm:$0xff] %vm1301_vm5, %v1248_v20  ;;  %v1439_v21 = vpop.permute.xlu1 %1438 }
 0x29e   : > { %1515 = vst.msk [vmem:[#allocation4 + $0xa0] sm:$0xff] %vm1494_vm6, %v1439_v21  ;;  %2414 = vrot.lane.b32.xlu0 %v2325_v54, %s4616_s19 }
 0x29f   : > { %4492 = vmatprep.mubr.msk.f32.mxu0 %vm1002_vm2, %v3129_v19  ;;  %2605 = vrot.lane.b32.xlu1 %v2517_v23, %s4615_s24 }
 0x2a0   : > { %4493 = vmatmul.mubr.msk.f32.gmra.mrb[20].mxu0 %vm1002_vm2, %v3130_v52  ;;  %v2016_v24 = vpop.permute.xlu0 %2015 }
 0x2a1   : > { %2093 = vst.msk [vmem:[#allocation4 + $0x98] sm:$0xff] %vm2073_vm10, %v2016_v24  ;;  %v2208_v46 = vpop.permute.xlu1 %2207  ;;  %v2703_v28 = vld [vmem:[#allocation4 + $0x88] sm:$0xff]  ;;  %v2521_v24 = vld [vmem:[#allocation3 + $0x182] sm:$0xff] }
 0x2a2   : > { %2286 = vst.msk [vmem:[#allocation4 + $0x90] sm:$0xff] %vm2267_vm11, %v2208_v46  ;;  %1261 = vrot.lane.b32.xlu0 %v2324_v10, %s4610_s21  ;;  %4464 = vmatmul.mubr.msk.f32.gmra.mrb[30].mxu1 %vm2727_vm14, %v2703_v28 }
 0x2a3   : > { %1838 = vrot.lane.b32.xlu1 %v2325_v54, %s4612_s27 }
 0x2a4   : > { %v1441_v29 = vpop.permute.xlu0 %1440 }
 0x2a5   : > { %1516 = vst.msk [vmem:[#allocation4 + $0xa8] sm:$0xff] %vm1494_vm6, %v1441_v29  ;;  %v1632_v32 = vpop.permute.xlu1 %1631 }
 0x2a6   : > { %1708 = vst.msk [vmem:[#allocation4 + $0xa0] sm:$0xff] %vm1687_vm8, %v1632_v32  ;;  %2029 = vrot.lane.b32.xlu0 %v2517_v23, %s4614_s15 }
 0x2a7   : > { %2607 = vrot.lane.b32.xlu1 %v2518_v31, %s4615_s24 }
 0x2a8   : > { %v2210_v33 = vpop.permute.xlu0 %2209 }
 0x2a9   : > { %2287 = vst.msk [vmem:[#allocation4 + $0x98] sm:$0xff] %vm2267_vm11, %v2210_v33  ;;  %v2401_v36 = vpop.permute.xlu1 %2400  ;;  %v2522_v33 = vld [vmem:[#allocation3 + $0x18a] sm:$0xff] }
 0x2aa   : > { %2479 = vst.msk [vmem:[#allocation4 + $0x90] sm:$0xff] %vm2460_vm12, %v2401_v36  ;;  %1263 = vrot.lane.b32.xlu0 %v2325_v54, %s4610_s21  ;;  %v2137_v36 = vld [vmem:[#allocation3 + $0x198] sm:$0xff] }
 0x2ab   : > { %1454 = vrot.lane.b32.xlu1 %v2517_v23, %s4611_s22  ;;  %v2329_v23 = vld [vmem:[#allocation3 + $0x189] sm:$0xff] }
 0x2ac   : > { %v1634_v26 = vpop.permute.xlu0 %1633 }
 0x2ad   : > { %1709 = vst.msk [vmem:[#allocation4 + $0xa8] sm:$0xff] %vm1687_vm8, %v1634_v26  ;;  %v1825_v34 = vpop.permute.xlu1 %1824 }
 0x2ae   : > { %1901 = vst.msk [vmem:[#allocation4 + $0xa0] sm:$0xff] %vm1880_vm9, %v1825_v34  ;;  %2031 = vrot.lane.b32.xlu0 %v2518_v31, %s4614_s15  ;;  %v2138_v34 = vld [vmem:[#allocation3 + $0x1a0] sm:$0xff] }
 0x2af   : > { %2223 = vrot.lane.b32.xlu1 %v5473_v27, %s4617_s23 }
 0x2b0   : > { %v2403_v35 = vpop.permute.xlu0 %2402 }
 0x2b1   : > { %2480 = vst.msk [vmem:[#allocation4 + $0x98] sm:$0xff] %vm2460_vm12, %v2403_v35  ;;  %v2594_v37 = vpop.permute.xlu1 %2593 }
 0x2b2   : > { %2672 = vst.msk [vmem:[#allocation4 + $0x90] sm:$0xff] %vm2653_vm13, %v2594_v37  ;;  %1456 = vrot.lane.b32.xlu0 %v2518_v31, %s4611_s22  ;;  %v2330_v37 = vld [vmem:[#allocation3 + $0x199] sm:$0xff] }
 0x2b3   : > { %1647 = vrot.lane.b32.xlu1 %v5473_v27, %s4613_s28 }
 0x2b4   : > { %v1250_v38 = vpop.permute.xlu0 %1249 }
 0x2b5   : > { %1324 = vst.msk [vmem:[#allocation4 + $0xb0] sm:$0xff] %vm1301_vm5, %v1250_v38  ;;  %v1827_v39 = vpop.permute.xlu1 %1826 }
 0x2b6   : > { %1902 = vst.msk [vmem:[#allocation4 + $0xa8] sm:$0xff] %vm1880_vm9, %v1827_v39  ;;  %2225 = vrot.lane.b32.xlu0 %v5475_v55, %s4617_s23  ;;  %v2331_v39 = vld [vmem:[#allocation3 + $0x1a1] sm:$0xff] }
 0x2b7   : > { %v4447_v25 = vpop.f32.mrb[18].mxu1  ;;  %2416 = vrot.lane.b32.xlu1 %v2326_v41, %s4616_s19 }
 0x2b8   : > { %v3061_v42 = vmul.f32 %v4447_v25, %v5570_v53  ;;  %v2910_v43 = vpop.f32.mrb[19].mxu1  ;;  %v2018_v47 = vpop.permute.xlu0 %2017 }
 0x2b9   : > { %v3060_v44 = vmul.f32 %v5570_v53, %v2910_v43  ;;  %2094 = vst.msk [vmem:[#allocation4 + $0xa0] sm:$0xff] %vm2073_vm10, %v2018_v47  ;;  %v2596_v48 = vpop.permute.xlu1 %2595  ;;  %v2704_v56 = vld [vmem:[#allocation4 + $0x90] sm:$0xff] }
 0x2ba   : > { %v3100_v27 = vadd.f32 %v5577_v40, %v3061_v42  ;;  %2673 = vst.msk [vmem:[#allocation4 + $0x98] sm:$0xff] %vm2653_vm13, %v2596_v48  ;;  %1649 = vrot.lane.b32.xlu0 %v5475_v55, %s4613_s28  ;;  %4466 = vmatprep.mubr.msk.f32.mxu1 %vm2727_vm14, %v2704_v56  ;;  %v2524_v43 = vld [vmem:[#allocation3 + $0x1a2] sm:$0xff] }
 0x2bb   : > { %v3099_v57 = vadd.f32 %v5577_v40, %v3060_v44  ;;  %1840 = vrot.lane.b32.xlu1 %v2326_v41, %s4612_s27  ;;  %v3824_v48 = vld [vmem:[#allocation2] sm:$0xff] }
 0x2bc   : > { %v1252_v58 = vpop.permute.xlu0 %1251  ;;  %v3132_v61 = vmax.f32 %v3100_v27, 0.0 }
 0x2bd   : > { %v3131_v60 = vmax.f32 %v3099_v57, 0.0  ;;  %1325 = vst.msk [vmem:[#allocation4 + $0xb8] sm:$0xff] %vm1301_vm5, %v1252_v58  ;;  %v1443_v62 = vpop.permute.xlu1 %1442  ;;  %v3825_v57 = vld [vmem:[#allocation2 + $0x8] sm:$0xff] }
 0x2be   : > { %1517 = vst.msk [vmem:[#allocation4 + $0xb0] sm:$0xff] %vm1494_vm6, %v1443_v62  ;;  %2418 = vrot.lane.b32.xlu0 %v2327_v49, %s4616_s19 }
 0x2bf   : > { %4495 = vmatprep.mubr.msk.f32.mxu0 %vm1002_vm2, %v3131_v60  ;;  %2609 = vrot.lane.b32.xlu1 %v2519_v30, %s4615_s24 }
 0x2c0   : > { %4496 = vmatmul.mubr.msk.f32.gmra.mrb[22].mxu0 %vm1002_vm2, %v3132_v61  ;;  %v2020_v55 = vpop.permute.xlu0 %2019 }
 0x2c1   : > { %2095 = vst.msk [vmem:[#allocation4 + $0xa8] sm:$0xff] %vm2073_vm10, %v2020_v55  ;;  %v2212_v12 = vpop.permute.xlu1 %2211  ;;  %v2705_v63 = vld [vmem:[#allocation4 + $0x98] sm:$0xff]  ;;  %v3826_v55 = vld [vmem:[#allocation2 + $0x10] sm:$0xff] }
 0x2c2   : > { %2288 = vst.msk [vmem:[#allocation4 + $0xa0] sm:$0xff] %vm2267_vm11, %v2212_v12  ;;  %1265 = vrot.lane.b32.xlu0 %v2326_v41, %s4610_s21  ;;  %4467 = vmatmul.mubr.msk.f32.gmra.mrb[32].mxu1 %vm2727_vm14, %v2705_v63  ;;  %v2523_v41 = vld [vmem:[#allocation3 + $0x19a] sm:$0xff] }
 0x2c3   : > { %1842 = vrot.lane.b32.xlu1 %v2327_v49, %s4612_s27 }
 0x2c4   : > { %v1445_v0 = vpop.permute.xlu0 %1444 }
 0x2c5   : > { %1518 = vst.msk [vmem:[#allocation4 + $0xb8] sm:$0xff] %vm1494_vm6, %v1445_v0  ;;  %v1636_v3 = vpop.permute.xlu1 %1635  ;;  %v3827_v0 = vld [vmem:[#allocation2 + $0x18] sm:$0xff] }
 0x2c6   : > { %1710 = vst.msk [vmem:[#allocation4 + $0xb0] sm:$0xff] %vm1687_vm8, %v1636_v3  ;;  %2033 = vrot.lane.b32.xlu0 %v2519_v30, %s4614_s15 }
 0x2c7   : > { %2611 = vrot.lane.b32.xlu1 %v2520_v1, %s4615_s24 }
 0x2c8   : > { %v2214_v13 = vpop.permute.xlu0 %2213 }
 0x2c9   : > { %2289 = vst.msk [vmem:[#allocation4 + $0xa8] sm:$0xff] %vm2267_vm11, %v2214_v13  ;;  %v2405_v50 = vpop.permute.xlu1 %2404 }
 0x2ca   : > { %2481 = vst.msk [vmem:[#allocation4 + $0xa0] sm:$0xff] %vm2460_vm12, %v2405_v50  ;;  %1267 = vrot.lane.b32.xlu0 %v2327_v49, %s4610_s21  ;;  %s4618_s21 = smov 120  }
 0x2cb   : > { %1458 = vrot.lane.b32.xlu1 %v2519_v30, %s4611_s22 }
 0x2cc   : > { %v1638_v4 = vpop.permute.xlu0 %1637 }
 0x2cd   : > { %1711 = vst.msk [vmem:[#allocation4 + $0xb8] sm:$0xff] %vm1687_vm8, %v1638_v4  ;;  %v1829_v6 = vpop.permute.xlu1 %1828  ;;  %v3828_v4 = vld [vmem:[#allocation2 + $0x20] sm:$0xff] }
 0x2ce   : > { %1903 = vst.msk [vmem:[#allocation4 + $0xb0] sm:$0xff] %vm1880_vm9, %v1829_v6  ;;  %2035 = vrot.lane.b32.xlu0 %v2520_v1, %s4614_s15 }
 0x2cf   : > { %2227 = vrot.lane.b32.xlu1 %v2135_v5, %s4617_s23 }
 0x2d0   : > { %v2407_v7 = vpop.permute.xlu0 %2406 }
 0x2d1   : > { %2482 = vst.msk [vmem:[#allocation4 + $0xa8] sm:$0xff] %vm2460_vm12, %v2407_v7  ;;  %v2598_v8 = vpop.permute.xlu1 %2597 }
 0x2d2   : > { %2674 = vst.msk [vmem:[#allocation4 + $0xa0] sm:$0xff] %vm2653_vm13, %v2598_v8  ;;  %1460 = vrot.lane.b32.xlu0 %v2520_v1, %s4611_s22  ;;  %v3830_v8 = vld [vmem:[#allocation2 + $0x30] sm:$0xff] }
 0x2d3   : > { %1651 = vrot.lane.b32.xlu1 %v2135_v5, %s4613_s28  ;;  %v3829_v5 = vld [vmem:[#allocation2 + $0x28] sm:$0xff] }
 0x2d4   : > { %v1254_v2 = vpop.permute.xlu0 %1253 }
 0x2d5   : > { %1326 = vst.msk [vmem:[#allocation4 + $0xc0] sm:$0xff] %vm1301_vm5, %v1254_v2  ;;  %v1831_v45 = vpop.permute.xlu1 %1830 }
 0x2d6   : > { %1904 = vst.msk [vmem:[#allocation4 + $0xb8] sm:$0xff] %vm1880_vm9, %v1831_v45  ;;  %2229 = vrot.lane.b32.xlu0 %v2136_v9, %s4617_s23  ;;  %v3831_v45 = vld [vmem:[#allocation2 + $0x38] sm:$0xff] }
 0x2d7   : > { %v4450_v10 = vpop.f32.mrb[20].mxu1  ;;  %2420 = vrot.lane.b32.xlu1 %v2328_v11, %s4616_s19 }
 0x2d8   : > { %v3063_v59 = vmul.f32 %v4450_v10, %v5570_v53  ;;  %v2920_v14 = vpop.f32.mrb[21].mxu1  ;;  %v2022_v22 = vpop.permute.xlu0 %2021 }
 0x2d9   : > { %v3062_v15 = vmul.f32 %v5570_v53, %v2920_v14  ;;  %2096 = vst.msk [vmem:[#allocation4 + $0xb0] sm:$0xff] %vm2073_vm10, %v2022_v22  ;;  %v2600_v18 = vpop.permute.xlu1 %2599  ;;  %v2706_v51 = vld [vmem:[#allocation4 + $0xa0] sm:$0xff] }
 0x2da   : > { %v3102_v16 = vadd.f32 %v5577_v40, %v3063_v59  ;;  %2675 = vst.msk [vmem:[#allocation4 + $0xa8] sm:$0xff] %vm2653_vm13, %v2600_v18  ;;  %1653 = vrot.lane.b32.xlu0 %v2136_v9, %s4613_s28  ;;  %4469 = vmatprep.mubr.msk.f32.mxu1 %vm2727_vm14, %v2706_v51  ;;  %v3833_v59 = vld [vmem:[#allocation2 + $0x48] sm:$0xff]  ;;  %v3834_v22 = vld [vmem:[#allocation2 + $0x50] sm:$0xff] }
 0x2db   : > { %v3101_v19 = vadd.f32 %v5577_v40, %v3062_v15  ;;  %1844 = vrot.lane.b32.xlu1 %v2328_v11, %s4612_s27  ;;  %v3832_v11 = vld [vmem:[#allocation2 + $0x40] sm:$0xff] }
 0x2dc   : > { %v1256_v52 = vpop.permute.xlu0 %1255  ;;  %v3134_v21 = vmax.f32 %v3102_v16, 0.0  ;;  %v3835_v16 = vld [vmem:[#allocation2 + $0x58] sm:$0xff] }
 0x2dd   : > { %v3133_v20 = vmax.f32 %v3101_v19, 0.0  ;;  %1327 = vst.msk [vmem:[#allocation4 + $0xc8] sm:$0xff] %vm1301_vm5, %v1256_v52  ;;  %v1447_v54 = vpop.permute.xlu1 %1446  ;;  %v3836_v19 = vld [vmem:[#allocation2 + $0x60] sm:$0xff] }
 0x2de   : > { %1519 = vst.msk [vmem:[#allocation4 + $0xc0] sm:$0xff] %vm1494_vm6, %v1447_v54  ;;  %2422 = vrot.lane.b32.xlu0 %v2329_v23, %s4616_s19  ;;  %v3838_v54 = vld [vmem:[#allocation2 + $0x70] sm:$0xff] }
 0x2df   : > { %4498 = vmatprep.mubr.msk.f32.mxu0 %vm1002_vm2, %v3133_v20  ;;  %2613 = vrot.lane.b32.xlu1 %v2521_v24, %s4615_s24  ;;  %v3837_v20 = vld [vmem:[#allocation2 + $0x68] sm:$0xff] }
 0x2e0   : > { %4499 = vmatmul.mubr.msk.f32.gmra.mrb[24].mxu0 %vm1002_vm2, %v3134_v21  ;;  %v2024_v46 = vpop.permute.xlu0 %2023 }
 0x2e1   : > { %2097 = vst.msk [vmem:[#allocation4 + $0xb8] sm:$0xff] %vm2073_vm10, %v2024_v46  ;;  %v2216_v28 = vpop.permute.xlu1 %2215  ;;  %v2707_v29 = vld [vmem:[#allocation4 + $0xa8] sm:$0xff] }
 0x2e2   : > { %2290 = vst.msk [vmem:[#allocation4 + $0xb0] sm:$0xff] %vm2267_vm11, %v2216_v28  ;;  %1846 = vrot.lane.b32.xlu0 %v2329_v23, %s4612_s27  ;;  %4470 = vmatmul.mubr.msk.f32.gmra.mrb[34].mxu1 %vm2727_vm14, %v2707_v29  ;;  %v3839_v23 = vld [vmem:[#allocation2 + $0x78] sm:$0xff]  ;;  %v3840_v28 = vld [vmem:[#allocation2 + $0x80] sm:$0xff] }
 0x2e3   : > { %2037 = vrot.lane.b32.xlu1 %v2521_v24, %s4614_s15 }
 0x2e4   : > { %v1449_v32 = vpop.permute.xlu0 %1448 }
 0x2e5   : > { %1520 = vst.msk [vmem:[#allocation4 + $0xc8] sm:$0xff] %vm1494_vm6, %v1449_v32  ;;  %v1640_v31 = vpop.permute.xlu1 %1639  ;;  %v3841_v32 = vld [vmem:[#allocation2 + $0x88] sm:$0xff] }
 0x2e6   : > { %1712 = vst.msk [vmem:[#allocation4 + $0xc0] sm:$0xff] %vm1687_vm8, %v1640_v31  ;;  %2615 = vrot.lane.b32.xlu0 %v2522_v33, %s4615_s24 }
 0x2e7   : > { %2039 = vrot.lane.b32.xlu1 %v2522_v33, %s4614_s15 }
 0x2e8   : > { %v2218_v26 = vpop.permute.xlu0 %2217 }
 0x2e9   : > { %2291 = vst.msk [vmem:[#allocation4 + $0xb8] sm:$0xff] %vm2267_vm11, %v2218_v26  ;;  %v2409_v35 = vpop.permute.xlu1 %2408 }
 0x2ea   : > { %2483 = vst.msk [vmem:[#allocation4 + $0xb0] sm:$0xff] %vm2460_vm12, %v2409_v35  ;;  %2231 = vrot.lane.b32.xlu0 %v2137_v36, %s4617_s23 }
 0x2eb   : > { %2233 = vrot.lane.b32.xlu1 %v2138_v34, %s4617_s23 }
 0x2ec   : > { %v1642_v38 = vpop.permute.xlu0 %1641 }
 0x2ed   : > { %1713 = vst.msk [vmem:[#allocation4 + $0xc8] sm:$0xff] %vm1687_vm8, %v1642_v38  ;;  %v1833_v25 = vpop.permute.xlu1 %1832 }
 0x2ee   : > { %1905 = vst.msk [vmem:[#allocation4 + $0xc0] sm:$0xff] %vm1880_vm9, %v1833_v25  ;;  %2424 = vrot.lane.b32.xlu0 %v2330_v37, %s4616_s19  ;;  %v3842_v37 = vld [vmem:[#allocation2 + $0x90] sm:$0xff]  ;;  %v3843_v25 = vld [vmem:[#allocation2 + $0x98] sm:$0xff] }
 0x2ef   : > { %2426 = vrot.lane.b32.xlu1 %v2331_v39, %s4616_s19 }
 0x2f0   : > { %v2411_v42 = vpop.permute.xlu0 %2410 }
 0x2f1   : > { %2484 = vst.msk [vmem:[#allocation4 + $0xb8] sm:$0xff] %vm2460_vm12, %v2411_v42  ;;  %v2602_v44 = vpop.permute.xlu1 %2601 }
 0x2f2   : > { %2676 = vst.msk [vmem:[#allocation4 + $0xb0] sm:$0xff] %vm2653_vm13, %v2602_v44  ;;  %2617 = vrot.lane.b32.xlu0 %v2523_v41, %s4615_s24 }
 0x2f3   : > { %2619 = vrot.lane.b32.xlu1 %v2524_v43, %s4615_s24 }
 0x2f4   : > { %v1258_v47 = vpop.permute.xlu0 %1257 }
 0x2f5   : > { %1328 = vst.msk [vmem:[#allocation4 + $0xd0] sm:$0xff] %vm1301_vm5, %v1258_v47  ;;  %v1835_v27 = vpop.permute.xlu1 %1834  ;;  %v3844_v47 = vld [vmem:[#allocation2 + $0xa0] sm:$0xff] }
 0x2f6   : > { %1906 = vst.msk [vmem:[#allocation4 + $0xc8] sm:$0xff] %vm1880_vm9, %v1835_v27  ;;  %3924 = vrot.lane.b32.xlu0 %v3824_v48, %s4618_s21  ;;  %v3845_v27 = vld [vmem:[#allocation2 + $0xa8] sm:$0xff] }
 0x2f7   : > { %v4453_v56 = vpop.f32.mrb[22].mxu1  ;;  %3926 = vrot.lane.b32.xlu1 %v3825_v57, %s4618_s21  ;;  %v3846_v57 = vld [vmem:[#allocation2 + $0xb0] sm:$0xff] }
 0x2f8   : > { %v3065_v60 = vmul.f32 %v4453_v56, %v5570_v53  ;;  %v2930_v58 = vpop.f32.mrb[23].mxu1  ;;  %v2026_v62 = vpop.permute.xlu0 %2025 }
 0x2f9   : > { %v3064_v61 = vmul.f32 %v5570_v53, %v2930_v58  ;;  %2098 = vst.msk [vmem:[#allocation4 + $0xc0] sm:$0xff] %vm2073_vm10, %v2026_v62  ;;  %v2604_v30 = vpop.permute.xlu1 %2603  ;;  %v2708_v12 = vld [vmem:[#allocation4 + $0xb0] sm:$0xff]  ;;  %v3847_v58 = vld [vmem:[#allocation2 + $0xb8] sm:$0xff] }
 0x2fa   : > { %v3104_v49 = vadd.f32 %v5577_v40, %v3065_v60  ;;  %2677 = vst.msk [vmem:[#allocation4 + $0xb8] sm:$0xff] %vm2653_vm13, %v2604_v30  ;;  %3928 = vrot.lane.b32.xlu0 %v3826_v55, %s4618_s21  ;;  %4472 = vmatprep.mubr.msk.f32.mxu1 %vm2727_vm14, %v2708_v12  ;;  %v3849_v30 = vld [vmem:[#allocation2 + $0xc8] sm:$0xff] }
 0x2fb   : > { %v3103_v63 = vadd.f32 %v5577_v40, %v3064_v61  ;;  %3930 = vrot.lane.b32.xlu1 %v3827_v0, %s4618_s21  ;;  %v3851_v0 = vld [vmem:[#allocation2 + $0xd8] sm:$0xff] }
 0x2fc   : > { %v1260_v1 = vpop.permute.xlu0 %1259  ;;  %v3136_v13 = vmax.f32 %v3104_v49, 0.0  ;;  %v3848_v49 = vld [vmem:[#allocation2 + $0xc0] sm:$0xff] }
 0x2fd   : > { %v3135_v3 = vmax.f32 %v3103_v63, 0.0  ;;  %1329 = vst.msk [vmem:[#allocation4 + $0xd8] sm:$0xff] %vm1301_vm5, %v1260_v1  ;;  %v1451_v50 = vpop.permute.xlu1 %1450  ;;  %v3850_v63 = vld [vmem:[#allocation2 + $0xd0] sm:$0xff] }
 0x2fe   : > { %1521 = vst.msk [vmem:[#allocation4 + $0xd0] sm:$0xff] %vm1494_vm6, %v1451_v50  ;;  %3932 = vrot.lane.b32.xlu0 %v3828_v4, %s4618_s21  ;;  %v3853_v50 = vld [vmem:[#allocation2 + $0xe8] sm:$0xff] }
 0x2ff   : > { %4501 = vmatprep.mubr.msk.f32.mxu0 %vm1002_vm2, %v3135_v3  ;;  %3934 = vrot.lane.b32.xlu1 %v3829_v5, %s4618_s21 }
 0x300   : > { %4502 = vmatmul.mubr.msk.f32.gmra.mrb[26].mxu0 %vm1002_vm2, %v3136_v13  ;;  %v2028_v6 = vpop.permute.xlu0 %2027  ;;  %v4596_v13 = vld [vmem:[#allocation2 + $0xe0] sm:$0xff] }
 0x301   : > { %2099 = vst.msk [vmem:[#allocation4 + $0xc8] sm:$0xff] %vm2073_vm10, %v2028_v6  ;;  %v2220_v7 = vpop.permute.xlu1 %2219  ;;  %v2709_v2 = vld [vmem:[#allocation4 + $0xb8] sm:$0xff]  ;;  %v4597_v6 = vld [vmem:[#allocation2 + $0xf0] sm:$0xff] }
 0x302   : > { %2292 = vst.msk [vmem:[#allocation4 + $0xc0] sm:$0xff] %vm2267_vm11, %v2220_v7  ;;  %3936 = vrot.lane.b32.xlu0 %v3830_v8, %s4618_s21  ;;  %4473 = vmatmul.mubr.msk.f32.gmra.mrb[36].mxu1 %vm2727_vm14, %v2709_v2  ;;  %v4598_v7 = vld [vmem:[#allocation2 + $0xf8] sm:$0xff] }
 0x303   : > { %3938 = vrot.lane.b32.xlu1 %v3831_v45, %s4618_s21 }
 0x304   : > { %v1453_v9 = vpop.permute.xlu0 %1452 }
 0x305   : > { %1522 = vst.msk [vmem:[#allocation4 + $0xd8] sm:$0xff] %vm1494_vm6, %v1453_v9  ;;  %v1644_v10 = vpop.permute.xlu1 %1643 }
 0x306   : > { %1714 = vst.msk [vmem:[#allocation4 + $0xd0] sm:$0xff] %vm1687_vm8, %v1644_v10  ;;  %3940 = vrot.lane.b32.xlu0 %v3832_v11, %s4618_s21 }
 0x307   : > { %3942 = vrot.lane.b32.xlu1 %v3833_v59, %s4618_s21 }
 0x308   : > { %v2222_v14 = vpop.permute.xlu0 %2221 }
 0x309   : > { %2293 = vst.msk [vmem:[#allocation4 + $0xc8] sm:$0xff] %vm2267_vm11, %v2222_v14  ;;  %v2413_v15 = vpop.permute.xlu1 %2412 }
 0x30a   : > { %2485 = vst.msk [vmem:[#allocation4 + $0xc0] sm:$0xff] %vm2460_vm12, %v2413_v15  ;;  %3944 = vrot.lane.b32.xlu0 %v3834_v22, %s4618_s21 }
 0x30b   : > { %3946 = vrot.lane.b32.xlu1 %v3835_v16, %s4618_s21 }
 0x30c   : > { %v1646_v18 = vpop.permute.xlu0 %1645 }
 0x30d   : > { %1715 = vst.msk [vmem:[#allocation4 + $0xd8] sm:$0xff] %vm1687_vm8, %v1646_v18  ;;  %v1837_v51 = vpop.permute.xlu1 %1836 }
 0x30e   : > { %1907 = vst.msk [vmem:[#allocation4 + $0xd0] sm:$0xff] %vm1880_vm9, %v1837_v51  ;;  %3948 = vrot.lane.b32.xlu0 %v3836_v19, %s4618_s21 }
 0x30f   : > { %3950 = vrot.lane.b32.xlu1 %v3837_v20, %s4618_s21 }
 0x310   : > { %v2415_v52 = vpop.permute.xlu0 %2414 }
 0x311   : > { %2486 = vst.msk [vmem:[#allocation4 + $0xc8] sm:$0xff] %vm2460_vm12, %v2415_v52  ;;  %v2606_v21 = vpop.permute.xlu1 %2605 }
 0x312   : > { %2678 = vst.msk [vmem:[#allocation4 + $0xc0] sm:$0xff] %vm2653_vm13, %v2606_v21  ;;  %3952 = vrot.lane.b32.xlu0 %v3838_v54, %s4618_s21 }
 0x313   : > { %3954 = vrot.lane.b32.xlu1 %v3839_v23, %s4618_s21 }
 0x314   : > { %v1262_v24 = vpop.permute.xlu0 %1261 }
 0x315   : > { %1330 = vst.msk [vmem:[#allocation4 + $0xe0] sm:$0xff] %vm1301_vm5, %v1262_v24  ;;  %v1839_v46 = vpop.permute.xlu1 %1838 }
 0x316   : > { %1908 = vst.msk [vmem:[#allocation4 + $0xd8] sm:$0xff] %vm1880_vm9, %v1839_v46  ;;  %3956 = vrot.lane.b32.xlu0 %v3840_v28, %s4618_s21 }
 0x317   : > { %v4456_v29 = vpop.f32.mrb[24].mxu1  ;;  %3958 = vrot.lane.b32.xlu1 %v3841_v32, %s4618_s21 }
 0x318   : > { %v3067_v31 = vmul.f32 %v4456_v29, %v5570_v53  ;;  %v2940_v33 = vpop.f32.mrb[25].mxu1  ;;  %v2030_v26 = vpop.permute.xlu0 %2029 }
 0x319   : > { %v3066_v36 = vmul.f32 %v5570_v53, %v2940_v33  ;;  %2100 = vst.msk [vmem:[#allocation4 + $0xd0] sm:$0xff] %vm2073_vm10, %v2030_v26  ;;  %v2608_v35 = vpop.permute.xlu1 %2607  ;;  %v2710_v38 = vld [vmem:[#allocation4 + $0xc0] sm:$0xff] }
 0x31a   : > { %v3106_v34 = vadd.f32 %v5577_v40, %v3067_v31  ;;  %2679 = vst.msk [vmem:[#allocation4 + $0xc8] sm:$0xff] %vm2653_vm13, %v2608_v35  ;;  %3960 = vrot.lane.b32.xlu0 %v3842_v37, %s4618_s21  ;;  %4475 = vmatprep.mubr.msk.f32.mxu1 %vm2727_vm14, %v2710_v38 }
 0x31b   : > { %v3105_v39 = vadd.f32 %v5577_v40, %v3066_v36  ;;  %3962 = vrot.lane.b32.xlu1 %v3843_v25, %s4618_s21 }
 0x31c   : > { %v1264_v42 = vpop.permute.xlu0 %1263  ;;  %v3138_v43 = vmax.f32 %v3106_v34, 0.0 }
 0x31d   : > { %v3137_v41 = vmax.f32 %v3105_v39, 0.0  ;;  %1331 = vst.msk [vmem:[#allocation4 + $0xe8] sm:$0xff] %vm1301_vm5, %v1264_v42  ;;  %v1455_v44 = vpop.permute.xlu1 %1454 }
 0x31e   : > { %1523 = vst.msk [vmem:[#allocation4 + $0xe0] sm:$0xff] %vm1494_vm6, %v1455_v44  ;;  %3964 = vrot.lane.b32.xlu0 %v3844_v47, %s4618_s21 }
 0x31f   : > { %4504 = vmatprep.mubr.msk.f32.mxu0 %vm1002_vm2, %v3137_v41  ;;  %3966 = vrot.lane.b32.xlu1 %v3845_v27, %s4618_s21 }
 0x320   : > { %4505 = vmatmul.mubr.msk.f32.gmra.mrb[28].mxu0 %vm1002_vm2, %v3138_v43  ;;  %v2032_v48 = vpop.permute.xlu0 %2031 }
 0x321   : > { %2101 = vst.msk [vmem:[#allocation4 + $0xd8] sm:$0xff] %vm2073_vm10, %v2032_v48  ;;  %v2224_v56 = vpop.permute.xlu1 %2223  ;;  %v2711_v60 = vld [vmem:[#allocation4 + $0xc8] sm:$0xff] }
 0x322   : > { %2294 = vst.msk [vmem:[#allocation4 + $0xd0] sm:$0xff] %vm2267_vm11, %v2224_v56  ;;  %3968 = vrot.lane.b32.xlu0 %v3846_v57, %s4618_s21  ;;  %4476 = vmatmul.mubr.msk.f32.gmra.mrb[38].mxu1 %vm2727_vm14, %v2711_v60 }
 0x323   : > { %3970 = vrot.lane.b32.xlu1 %v3847_v58, %s4618_s21 }
 0x324   : > { %v1457_v61 = vpop.permute.xlu0 %1456 }
 0x325   : > { %1524 = vst.msk [vmem:[#allocation4 + $0xe8] sm:$0xff] %vm1494_vm6, %v1457_v61  ;;  %v1648_v62 = vpop.permute.xlu1 %1647 }
 0x326   : > { %1716 = vst.msk [vmem:[#allocation4 + $0xe0] sm:$0xff] %vm1687_vm8, %v1648_v62  ;;  %3972 = vrot.lane.b32.xlu0 %v3848_v49, %s4618_s21 }
 0x327   : > { %3974 = vrot.lane.b32.xlu1 %v3849_v30, %s4618_s21 }
 0x328   : > { %v2226_v55 = vpop.permute.xlu0 %2225 }
 0x329   : > { %2295 = vst.msk [vmem:[#allocation4 + $0xd8] sm:$0xff] %vm2267_vm11, %v2226_v55  ;;  %v2417_v12 = vpop.permute.xlu1 %2416 }
 0x32a   : > { %2487 = vst.msk [vmem:[#allocation4 + $0xd0] sm:$0xff] %vm2460_vm12, %v2417_v12  ;;  %3976 = vrot.lane.b32.xlu0 %v3850_v63, %s4618_s21  ;;  %v5882_v63 = vld [vmem:[%s6523_s5] ss:$0 sm:$0xff] }
 0x32b   : > { %3978 = vrot.lane.b32.xlu1 %v3851_v0, %s4618_s21 }
 0x32c   : > { %v1650_v3 = vpop.permute.xlu0 %1649 }
 0x32d   : > { %1717 = vst.msk [vmem:[#allocation4 + $0xe8] sm:$0xff] %vm1687_vm8, %v1650_v3  ;;  %v1841_v1 = vpop.permute.xlu1 %1840 }
 0x32e   : > { %1909 = vst.msk [vmem:[#allocation4 + $0xe0] sm:$0xff] %vm1880_vm9, %v1841_v1  ;;  %3980 = vrot.lane.b32.xlu0 %v4596_v13, %s4618_s21  ;;  %v5889_v13 = vld [vmem:[%s6524_s6] ss:$0 sm:$0xff] }
 0x32f   : > { %3982 = vrot.lane.b32.xlu1 %v3853_v50, %s4618_s21 }
 0x330   : > { %v2419_v4 = vpop.permute.xlu0 %2418 }
 0x331   : > { %2488 = vst.msk [vmem:[#allocation4 + $0xd8] sm:$0xff] %vm2460_vm12, %v2419_v4  ;;  %v2610_v5 = vpop.permute.xlu1 %2609 }
 0x332   : > { %2680 = vst.msk [vmem:[#allocation4 + $0xd0] sm:$0xff] %vm2653_vm13, %v2610_v5  ;;  %3984 = vrot.lane.b32.xlu0 %v4597_v6, %s4618_s21 }
 0x333   : > { %3986 = vrot.lane.b32.xlu1 %v4598_v7, %s4618_s21 }
 0x334   : > { %v1266_v8 = vpop.permute.xlu0 %1265 }
 0x335   : > { %1332 = vst.msk [vmem:[#allocation4 + $0xf0] sm:$0xff] %vm1301_vm5, %v1266_v8  ;;  %v1843_v2 = vpop.permute.xlu1 %1842 }
 0x336   : > { %1910 = vst.msk [vmem:[#allocation4 + $0xe8] sm:$0xff] %vm1880_vm9, %v1843_v2 }
 0x337   : > { %v4459_v45 = vpop.f32.mrb[26].mxu1 }
 0x338   : > { %v3069_v9 = vmul.f32 %v4459_v45, %v5570_v53  ;;  %v2950_v10 = vpop.f32.mrb[27].mxu1  ;;  %v2034_v59 = vpop.permute.xlu0 %2033 }
 0x339   : > { %v3068_v11 = vmul.f32 %v5570_v53, %v2950_v10  ;;  %2102 = vst.msk [vmem:[#allocation4 + $0xe0] sm:$0xff] %vm2073_vm10, %v2034_v59  ;;  %v2612_v15 = vpop.permute.xlu1 %2611  ;;  %v2712_v22 = vld [vmem:[#allocation4 + $0xd0] sm:$0xff] }
 0x33a   : > { %v3108_v14 = vadd.f32 %v5577_v40, %v3069_v9  ;;  %2681 = vst.msk [vmem:[#allocation4 + $0xd8] sm:$0xff] %vm2653_vm13, %v2612_v15  ;;  %4478 = vmatprep.mubr.msk.f32.mxu1 %vm2727_vm14, %v2712_v22 }
 0x33b   : > { %v3107_v16 = vadd.f32 %v5577_v40, %v3068_v11 }
 0x33c   : > { %v1268_v51 = vpop.permute.xlu0 %1267  ;;  %v3140_v19 = vmax.f32 %v3108_v14, 0.0 }
 0x33d   : > { %v3139_v18 = vmax.f32 %v3107_v16, 0.0  ;;  %1333 = vst.msk [vmem:[#allocation4 + $0xf8] sm:$0xff] %vm1301_vm5, %v1268_v51  ;;  %v1459_v20 = vpop.permute.xlu1 %1458 }
 0x33e   : > { %1525 = vst.msk [vmem:[#allocation4 + $0xf0] sm:$0xff] %vm1494_vm6, %v1459_v20 }
 0x33f   : > { %4507 = vmatprep.mubr.msk.f32.mxu0 %vm1002_vm2, %v3139_v18 }
 0x340   : > { %4508 = vmatmul.mubr.msk.f32.gmra.mrb[30].mxu0 %vm1002_vm2, %v3140_v19  ;;  %v2036_v52 = vpop.permute.xlu0 %2035 }
 0x341   : > { %2103 = vst.msk [vmem:[#allocation4 + $0xe8] sm:$0xff] %vm2073_vm10, %v2036_v52  ;;  %v2228_v21 = vpop.permute.xlu1 %2227  ;;  %v2713_v54 = vld [vmem:[#allocation4 + $0xd8] sm:$0xff] }
 0x342   : > { %2296 = vst.msk [vmem:[#allocation4 + $0xe0] sm:$0xff] %vm2267_vm11, %v2228_v21  ;;  %4479 = vmatmul.mubr.msk.f32.gmra.mrb[40].mxu1 %vm2727_vm14, %v2713_v54 }
 0x344   : > { %v1461_v23 = vpop.permute.xlu0 %1460 }
 0x345   : > { %1526 = vst.msk [vmem:[#allocation4 + $0xf8] sm:$0xff] %vm1494_vm6, %v1461_v23  ;;  %v1652_v24 = vpop.permute.xlu1 %1651 }
 0x346   : > { %1718 = vst.msk [vmem:[#allocation4 + $0xf0] sm:$0xff] %vm1687_vm8, %v1652_v24 }
 0x348   : > { %v2230_v46 = vpop.permute.xlu0 %2229 }
 0x349   : > { %2297 = vst.msk [vmem:[#allocation4 + $0xe8] sm:$0xff] %vm2267_vm11, %v2230_v46  ;;  %v2421_v28 = vpop.permute.xlu1 %2420 }
 0x34a   : > { %2489 = vst.msk [vmem:[#allocation4 + $0xe0] sm:$0xff] %vm2460_vm12, %v2421_v28 }
 0x34c   : > { %v1654_v29 = vpop.permute.xlu0 %1653 }
 0x34d   : > { %1719 = vst.msk [vmem:[#allocation4 + $0xf8] sm:$0xff] %vm1687_vm8, %v1654_v29  ;;  %v1845_v32 = vpop.permute.xlu1 %1844 }
 0x34e   : > { %1911 = vst.msk [vmem:[#allocation4 + $0xf0] sm:$0xff] %vm1880_vm9, %v1845_v32 }
 0x350   : > { %v2423_v31 = vpop.permute.xlu0 %2422 }
 0x351   : > { %2490 = vst.msk [vmem:[#allocation4 + $0xe8] sm:$0xff] %vm2460_vm12, %v2423_v31  ;;  %v2614_v33 = vpop.permute.xlu1 %2613 }
 0x352   : > { %2682 = vst.msk [vmem:[#allocation4 + $0xe0] sm:$0xff] %vm2653_vm13, %v2614_v33 }
 0x353   : > { %v5851_v36 = vpop.f32.mrb[18].mxu0 }
 0x354   : > { %v5853_v26 = vpop.f32.mrb[19].mxu0  ;;  %v1847_v34 = vpop.permute.xlu0 %1846 }
 0x355   : > { %1912 = vst.msk [vmem:[#allocation4 + $0xf8] sm:$0xff] %vm1880_vm9, %v1847_v34  ;;  %v2038_v35 = vpop.permute.xlu1 %2037 }
 0x356   : > { %2104 = vst.msk [vmem:[#allocation4 + $0xf0] sm:$0xff] %vm2073_vm10, %v2038_v35  ;;  %v4462_v37 = vpop.f32.mrb[28].mxu1 }
 0x357   : > { %v3071_v38 = vmul.f32 %v4462_v37, %v5570_v53  ;;  %v2960_v39 = vpop.f32.mrb[29].mxu1 }
 0x358   : > { %v3070_v25 = vmul.f32 %v5570_v53, %v2960_v39  ;;  %v2616_v41 = vpop.permute.xlu0 %2615 }
 0x359   : > { %v3110_v42 = vadd.f32 %v5577_v40, %v3071_v38  ;;  %2683 = vst.msk [vmem:[#allocation4 + $0xe8] sm:$0xff] %vm2653_vm13, %v2616_v41  ;;  %v2040_v43 = vpop.permute.xlu1 %2039  ;;  %v2714_v44 = vld [vmem:[#allocation4 + $0xe0] sm:$0xff] }
 0x35a   : > { %v3109_v47 = vadd.f32 %v5577_v40, %v3070_v25  ;;  %2105 = vst.msk [vmem:[#allocation4 + $0xf8] sm:$0xff] %vm2073_vm10, %v2040_v43  ;;  %4481 = vmatprep.mubr.msk.f32.mxu1 %vm2727_vm14, %v2714_v44 }
 0x35b   : > { %v3142_v56 = vmax.f32 %v3110_v42, 0.0 }
 0x35c   : > { %v3141_v27 = vmax.f32 %v3109_v47, 0.0  ;;  %v2232_v48 = vpop.permute.xlu0 %2231 }
 0x35d   : > { %2298 = vst.msk [vmem:[#allocation4 + $0xf0] sm:$0xff] %vm2267_vm11, %v2232_v48  ;;  %v2234_v57 = vpop.permute.xlu1 %2233 }
 0x35e   : > { %2299 = vst.msk [vmem:[#allocation4 + $0xf8] sm:$0xff] %vm2267_vm11, %v2234_v57  ;;  %4510 = vmatprep.mubr.msk.f32.mxu0 %vm1002_vm2, %v3141_v27 }
 0x35f   : > { %4511 = vmatmul.mubr.msk.f32.gmra.mrb[32].mxu0 %vm1002_vm2, %v3142_v56 }
 0x360   : > { %v2425_v53 = vpop.permute.xlu0 %2424  ;;  %v2715_v60 = vld [vmem:[#allocation4 + $0xe8] sm:$0xff] }
 0x361   : > { %2491 = vst.msk [vmem:[#allocation4 + $0xf0] sm:$0xff] %vm2460_vm12, %v2425_v53  ;;  %v2427_v40 = vpop.permute.xlu1 %2426  ;;  %4482 = vmatmul.mubr.msk.f32.gmra.mrb[42].mxu1 %vm2727_vm14, %v2715_v60 }
 0x362   : > { %2492 = vst.msk [vmem:[#allocation4 + $0xf8] sm:$0xff] %vm2460_vm12, %v2427_v40 }
 0x364   : > { %v2618_v58 = vpop.permute.xlu0 %2617 }
 0x365   : > { %2684 = vst.msk [vmem:[#allocation4 + $0xf0] sm:$0xff] %vm2653_vm13, %v2618_v58  ;;  %v2620_v61 = vpop.permute.xlu1 %2619 }
 0x366   : > { %2685 = vst.msk [vmem:[#allocation4 + $0xf8] sm:$0xff] %vm2653_vm13, %v2620_v61 }
 0x36c   : > { %v2716_v62 = vld [vmem:[#allocation4 + $0xf0] sm:$0xff] }
 0x36d   : > { %4484 = vmatprep.mubr.msk.f32.mxu1 %vm2727_vm14, %v2716_v62  ;;  %v2717_v49 = vld [vmem:[#allocation4 + $0xf8] sm:$0xff] }
 0x36e   : > { %4485 = vmatmul.mubr.msk.f32.gmra.mrb[44].mxu1 %vm2727_vm14, %v2717_v49 }
 0x36f   : > { %4541 = vmatprep.mubr.msk.f32.mxu1 %vm4620_vm15, %v4609_v17 }
 0x373   : > { %v5875_v30 = vpop.f32.mrb[20].mxu0 }
 0x374   : > { %v5877_v55 = vpop.f32.mrb[21].mxu0 }
 0x375   : > { %v4465_v12 = vpop.f32.mrb[30].mxu1 }
 0x376   : > { %v3073_v0 = vmul.f32 %v5882_v63, %v4465_v12  ;;  %v2970_v3 = vpop.f32.mrb[31].mxu1 }
 0x377   : > { %v3072_v1 = vmul.f32 %v5882_v63, %v2970_v3 }
 0x378   : > { %v3112_v50 = vadd.f32 %v5889_v13, %v3073_v0 }
 0x379   : > { %v3111_v4 = vadd.f32 %v5889_v13, %v3072_v1 }
 0x37a   : > { %v3144_v6 = vmax.f32 %v3112_v50, 0.0 }
 0x37b   : > { %v3143_v5 = vmax.f32 %v3111_v4, 0.0 }
 0x37d   : > { %4513 = vmatprep.mubr.msk.f32.mxu0 %vm1002_vm2, %v3143_v5 }
 0x37e   : > { %4514 = vmatmul.mubr.msk.f32.gmra.mrb[34].mxu0 %vm1002_vm2, %v3144_v6 }
 0x393   : > { %v5895_v7 = vpop.f32.mrb[22].mxu0 }
 0x394   : > { %v5897_v8 = vpop.f32.mrb[23].mxu0 }
 0x395   : > { %v4468_v2 = vpop.f32.mrb[32].mxu1 }
 0x396   : > { %v3075_v45 = vmul.f32 %v5882_v63, %v4468_v2  ;;  %v2980_v9 = vpop.f32.mrb[33].mxu1 }
 0x397   : > { %v3074_v10 = vmul.f32 %v5882_v63, %v2980_v9 }
 0x398   : > { %v3114_v11 = vadd.f32 %v5889_v13, %v3075_v45 }
 0x399   : > { %v3113_v59 = vadd.f32 %v5889_v13, %v3074_v10 }
 0x39a   : > { %v3146_v15 = vmax.f32 %v3114_v11, 0.0 }
 0x39b   : > { %v3145_v14 = vmax.f32 %v3113_v59, 0.0 }
 0x39d   : > { %4516 = vmatprep.mubr.msk.f32.mxu0 %vm1002_vm2, %v3145_v14 }
 0x39e   : > { %4517 = vmatmul.mubr.msk.f32.gmra.mrb[36].mxu0 %vm1002_vm2, %v3146_v15 }
 0x3b3   : > { %v5905_v22 = vpop.f32.mrb[24].mxu0 }
 0x3b4   : > { %v5907_v16 = vpop.f32.mrb[25].mxu0 }
 0x3b5   : > { %v4471_v18 = vpop.f32.mrb[34].mxu1 }
 0x3b6   : > { %v3077_v51 = vmul.f32 %v5882_v63, %v4471_v18  ;;  %v2990_v19 = vpop.f32.mrb[35].mxu1 }
 0x3b7   : > { %v3076_v20 = vmul.f32 %v5882_v63, %v2990_v19 }
 0x3b8   : > { %v3116_v52 = vadd.f32 %v5889_v13, %v3077_v51 }
 0x3b9   : > { %v3115_v21 = vadd.f32 %v5889_v13, %v3076_v20 }
 0x3ba   : > { %v3148_v23 = vmax.f32 %v3116_v52, 0.0 }
 0x3bb   : > { %v3147_v54 = vmax.f32 %v3115_v21, 0.0 }
 0x3bd   : > { %4519 = vmatprep.mubr.msk.f32.mxu0 %vm1002_vm2, %v3147_v54 }
 0x3be   : > { %4520 = vmatmul.mubr.msk.f32.gmra.mrb[38].mxu0 %vm1002_vm2, %v3148_v23  ;;  %v4619_v23 = vmov 0.0|0.0  }
 0x3bf   : > { %4565 = vmatprep.subr.bf16.mxu1 %v4619_v23 }
 0x3d3   : > { %v5915_v24 = vpop.f32.mrb[26].mxu0 }
 0x3d4   : > { %v5917_v46 = vpop.f32.mrb[27].mxu0 }
 0x3d5   : > { %v4474_v28 = vpop.f32.mrb[36].mxu1 }
 0x3d6   : > { %v3079_v29 = vmul.f32 %v5882_v63, %v4474_v28  ;;  %v3000_v32 = vpop.f32.mrb[37].mxu1 }
 0x3d7   : > { %v3078_v31 = vmul.f32 %v5882_v63, %v3000_v32 }
 0x3d8   : > { %v3118_v33 = vadd.f32 %v5889_v13, %v3079_v29 }
 0x3d9   : > { %v3117_v34 = vadd.f32 %v5889_v13, %v3078_v31 }
 0x3da   : > { %v3150_v37 = vmax.f32 %v3118_v33, 0.0 }
 0x3db   : > { %v3149_v35 = vmax.f32 %v3117_v34, 0.0  ;;  %v5989_v34 = vld [vmem:[%s6526_s8] ss:$0 sm:$0xff] }
 0x3dd   : > { %4522 = vmatprep.mubr.msk.f32.mxu0 %vm1002_vm2, %v3149_v35  ;;  %v3489_v35 = vmul.f32 %v5851_v36, %v5989_v34 }
 0x3de   : > { %4523 = vmatmul.mubr.msk.f32.gmra.mrb[40].mxu0 %vm1002_vm2, %v3150_v37  ;;  %v3488_v37 = vmul.f32 %v5989_v34, %v5853_v26 }
 0x3f3   : > { %v5925_v38 = vpop.f32.mrb[28].mxu0 }
 0x3f4   : > { %v5927_v39 = vpop.f32.mrb[29].mxu0 }
 0x3f5   : > { %v4477_v25 = vpop.f32.mrb[38].mxu1 }
 0x3f6   : > { %v3081_v41 = vmul.f32 %v5882_v63, %v4477_v25  ;;  %v3010_v42 = vpop.f32.mrb[39].mxu1  ;;  %v5998_v25 = vld [vmem:[%s6527_s9] ss:$0 sm:$0xff] }
 0x3f7   : > { %v3080_v43 = vmul.f32 %v5882_v63, %v3010_v42  ;;  %v6003_v42 = vadd.f32 %v5998_v25, %v3489_v35 }
 0x3f8   : > { %v3120_v44 = vadd.f32 %v5889_v13, %v3081_v41  ;;  %v3490_v41 = vmul.f32 %v5989_v34, %v5877_v55 }
 0x3f9   : > { %v3119_v47 = vadd.f32 %v5889_v13, %v3080_v43  ;;  %v6006_v43 = vadd.f32 %v5998_v25, %v3488_v37  ;;  %v6563_v36 = vmax.f32 %v6003_v42, 0.0 }
 0x3fa   : > { %v3152_v48 = vmax.f32 %v3120_v44, 0.0  ;;  %v6009_v44 = vadd.f32 %v5998_v25, %v3490_v41 }
 0x3fb   : > { %v3151_v27 = vmax.f32 %v3119_v47, 0.0  ;;  %v6564_v26 = vmax.f32 %v6006_v43, 0.0  ;;  %v3491_v47 = vmul.f32 %v5875_v30, %v5989_v34 }
 0x3fc   : > { %v6562_v55 = vmax.f32 %v6009_v44, 0.0 }
 0x3fd   : > { %4525 = vmatprep.mubr.msk.f32.mxu0 %vm1002_vm2, %v3151_v27  ;;  %v3492_v27 = vmul.f32 %v5989_v34, %v5897_v8  ;;  %v3493_v8 = vmul.f32 %v5895_v7, %v5989_v34 }
 0x3fe   : > { %4526 = vmatmul.mubr.msk.f32.gmra.mrb[42].mxu0 %vm1002_vm2, %v3152_v48 }
 0x413   : > { %v5935_v56 = vpop.f32.mrb[30].mxu0 }
 0x414   : > { %v5937_v57 = vpop.f32.mrb[31].mxu0 }
 0x415   : > { %v4480_v53 = vpop.f32.mrb[40].mxu1  ;;  %v3500_v37 = vmul.f32 %v5989_v34, %v5937_v57  ;;  %v3501_v57 = vmul.f32 %v5935_v56, %v5989_v34 }
 0x416   : > { %v3083_v60 = vmul.f32 %v5882_v63, %v4480_v53  ;;  %v3020_v40 = vpop.f32.mrb[41].mxu1 }
 0x417   : > { %v3082_v58 = vmul.f32 %v5882_v63, %v3020_v40  ;;  %v6028_v40 = vadd.f32 %v5998_v25, %v3492_v27 }
 0x418   : > { %v3122_v61 = vadd.f32 %v5889_v13, %v3083_v60  ;;  %v6025_v60 = vadd.f32 %v5998_v25, %v3491_v47 }
 0x419   : > { %v3121_v62 = vadd.f32 %v5889_v13, %v3082_v58  ;;  %v3494_v58 = vmul.f32 %v5989_v34, %v5907_v16 }
 0x41a   : > { %v3154_v12 = vmax.f32 %v3122_v61, 0.0 }
 0x41b   : > { %v3153_v49 = vmax.f32 %v3121_v62, 0.0  ;;  %v6561_v62 = vmax.f32 %v6025_v60, 0.0 }
 0x41d   : > { %4528 = vmatprep.mubr.msk.f32.mxu0 %vm1002_vm2, %v3153_v49  ;;  %v6560_v49 = vmax.f32 %v6028_v40, 0.0 }
 0x41e   : > { %4529 = vmatmul.mubr.msk.f32.gmra.mrb[44].mxu0 %vm1002_vm2, %v3154_v12 }
 0x432   : > { %v5945_v0 = vpop.f32.mrb[32].mxu0 }
 0x433   : > { %v5947_v3 = vpop.f32.mrb[33].mxu0 }
 0x434   : > { %v4483_v1 = vpop.f32.mrb[42].mxu1 }
 0x435   : > { %v3085_v50 = vmul.f32 %v5882_v63, %v4483_v1  ;;  %v3030_v4 = vpop.f32.mrb[43].mxu1 }
 0x436   : > { %v3084_v5 = vmul.f32 %v5882_v63, %v3030_v4  ;;  %v6044_v4 = vadd.f32 %v5998_v25, %v3493_v8 }
 0x437   : > { %v3124_v6 = vadd.f32 %v5889_v13, %v3085_v50 }
 0x438   : > { %v3123_v2 = vadd.f32 %v5889_v13, %v3084_v5  ;;  %v6047_v5 = vadd.f32 %v5998_v25, %v3494_v58  ;;  %v3502_v58 = vmul.f32 %v5989_v34, %v5947_v3  ;;  %v3503_v3 = vmul.f32 %v5945_v0, %v5989_v34 }
 0x439   : > { %v3156_v9 = vmax.f32 %v3124_v6, 0.0  ;;  %v3495_v6 = vmul.f32 %v5905_v22, %v5989_v34 }
 0x43a   : > { %v3155_v45 = vmax.f32 %v3123_v2, 0.0  ;;  %v3496_v2 = vmul.f32 %v5989_v34, %v5917_v46  ;;  %v3497_v46 = vmul.f32 %v5915_v24, %v5989_v34 }
 0x43c   : > { %4531 = vmatprep.mubr.msk.f32.mxu0 %vm1002_vm2, %v3155_v45  ;;  %v6080_v23 = vadd.f32 %v5998_v25, %v3497_v46 }
 0x43d   : > { %4532 = vmatmul.mubr.msk.f32.gmra.mrb[46].mxu0 %vm1002_vm2, %v3156_v9  ;;  %v6559_v9 = vmax.f32 %v6044_v4, 0.0 }
 0x43e   : > { %v6555_v47 = vmax.f32 %v6080_v23, 0.0 }
 0x441   : > { %v4486_v10 = vpop.f32.mrb[44].mxu1 }
 0x442   : > { %v3087_v11 = vmul.f32 %v5882_v63, %v4486_v10  ;;  %v3040_v59 = vpop.f32.mrb[45].mxu1  ;;  %v6558_v10 = vmax.f32 %v6047_v5, 0.0 }
 0x443   : > { %v3086_v14 = vmul.f32 %v5882_v63, %v3040_v59  ;;  %v3663_v63 = vld [vmem:[%s6528_s10] sm:$0xff]  ;;  %v6062_v59 = vadd.f32 %v5998_v25, %v3495_v6  ;;  %v6116_v6 = vadd.f32 %v5998_v25, %v3501_v57 }
 0x444   : > { %v3126_v15 = vadd.f32 %v5889_v13, %v3087_v11 }
 0x445   : > { %v3125_v18 = vadd.f32 %v5889_v13, %v3086_v14  ;;  %v3664_v13 = vld [vmem:[%s6528_s10 + $0x8] sm:$0xff]  ;;  %v6065_v14 = vadd.f32 %v5998_v25, %v3496_v2  ;;  %v6119_v2 = vadd.f32 %v5998_v25, %v3502_v58 }
 0x446   : > { %v3158_v19 = vmax.f32 %v3126_v15, 0.0  ;;  %v4566_v28 = vpack.c.bf16 %v3664_v13, %v3663_v63 }
 0x447   : > { %v3157_v51 = vmax.f32 %v3125_v18, 0.0  ;;  %v3498_v18 = vmul.f32 %v5989_v34, %v5927_v39  ;;  %v6556_v63 = vmax.f32 %v6065_v14, 0.0  ;;  %v3499_v39 = vmul.f32 %v5925_v38, %v5989_v34 }
 0x448   : > { %4567 = vmatpush3.bf16.msra.mxu1 %v4566_v28  ;;  %v6550_v46 = vmax.f32 %v6119_v2, 0.0 }
 0x449   : > { %4534 = vmatprep.mubr.msk.f32.mxu0 %vm1002_vm2, %v3157_v51  ;;  %4544 = vmatprep.subr.mxu1 %v4609_v17  ;;  %v6083_v28 = vadd.f32 %v5998_v25, %v3498_v18 }
 0x44a   : > { %4535 = vmatmul.mubr.msk.f32.gmra.mrb[48].mxu0 %vm1002_vm2, %v3158_v19  ;;  %vm3591_vm2 = vcmask 130048   ;;  %v6557_v19 = vmax.f32 %v6062_v59, 0.0 }
 0x44b   : > { %v3593_v48 = vsel %vm3591_vm2, %v6563_v36, 0.0  ;;  %v3592_v53 = vsel %vm3591_vm2, %v6564_v26, 0.0  ;;  %v3595_v30 = vsel %vm3591_vm2, %v6562_v55, 0.0  ;;  %v3597_v7 = vsel %vm3591_vm2, %v6561_v62, 0.0 }
 0x44c   : > { %v3594_v61 = vadd.f32 %v3593_v48, %v3592_v53  ;;  %v3599_v16 = vsel %vm3591_vm2, %v6560_v49, 0.0  ;;  %v3601_v15 = vsel %vm3591_vm2, %v6559_v9, 0.0  ;;  %v3603_v22 = vsel %vm3591_vm2, %v6558_v10, 0.0 }
 0x44d   : > { %v3605_v35 = vsel %vm3591_vm2, %v6557_v19, 0.0  ;;  %v3607_v24 = vsel %vm3591_vm2, %v6556_v63, 0.0  ;;  %v6554_v27 = vmax.f32 %v6083_v28, 0.0  ;;  %v6098_v53 = vadd.f32 %v5998_v25, %v3499_v39 }
 0x44e   : > { %v3596_v1 = vadd.f32 %v3595_v30, %v3594_v61  ;;  %v6101_v30 = vadd.f32 %v5998_v25, %v3500_v37  ;;  %v3609_v8 = vsel %vm3591_vm2, %v6555_v47, 0.0  ;;  %v3856_v55 = vlaneseq }
 0x44f   : > { %v3611_v38 = vsel %vm3591_vm2, %v6554_v27, 0.0 }
 0x450   : > { %v3598_v45 = vadd.f32 %v3597_v7, %v3596_v1  ;;  %v6553_v1 = vmax.f32 %v6098_v53, 0.0  ;;  %v6552_v7 = vmax.f32 %v6101_v30, 0.0 }
 0x451   : > { %v5961_v20 = vpop.f32.mrb[34].mxu0 }
 0x452   : > { %v5963_v52 = vpop.f32.mrb[35].mxu0  ;;  %v3600_v11 = vadd.f32 %v3599_v16, %v3598_v45  ;;  %v3613_v45 = vsel %vm3591_vm2, %v6553_v1, 0.0  ;;  %v3615_v56 = vsel %vm3591_vm2, %v6552_v7, 0.0  ;;  %v3505_v39 = vmul.f32 %v5961_v20, %v5989_v34 }
 0x454   : > { %v3602_v51 = vadd.f32 %v3601_v15, %v3600_v11  ;;  %v3504_v11 = vmul.f32 %v5989_v34, %v5963_v52  ;;  %v3619_v52 = vsel %vm3591_vm2, %v6550_v46, 0.0  ;;  %v6152_v57 = vadd.f32 %v5998_v25, %v3505_v39 }
 0x456   : > { %v3604_v13 = vadd.f32 %v3603_v22, %v3602_v51  ;;  %v6551_v22 = vmax.f32 %v6116_v6, 0.0  ;;  %v6134_v51 = vadd.f32 %v5998_v25, %v3503_v3 }
 0x458   : > { %v3606_v41 = vadd.f32 %v3605_v35, %v3604_v13  ;;  %v6137_v13 = vadd.f32 %v5998_v25, %v3504_v11  ;;  %v3617_v0 = vsel %vm3591_vm2, %v6551_v22, 0.0 }
 0x45a   : > { %v3608_v48 = vadd.f32 %v3607_v24, %v3606_v41 }
 0x45c   : > { %v3610_v61 = vadd.f32 %v3609_v8, %v3608_v48  ;;  %v6547_v48 = vmax.f32 %v6134_v51, 0.0  ;;  %v6546_v8 = vmax.f32 %v6137_v13, 0.0 }
 0x45e   : > { %v3612_v16 = vadd.f32 %v3611_v38, %v3610_v61  ;;  %v3621_v61 = vsel %vm3591_vm2, %v6547_v48, 0.0  ;;  %v3623_v20 = vsel %vm3591_vm2, %v6546_v8, 0.0 }
 0x460   : > { %v3614_v15 = vadd.f32 %v3613_v45, %v3612_v16 }
 0x462   : > { %v3616_v18 = vadd.f32 %v3615_v56, %v3614_v15  ;;  %v6542_v56 = vmax.f32 %v6152_v57, 0.0 }
 0x464   : > { %v3618_v41 = vadd.f32 %v3617_v0, %v3616_v18  ;;  %v3625_v0 = vsel %vm3591_vm2, %v6542_v56, 0.0 }
 0x466   : > { %v3620_v38 = vadd.f32 %v3619_v52, %v3618_v41 }
 0x468   : > { %v3622_v45 = vadd.f32 %v3621_v61, %v3620_v38 }
 0x46a   : > { %v3624_v11 = vadd.f32 %v3623_v20, %v3622_v45 }
 0x46c   : > { %v3626_v39 = vadd.f32 %v3625_v0, %v3624_v11 }
 0x471   : > { %v5965_v21 = vpop.f32.mrb[36].mxu0 }
 0x472   : > { %v5967_v54 = vpop.f32.mrb[37].mxu0 }
 0x473   : > { %v3506_v37 = vmul.f32 %v5989_v34, %v5967_v54  ;;  %v3507_v54 = vmul.f32 %v5965_v21, %v5989_v34 }
 0x475   : > { %v6155_v58 = vadd.f32 %v5998_v25, %v3506_v37  ;;  %v6170_v15 = vadd.f32 %v5998_v25, %v3507_v54 }
 0x477   : > { %v6541_v3 = vmax.f32 %v6155_v58, 0.0  ;;  %v6536_v37 = vmax.f32 %v6170_v15, 0.0 }
 0x479   : > { %v3627_v21 = vsel %vm3591_vm2, %v6541_v3, 0.0  ;;  %v3629_v54 = vsel %vm3591_vm2, %v6536_v37, 0.0 }
 0x47a   : > { %v3628_v38 = vadd.f32 %v3627_v21, %v3626_v39 }
 0x47c   : > { %v3630_v45 = vadd.f32 %v3629_v54, %v3628_v38 }
 0x491   : > { %v5976_v29 = vpop.f32.mrb[38].mxu0 }
 0x492   : > { %v5978_v32 = vpop.f32.mrb[39].mxu0 }
 0x493   : > { %v3508_v16 = vmul.f32 %v5989_v34, %v5978_v32  ;;  %v3509_v32 = vmul.f32 %v5976_v29, %v5989_v34 }
 0x495   : > { %v6173_v18 = vadd.f32 %v5998_v25, %v3508_v16  ;;  %v6188_v61 = vadd.f32 %v5998_v25, %v3509_v32 }
 0x497   : > { %v6534_v41 = vmax.f32 %v6173_v18, 0.0  ;;  %v6533_v11 = vmax.f32 %v6188_v61, 0.0 }
 0x499   : > { %v3631_v29 = vsel %vm3591_vm2, %v6534_v41, 0.0  ;;  %v3633_v39 = vsel %vm3591_vm2, %v6533_v11, 0.0 }
 0x49a   : > { %v3632_v21 = vadd.f32 %v3631_v29, %v3630_v45 }
 0x49c   : > { %v3634_v54 = vadd.f32 %v3633_v39, %v3632_v21 }
 0x4b1   : > { %v5980_v31 = vpop.f32.mrb[40].mxu0 }
 0x4b2   : > { %v5982_v33 = vpop.f32.mrb[41].mxu0 }
 0x4b3   : > { %v3510_v52 = vmul.f32 %v5989_v34, %v5982_v33  ;;  %v3511_v33 = vmul.f32 %v5980_v31, %v5989_v34 }
 0x4b5   : > { %v6191_v20 = vadd.f32 %v5998_v25, %v3510_v52  ;;  %v6206_v32 = vadd.f32 %v5998_v25, %v3511_v33 }
 0x4b7   : > { %v6535_v0 = vmax.f32 %v6191_v20, 0.0  ;;  %v6537_v29 = vmax.f32 %v6206_v32, 0.0 }
 0x4b9   : > { %v3635_v31 = vsel %vm3591_vm2, %v6535_v0, 0.0  ;;  %v3637_v0 = vsel %vm3591_vm2, %v6537_v29, 0.0 }
 0x4d1   : > { %v6039_v12 = vpop.f32.mrb[42].mxu0 }
 0x4d2   : > { %v6041_v50 = vpop.f32.mrb[43].mxu0 }
 0x4d3   : > { %v3512_v16 = vmul.f32 %v5989_v34, %v6041_v50  ;;  %v3513_v50 = vmul.f32 %v6039_v12, %v5989_v34 }
 0x4d5   : > { %v6209_v52 = vadd.f32 %v5998_v25, %v3512_v16  ;;  %v3636_v16 = vadd.f32 %v3635_v31, %v3634_v54  ;;  %v6223_v45 = vadd.f32 %v5998_v25, %v3513_v50 }
 0x4d7   : > { %v6538_v33 = vmax.f32 %v6209_v52, 0.0  ;;  %v3638_v39 = vadd.f32 %v3637_v0, %v3636_v16  ;;  %v6539_v50 = vmax.f32 %v6223_v45, 0.0 }
 0x4d9   : > { %v3639_v12 = vsel %vm3591_vm2, %v6538_v33, 0.0  ;;  %v3641_v33 = vsel %vm3591_vm2, %v6539_v50, 0.0 }
 0x4da   : > { %v3640_v54 = vadd.f32 %v3639_v12, %v3638_v39 }
 0x4dc   : > { %v3642_v16 = vadd.f32 %v3641_v33, %v3640_v54 }
 0x4f1   : > { %v4530_v35 = vpop.f32.mrb[44].mxu0 }
 0x4f2   : > { %v3452_v24 = vpop.f32.mrb[45].mxu0 }
 0x4f3   : > { %v3514_v38 = vmul.f32 %v5989_v34, %v3452_v24  ;;  %v3515_v24 = vmul.f32 %v4530_v35, %v5989_v34 }
 0x4f5   : > { %v6226_v11 = vadd.f32 %v5998_v25, %v3514_v38  ;;  %v6239_v37 = vadd.f32 %v5998_v25, %v3515_v24 }
 0x4f7   : > { %v6540_v38 = vmax.f32 %v6226_v11, 0.0 }
 0x4f9   : > { %v3643_v35 = vsel %vm3591_vm2, %v6540_v38, 0.0 }
 0x4fa   : > { %v3644_v24 = vadd.f32 %v3643_v35, %v3642_v16 }
 0x510   : > { %v4533_v41 = vpop.f32.mrb[46].mxu0 }
 0x511   : > { %v3462_v21 = vpop.f32.mrb[47].mxu0  ;;  %v3517_v0 = vmul.f32 %v4533_v41, %v5989_v34 }
 0x512   : > { %v3516_v31 = vmul.f32 %v5989_v34, %v3462_v21  ;;  %v6544_v21 = vmax.f32 %v6239_v37, 0.0 }
 0x513   : > { %v6254_v39 = vadd.f32 %v5998_v25, %v3517_v0 }
 0x514   : > { %v6242_v29 = vadd.f32 %v5998_v25, %v3516_v31  ;;  %v3645_v31 = vsel %vm3591_vm2, %v6544_v21, 0.0 }
 0x515   : > { %v3646_v3 = vadd.f32 %v3645_v31, %v3644_v24  ;;  %v6545_v54 = vmax.f32 %v6254_v39, 0.0 }
 0x516   : > { %v6543_v12 = vmax.f32 %v6242_v29, 0.0 }
 0x518   : > { %v3647_v50 = vsel %vm3591_vm2, %v6543_v12, 0.0  ;;  %v3649_v12 = vsel %vm3591_vm2, %v6545_v54, 0.0 }
 0x519   : > { %v3648_v16 = vadd.f32 %v3647_v50, %v3646_v3 }
 0x51b   : > { %v3650_v31 = vadd.f32 %v3649_v12, %v3648_v16  ;;  %v3740_v12 = vld [vmem:[%s6530_s12] sm:$0xf] }
 0x51c   : > { %v3665_v16 = vld [vmem:[%s6529_s11] sm:$0x1] }
 0x51d   : > { %v4536_v38 = vpop.f32.mrb[48].mxu0 }
 0x51e   : > { %v3519_v41 = vmul.f32 %v4536_v38, %v5989_v34  ;;  %v3472_v33 = vpop.f32.mrb[49].mxu0 }
 0x51f   : > { %v3518_v35 = vmul.f32 %v5989_v34, %v3472_v33 }
 0x520   : > { %v6266_v0 = vadd.f32 %v5998_v25, %v3519_v41 }
 0x521   : > { %v6269_v56 = vadd.f32 %v5998_v25, %v3518_v35 }
 0x522   : > { %v6548_v24 = vmax.f32 %v6266_v0, 0.0 }
 0x523   : > { %v6549_v38 = vmax.f32 %v6269_v56, 0.0 }
 0x524   : > { %v3653_v50 = vsel %vm3591_vm2, %v6548_v24, 0.0 }
 0x525   : > { %v3651_v34 = vsel %vm3591_vm2, %v6549_v38, 0.0  ;;  %v3741_v38 = vld [vmem:[%s6531_s13] sm:$0x1] }
 0x526   : > { %v3652_v3 = vadd.f32 %v3651_v34, %v3650_v31 }
 0x528   : > { %v3654_v25 = vadd.f32 %v3653_v50, %v3652_v3 }
 0x52a   : > { %v3655_v41 = vrot.slane %v3654_v25, 4 }
 0x52c   : > { %v3656_v33 = vadd.f32 %v3655_v41, %v3654_v25 }
 0x52e   : > { %v3657_v35 = vrot.slane %v3656_v33, 2 }
 0x530   : > { %v3658_v21 = vadd.f32 %v3657_v35, %v3656_v33 }
 0x532   : > { %v3659_v54 = vrot.slane %v3658_v21, 1 }
 0x534   : > { %v3660_v8 = vadd.f32 %v3659_v54, %v3658_v21 }
 0x536   : > { %v3662_v48 = vmul.f32 0.00390625, %v3660_v8  ;;  %v6295_v8 = vpop.permute.xlu1 %3926 }
 0x538   : > { %4542 = vmatmul.mubr.msk.f32.vlgmr.msra.gmra.mrb[46].mxu1 %vm3591_vm2, %v3662_v48  ;;  %v6293_v48 = vpop.permute.xlu0 %3924 }
 0x539   : > { %4546 = vmatprep.mubr.msk.f32.mxu1 %vm4620_vm15, %v4609_v17  ;;  %4545 = vmatpush3.msk.msra.mxu1 %vm598_vm0, %v3740_v12 }
 0x53a   : > { %v6299_v54 = vpop.permute.xlu1 %3930 }
 0x53c   : > { %v6297_v17 = vpop.permute.xlu0 %3928 }
 0x53e   : > { %v6303_v25 = vpop.permute.xlu1 %3934 }
 0x540   : > { %v6301_v50 = vpop.permute.xlu0 %3932 }
 0x542   : > { %v6307_v33 = vpop.permute.xlu1 %3938 }
 0x544   : > { %v6305_v41 = vpop.permute.xlu0 %3936 }
 0x546   : > { %v6311_v12 = vpop.permute.xlu1 %3942 }
 0x548   : > { %v6309_v35 = vpop.permute.xlu0 %3940 }
 0x60b   : > { %v3735_v31 = vpop.f32.mrb[46].mxu1 }
 0x60c   : > { %v3736_v34 = vadd.f32 %v3735_v31, %v3665_v16  ;;  %v4543_v3 = vpop.f32.mrb[47].mxu1  ;;  %v6313_v16 = vpop.permute.xlu0 %3944 }
 0x60d   : > { %v6315_v31 = vpop.permute.xlu1 %3946 }
 0x60e   : > { %v3739_v21 = vmax.f32 %v3736_v34, 0.0 }
 0x610   : > { %4547 = vmatmul.mubr.msk.f32.vlgmr.msra.gmra.mrb[48].mxu1 %vm501_vm1, %v3739_v21  ;;  %v6317_v34 = vpop.permute.xlu0 %3948 }
 0x611   : > { %v6319_v3 = vpop.permute.xlu1 %3950 }
 0x614   : > { %v6321_v21 = vpop.permute.xlu0 %3952 }
 0x615   : > { %v6323_v24 = vpop.permute.xlu1 %3954 }
 0x618   : > { %v6328_v1 = vpop.permute.xlu0 %3956 }
 0x619   : > { %v6330_v27 = vpop.permute.xlu1 %3958 }
 0x61a   : > { %6565 = vst [vmem:[#allocation5_spill] sm:$0xff] %v6330_v27 }
 0x61c   : > { %v6332_v63 = vpop.permute.xlu0 %3960 }
 0x61d   : > { %6566 = vst [vmem:[#allocation6_spill] sm:$0xff] %v6332_v63  ;;  %v6334_v19 = vpop.permute.xlu1 %3962  ;;  %v6574_v63 = vmax.f32 %v6006_v43, 0.0  ;;  %v6581_v43 = vmax.f32 %v6062_v59, 0.0 }
 0x61e   : > { %6567 = vst [vmem:[#allocation7_spill] sm:$0xff] %v6334_v19 }
 0x620   : > { %v6336_v9 = vpop.permute.xlu0 %3964 }
 0x621   : > { %6568 = vst [vmem:[#allocation8_spill] sm:$0xff] %v6336_v9  ;;  %v6338_v49 = vpop.permute.xlu1 %3966 }
 0x622   : > { %6569 = vst [vmem:[#allocation9_spill] sm:$0xff] %v6338_v49  ;;  %v6575_v49 = vmax.f32 %v6003_v42, 0.0 }
 0x6e3   : > { %v3814_v46 = vpop.f32.mrb[48].mxu1 }
 0x6e4   : > { %v3815_v22 = vadd.f32 %v3814_v46, %v3741_v38  ;;  %v4548_v7 = vpop.f32.mrb[49].mxu1  ;;  %v6340_v46 = vpop.permute.xlu0 %3968  ;;  %v3857_v38 = vshrl.u32 %v3856_v55, 7  ;;  %v6578_v55 = vmax.f32 %v6028_v40, 0.0 }
 0x6e5   : > { %6570 = vst [vmem:[#allocation10_spill] sm:$0xff] %v6340_v46  ;;  %v6342_v7 = vpop.permute.xlu1 %3970  ;;  %v6577_v46 = vmax.f32 %v6025_v60, 0.0 }
 0x6e6   : > { %v4254_v47 = vmul.f32 -1.442695, %v3815_v22  ;;  %6571 = vst [vmem:[#allocation11_spill] sm:$0xff] %v6342_v7  ;;  %v3858_v36 = vsub.s32 0, %v3857_v38 }
 0x6e8   : > { %4590 = vpow2.f32 %v4254_v47  ;;  %v6344_v22 = vpop.permute.xlu0 %3972 }
 0x6e9   : > { %6572 = vst [vmem:[#allocation12_spill] sm:$0xff] %v6344_v22  ;;  %v6346_v47 = vpop.permute.xlu1 %3974  ;;  %v6579_v22 = vmax.f32 %v6044_v4, 0.0 }
 0x6ea   : > { %6573 = vst [vmem:[#allocation13_spill] sm:$0xff] %v6346_v47 }
 0x6ec   : > { %v6364_v42 = vpop.permute.xlu0 %3976 }
 0x6ed   : > { %6582 = vst [vmem:[#allocation14_spill] sm:$0xff] %v6364_v42 }
 0x6f2   : > { %v4591_v10 = vpop.eup %4590 }
 0x6f3   : > { %v3821_v62 = vadd.f32 1.0, %v4591_v10 }
 0x6f5   : > { %4592 = vrcp.f32 %v3821_v62  ;;  %v6576_v62 = vmax.f32 %v6009_v44, 0.0  ;;  %v6584_v44 = vmax.f32 %v6065_v14, 0.0 }
 0x6ff   : > { %v4593_v26 = vpop.eup %4592 }
 0x700   : > { %v3859_v19 = vrot.slane %v4593_v26, %v3858_v36  ;;  %v6580_v36 = vmax.f32 %v6047_v5, 0.0 }
 0x702   : > { %v3860_v9 = vmul.f32 %v3859_v19, %v6574_v63  ;;  %v3861_v10 = vmul.f32 %v3859_v19, %v6575_v49  ;;  %v3862_v27 = vmul.f32 %v3859_v19, %v6576_v62  ;;  %v3863_v7 = vmul.f32 %v3859_v19, %v6577_v46  ;;  %v6366_v49 = vpop.permute.xlu1 %3978 }
 0x703   : > { %v3864_v38 = vmul.f32 %v3859_v19, %v6578_v55  ;;  %v3865_v47 = vmul.f32 %v3859_v19, %v6579_v22  ;;  %v3866_v26 = vmul.f32 %v3859_v19, %v6580_v36  ;;  %v3867_v63 = vmul.f32 %v3859_v19, %v6581_v43  ;;  %6583 = vst [vmem:[#allocation15_spill] sm:$0xff] %v6366_v49 }
 0x704   : > { %v3868_v60 = vmul.f32 %v3859_v19, %v6584_v44  ;;  %v6585_v46 = vmax.f32 %v6080_v23, 0.0  ;;  %v6586_v62 = vmax.f32 %v6083_v28, 0.0  ;;  %v6587_v22 = vmax.f32 %v6098_v53, 0.0 }
 0x705   : > { %v6588_v55 = vmax.f32 %v6101_v30, 0.0  ;;  %v6589_v36 = vmax.f32 %v6116_v6, 0.0  ;;  %v6590_v49 = vmax.f32 %v6119_v2, 0.0  ;;  %v6591_v44 = vmax.f32 %v6134_v51, 0.0 }
 0x706   : > { %v3869_v40 = vmul.f32 %v3859_v19, %v6585_v46  ;;  %v3870_v4 = vmul.f32 %v3859_v19, %v6586_v62  ;;  %v3871_v5 = vmul.f32 %v3859_v19, %v6587_v22  ;;  %v6592_v46 = vmax.f32 %v6137_v13, 0.0 }
 0x707   : > { %v3872_v59 = vmul.f32 %v3859_v19, %v6588_v55  ;;  %v3873_v43 = vmul.f32 %v3859_v19, %v6589_v36  ;;  %v3874_v14 = vmul.f32 %v3859_v19, %v6590_v49  ;;  %v3875_v23 = vmul.f32 %v3859_v19, %v6591_v44 }
 0x708   : > { %v3876_v28 = vmul.f32 %v3859_v19, %v6592_v46  ;;  %v6593_v62 = vmax.f32 %v6152_v57, 0.0  ;;  %v6594_v22 = vmax.f32 %v6155_v58, 0.0  ;;  %v6595_v55 = vmax.f32 %v6170_v15, 0.0 }
 0x709   : > { %v6596_v36 = vmax.f32 %v6173_v18, 0.0  ;;  %v6597_v2 = vmax.f32 %v6188_v61, 0.0  ;;  %v6598_v51 = vmax.f32 %v6191_v20, 0.0  ;;  %v6599_v13 = vmax.f32 %v6206_v32, 0.0 }
 0x70a   : > { %v3877_v53 = vmul.f32 %v3859_v19, %v6593_v62  ;;  %v3878_v30 = vmul.f32 %v3859_v19, %v6594_v22  ;;  %v3879_v6 = vmul.f32 %v3859_v19, %v6595_v55  ;;  %v6600_v57 = vmax.f32 %v6209_v52, 0.0 }
 0x70b   : > { %v3880_v42 = vmul.f32 %v3859_v19, %v6596_v36  ;;  %v3881_v49 = vmul.f32 %v3859_v19, %v6597_v2  ;;  %v3882_v44 = vmul.f32 %v3859_v19, %v6598_v51  ;;  %v3883_v46 = vmul.f32 %v3859_v19, %v6599_v13  ;;  %v3981_v51 = vpop.permute.xlu0 %3980  ;;  %v3983_v13 = vpop.permute.xlu1 %3982 }
 0x70c   : > { %v3884_v62 = vmul.f32 %v3859_v19, %v6600_v57  ;;  %v6601_v58 = vmax.f32 %v6223_v45, 0.0  ;;  %v6602_v15 = vmax.f32 %v6226_v11, 0.0  ;;  %v6603_v18 = vmax.f32 %v6239_v37, 0.0 }
 0x70d   : > { %v6604_v61 = vmax.f32 %v6242_v29, 0.0  ;;  %v6605_v32 = vmax.f32 %v6254_v39, 0.0  ;;  %v6606_v45 = vmax.f32 %v6269_v56, 0.0  ;;  %v6607_v11 = vmax.f32 %v6266_v0, 0.0 }
 0x70e   : > { %v3885_v22 = vmul.f32 %v3859_v19, %v6601_v58  ;;  %v3886_v55 = vmul.f32 %v3859_v19, %v6602_v15  ;;  %v3887_v36 = vmul.f32 %v3859_v19, %v6603_v18  ;;  %v4020_v57 = vadd.f32 %v6293_v48, %v3860_v9 }
 0x70f   : > { %v3888_v20 = vmul.f32 %v3859_v19, %v6604_v61  ;;  %v3889_v52 = vmul.f32 %v3859_v19, %v6605_v32  ;;  %v3890_v2 = vmul.f32 %v3859_v19, %v6606_v45  ;;  %v3891_v37 = vmul.f32 %v3859_v19, %v6607_v11 }
 0x710   : > { %v4021_v29 = vadd.f32 %v6295_v8, %v3861_v10  ;;  %v4022_v58 = vadd.f32 %v6297_v17, %v3862_v27  ;;  %v4023_v39 = vadd.f32 %v6299_v54, %v3863_v7  ;;  %v4024_v56 = vadd.f32 %v6301_v50, %v3864_v38  ;;  %4052 = vst.msk [vmem:[%s6413_s20] sm:$0xff] %vm3591_vm2, %v4020_v57  ;;  %v6613_v7 = vld [vmem:[#allocation10_spill] sm:$0xff]  ;;  %v6614_v10 = vld [vmem:[#allocation11_spill] sm:$0xff] }
 0x711   : > { %v4025_v0 = vadd.f32 %v6303_v25, %v3865_v47  ;;  %v4026_v19 = vadd.f32 %v6305_v41, %v3866_v26  ;;  %v4027_v15 = vadd.f32 %v6307_v33, %v3867_v63  ;;  %v4028_v9 = vadd.f32 %v6309_v35, %v3868_v60  ;;  %v6608_v33 = vld [vmem:[#allocation5_spill] sm:$0xff]  ;;  %v3985_v26 = vpop.permute.xlu0 %3984  ;;  %v3987_v63 = vpop.permute.xlu1 %3986 }
 0x712   : > { %v4029_v48 = vadd.f32 %v6311_v12, %v3869_v40  ;;  %v4030_v27 = vadd.f32 %v6313_v16, %v3870_v4  ;;  %v4031_v8 = vadd.f32 %v6315_v31, %v3871_v5  ;;  %4053 = vst.msk [vmem:[%s6413_s20 + $0x8] sm:$0xff] %vm3591_vm2, %v4021_v29  ;;  %4054 = vst.msk [vmem:[%s6413_s20 + $0x10] sm:$0xff] %vm3591_vm2, %v4022_v58  ;;  %v6609_v12 = vld [vmem:[#allocation6_spill] sm:$0xff]  ;;  %v6610_v31 = vld [vmem:[#allocation7_spill] sm:$0xff] }
 0x713   : > { %4055 = vst.msk [vmem:[%s6413_s20 + $0x18] sm:$0xff] %vm3591_vm2, %v4023_v39  ;;  %v4032_v17 = vadd.f32 %v6317_v34, %v3872_v59  ;;  %v4033_v54 = vadd.f32 %v6319_v3, %v3873_v43  ;;  %v4034_v50 = vadd.f32 %v6321_v21, %v3874_v14  ;;  %v4035_v25 = vadd.f32 %v6323_v24, %v3875_v23  ;;  %v6611_v34 = vld [vmem:[#allocation8_spill] sm:$0xff]  ;;  %v6612_v21 = vld [vmem:[#allocation9_spill] sm:$0xff]  ;;  %v6617_v5 = vld [vmem:[#allocation14_spill] sm:$0xff] }
 0x714   : > { %4056 = vst.msk [vmem:[%s6413_s20 + $0x20] sm:$0xff] %vm3591_vm2, %v4024_v56  ;;  %4057 = vst.msk [vmem:[%s6413_s20 + $0x28] sm:$0xff] %vm3591_vm2, %v4025_v0  ;;  %v4036_v41 = vadd.f32 %v6328_v1, %v3876_v28  ;;  %v4037_v35 = vadd.f32 %v6608_v33, %v3877_v53  ;;  %v4038_v16 = vadd.f32 %v6609_v12, %v3878_v30  ;;  %v6616_v40 = vld [vmem:[#allocation13_spill] sm:$0xff]  ;;  %v6618_v43 = vld [vmem:[#allocation15_spill] sm:$0xff] }
 0x715   : > { %4058 = vst.msk [vmem:[%s6413_s20 + $0x30] sm:$0xff] %vm3591_vm2, %v4026_v19  ;;  %4059 = vst.msk [vmem:[%s6413_s20 + $0x38] sm:$0xff] %vm3591_vm2, %v4027_v15  ;;  %v4039_v24 = vadd.f32 %v6610_v31, %v3879_v6  ;;  %v4040_v3 = vadd.f32 %v6611_v34, %v3880_v42  ;;  %v4041_v1 = vadd.f32 %v6612_v21, %v3881_v49  ;;  %v6615_v42 = vld [vmem:[#allocation12_spill] sm:$0xff] }
 0x716   : > { %4060 = vst.msk [vmem:[%s6413_s20 + $0x40] sm:$0xff] %vm3591_vm2, %v4028_v9  ;;  %4061 = vst.msk [vmem:[%s6413_s20 + $0x48] sm:$0xff] %vm3591_vm2, %v4029_v48  ;;  %v4042_v47 = vadd.f32 %v6613_v7, %v3882_v44  ;;  %v4043_v38 = vadd.f32 %v6614_v10, %v3883_v46  ;;  %v4044_v60 = vadd.f32 %v6615_v42, %v3884_v62 }
 0x717   : > { %4062 = vst.msk [vmem:[%s6413_s20 + $0x50] sm:$0xff] %vm3591_vm2, %v4030_v27  ;;  %4063 = vst.msk [vmem:[%s6413_s20 + $0x58] sm:$0xff] %vm3591_vm2, %v4031_v8  ;;  %v4045_v4 = vadd.f32 %v6616_v40, %v3885_v22  ;;  %v4046_v59 = vadd.f32 %v6617_v5, %v3886_v55  ;;  %v4047_v14 = vadd.f32 %v6618_v43, %v3887_v36 }
 0x718   : > { %4064 = vst.msk [vmem:[%s6413_s20 + $0x60] sm:$0xff] %vm3591_vm2, %v4032_v17  ;;  %4065 = vst.msk [vmem:[%s6413_s20 + $0x68] sm:$0xff] %vm3591_vm2, %v4033_v54  ;;  %v4048_v23 = vadd.f32 %v3981_v51, %v3888_v20  ;;  %v4049_v28 = vadd.f32 %v3983_v13, %v3889_v52  ;;  %v4050_v53 = vadd.f32 %v3985_v26, %v3890_v2 }
 0x719   : > { %4066 = vst.msk [vmem:[%s6413_s20 + $0x70] sm:$0xff] %vm3591_vm2, %v4034_v50  ;;  %4067 = vst.msk [vmem:[%s6413_s20 + $0x78] sm:$0xff] %vm3591_vm2, %v4035_v25  ;;  %v4051_v30 = vadd.f32 %v3987_v63, %v3891_v37 }
 0x71a   : > { %4068 = vst.msk [vmem:[%s6413_s20 + $0x80] sm:$0xff] %vm3591_vm2, %v4036_v41  ;;  %4069 = vst.msk [vmem:[%s6413_s20 + $0x88] sm:$0xff] %vm3591_vm2, %v4037_v35 }
 0x71b   : > { %4070 = vst.msk [vmem:[%s6413_s20 + $0x90] sm:$0xff] %vm3591_vm2, %v4038_v16  ;;  %4071 = vst.msk [vmem:[%s6413_s20 + $0x98] sm:$0xff] %vm3591_vm2, %v4039_v24 }
 0x71c   : > { %4072 = vst.msk [vmem:[%s6413_s20 + $0xa0] sm:$0xff] %vm3591_vm2, %v4040_v3  ;;  %4073 = vst.msk [vmem:[%s6413_s20 + $0xa8] sm:$0xff] %vm3591_vm2, %v4041_v1 }
 0x71d   : > { %4074 = vst.msk [vmem:[%s6413_s20 + $0xb0] sm:$0xff] %vm3591_vm2, %v4042_v47  ;;  %4075 = vst.msk [vmem:[%s6413_s20 + $0xb8] sm:$0xff] %vm3591_vm2, %v4043_v38 }
 0x71e   : > { %4076 = vst.msk [vmem:[%s6413_s20 + $0xc0] sm:$0xff] %vm3591_vm2, %v4044_v60  ;;  %4077 = vst.msk [vmem:[%s6413_s20 + $0xc8] sm:$0xff] %vm3591_vm2, %v4045_v4 }
 0x71f   : > { %4078 = vst.msk [vmem:[%s6413_s20 + $0xd0] sm:$0xff] %vm3591_vm2, %v4046_v59  ;;  %4079 = vst.msk [vmem:[%s6413_s20 + $0xd8] sm:$0xff] %vm3591_vm2, %v4047_v14 }
 0x720   : > { %4080 = vst.msk [vmem:[%s6413_s20 + $0xe0] sm:$0xff] %vm3591_vm2, %v4048_v23  ;;  %4081 = vst.msk [vmem:[%s6413_s20 + $0xe8] sm:$0xff] %vm3591_vm2, %v4049_v28 }
 0x721   : > { %4082 = vst.msk [vmem:[%s6413_s20 + $0xf0] sm:$0xff] %vm3591_vm2, %v4050_v53  ;;  %4083 = vst.msk [vmem:[%s6413_s20 + $0xf8] sm:$0xff] %vm3591_vm2, %v4051_v30 }
 0x722 PF: > { %s24_s29 = sadd.s32 1, %s4607_s29  }
 0x723   : > { %p21_p4 = scmp.ge.s32.totalorder %s24_s29, 4  }
 0x725   :  { %23 = sbr.rel (!%p21_p4) target bundleno = 1 (0x1), region = 109 }

</bundles_post_ra>
